<compile_context>
chip_gen: v7x
topology: tpu7x:2x2x1
jax: 0.10.0
libtpu: 0.0.40
codegen_flags: <defaults>
</compile_context>

<pallas_src>
import functools

import jax
import jax.numpy as jnp
import numpy as np
from jax import lax
from jax.experimental import pallas as pl
from jax.experimental.pallas import tpu as pltpu


def _build_tap_masks(H, W, batch_block):
  """mask[p, tap] = 1 iff output pixel p (repeated per folded batch) has the tap's
  3x3 neighbour inside the image ('same' conv zero padding)."""
  HW = H * W
  m = np.zeros((batch_block * HW, 9), np.float32)
  for tap in range(9):
    dy, dx = tap // 3 - 1, tap % 3 - 1
    for y in range(H):
      for x in range(W):
        if 0 <= y + dy < H and 0 <= x + dx < W:
          for b in range(batch_block):
            m[b * HW + y * W + x, tap] = 1.0
  return jnp.asarray(m)


def sa_convlstm_kernel(x_ref, mask_ref, wx_ref, wh_ref, convb_ref, peep_ref,
                       wq_ref, bq_ref, wk_ref, bk_ref, wvz_ref, wzh_ref, bzz_ref,
                       out_ref, attn_ref,
                       conv_scr, h_scr, c_scr,
                       *, out_channels, width, att_row, batch_block, hw, pad,
                       mxu_dtype, approx_recip):
  t = pl.program_id(1)
  Co = out_channels
  C4 = 4 * Co
  M = batch_block * hw

  @pl.when(t == 0)
  def _init():
    h_scr[...] = jnp.zeros_like(h_scr)
    c_scr[...] = jnp.zeros_like(c_scr)
    conv_scr[...] = jnp.zeros_like(conv_scr)   # keeps the halo rows zero

  x = x_ref[0]                                  # (M, Cin)
  h = h_scr[...]                                # (M, Co)  f32 recurrent state
  c = c_scr[...]                                # (M, Co)

  # ---- 3x3 "same" conv over cat([x, h]): two wide matmuls (taps packed along N),
  #      then 9 shifted reads of the per-tap slices from a halo-padded scratch. ----
  conv_all = (
      jnp.dot(x.astype(mxu_dtype), wx_ref[...], preferred_element_type=jnp.float32) +
      jnp.dot(h.astype(mxu_dtype), wh_ref[...], preferred_element_type=jnp.float32))  # (M, 9*4Co)

  for tap in range(9):
    if tap == 4:                                # center tap never shifts
      continue
    conv_scr[tap, pl.ds(pad, M), :] = conv_all[:, tap * C4:(tap + 1) * C4]

  conv = convb_ref[...] + conv_all[:, 4 * C4:5 * C4]          # bias + center tap
  for tap in range(9):
    if tap == 4:
      continue
    dy, dx = tap // 3 - 1, tap % 3 - 1
    shift = dy * width + dx                                   # static flat spatial offset
    piece = conv_scr[tap, pl.ds(pad + shift, M), :]           # (M, 4Co) shifted slice
    keep = mask_ref[:, tap:tap + 1] > 0.5                     # (M, 1) edge validity
    conv = conv + jnp.where(keep, piece, 0.0)

  # ---- LSTM gates with per-pixel peephole (all float32) ----------------------
  i_conv = conv[:, 0 * Co:1 * Co]
  f_conv = conv[:, 1 * Co:2 * Co]
  g_conv = conv[:, 2 * Co:3 * Co]
  o_conv = conv[:, 3 * Co:4 * Co]

  i_gate = jax.nn.sigmoid(i_conv + peep_ref[0] * c)
  f_gate = jax.nn.sigmoid(f_conv + peep_ref[1] * c)
  c_new = f_gate * c + i_gate * jnp.tanh(g_conv)
  o_gate = jax.nn.sigmoid(o_conv + peep_ref[2] * c_new)
  h_conv = o_gate * jnp.tanh(c_new)                           # (M, Co)

  # ---- Self-attention on h (1x1 convs == channel matmuls, per folded batch) --
  hc = h_conv.astype(mxu_dtype)
  q = jnp.dot(hc, wq_ref[...], preferred_element_type=jnp.float32) + bq_ref[...]
  k = jnp.dot(hc, wk_ref[...], preferred_element_type=jnp.float32) + bk_ref[...]
  v = jnp.dot(hc, wvz_ref[...], preferred_element_type=jnp.float32)   # value proj pre-fused with wz_z

  q3 = q.astype(mxu_dtype).reshape(batch_block, hw, q.shape[1])
  k3 = k.astype(mxu_dtype).reshape(batch_block, hw, k.shape[1])
  v3 = v.astype(mxu_dtype).reshape(batch_block, hw, Co)

  scores = jnp.einsum("bpa,bqa->bpq", q3, k3,
                      preferred_element_type=jnp.float32)     # (BB, HW, HW) f32
  scores = scores - jnp.max(scores, axis=-1, keepdims=True)
  e = jnp.exp(scores)
  denom = jnp.sum(e, axis=-1, keepdims=True)
  if approx_recip:
    attn = e * pl.reciprocal(denom, approx=True)              # EUP reciprocal (bf16 path)
  else:
    attn = e / denom                                          # exact divide (f32 path)

  z = jnp.einsum("bpq,bqd->bpd", attn.astype(mxu_dtype), v3,
                 preferred_element_type=jnp.float32).reshape(M, Co)
  h_new = (z
           + jnp.dot(hc, wzh_ref[...], preferred_element_type=jnp.float32)
           + bzz_ref[...])

  h_scr[...] = h_new
  c_scr[...] = c_new
  out_ref[0] = h_new
  # attention_scores[:, t] = attention[:, attention.size(0) // 2]  (batch-size-indexed
  # query row, faithfully mirroring the PyTorch module).
  attn_ref[0] = attn[:, att_row:att_row + 1, :]


def sa_convlstm_forward(X, params, *, out_channels, attention_hidden_dims,
                        mxu_dtype=jnp.bfloat16, num_batch_blocks=None):
  """X: (B, Cin, T, H, W) float32 (PyTorch layout). Returns (output, attention_scores)."""
  B, Cin, T, H, W = X.shape
  HW = H * W
  Co = out_channels
  A = attention_hidden_dims
  C4 = 4 * Co
  f32 = jnp.float32
  cdt = np.dtype(mxu_dtype)
  approx_recip = cdt != np.dtype(np.float32)

  if num_batch_blocks is None:
    num_batch_blocks = 2 if (B >= 2 and B % 2 == 0) else 1    # leading 'parallel' axis (v7x)
  NB = num_batch_blocks
  assert B % NB == 0
  BB = B // NB                    # batch elements folded into the matmul M dimension
  M = BB * HW
  PAD = max(8, ((W + 1 + 7) // 8) * 8)                        # sublane-aligned halo >= W+1

  (convw_x, convw_h, convb, peep, wq, bq, wk, bk, wv, bv, wz_z, wz_h, bz) = params

  # channels-last, spatially flattened, batch folded into rows: (T, B*HW, Cin)
  x_flat = jnp.transpose(X, (2, 0, 3, 4, 1)).reshape(T, B * HW, Cin)

  # pack the 9 per-tap conv weights along N so the conv is one wide matmul per operand
  wx_all = jnp.transpose(convw_x, (1, 0, 2)).reshape(Cin, 9 * C4).astype(cdt)
  wh_all = jnp.transpose(convw_h, (1, 0, 2)).reshape(Co, 9 * C4).astype(cdt)
  convb_f = convb.astype(f32).reshape(1, C4)
  peep_tiled = jnp.tile(peep.astype(f32), (1, BB, 1))          # (3, M, Co)

  # fold the value projection into the attention output projection (softmax rows sum to 1)
  wvz = (wv.astype(f32) @ wz_z.astype(f32)).astype(cdt)        # (Co, Co)
  bzz = bv.astype(f32).reshape(1, Co) @ wz_z.astype(f32) + bz.astype(f32).reshape(1, Co)

  wq_c, wk_c, wzh_c = wq.astype(cdt), wk.astype(cdt), wz_h.astype(cdt)
  bq_f, bk_f = bq.astype(f32).reshape(1, A), bk.astype(f32).reshape(1, A)

  masks = _build_tap_masks(H, W, BB)                           # (M, 9) f32

  kernel = functools.partial(
      sa_convlstm_kernel, out_channels=Co, width=W, att_row=B // 2,
      batch_block=BB, hw=HW, pad=PAD, mxu_dtype=cdt, approx_recip=approx_recip)

  grid_spec = pltpu.PrefetchScalarGridSpec(
      num_scalar_prefetch=0,
      grid=(NB, T),
      in_specs=[
          pl.BlockSpec((1, M, Cin), lambda bb, t: (t, bb, 0)),    # x block
          pl.BlockSpec((M, 9), lambda bb, t: (0, 0)),             # tap validity masks
          pl.BlockSpec((Cin, 9 * C4), lambda bb, t: (0, 0)),      # packed conv W_x
          pl.BlockSpec((Co, 9 * C4), lambda bb, t: (0, 0)),       # packed conv W_h
          pl.BlockSpec((1, C4), lambda bb, t: (0, 0)),            # conv bias
          pl.BlockSpec((3, M, Co), lambda bb, t: (0, 0, 0)),      # peephole (tiled per BB)
          pl.BlockSpec((Co, A), lambda bb, t: (0, 0)),            # Wq
          pl.BlockSpec((1, A), lambda bb, t: (0, 0)),             # bq
          pl.BlockSpec((Co, A), lambda bb, t: (0, 0)),            # Wk
          pl.BlockSpec((1, A), lambda bb, t: (0, 0)),             # bk
          pl.BlockSpec((Co, Co), lambda bb, t: (0, 0)),           # Wv @ Wz_z (folded)
          pl.BlockSpec((Co, Co), lambda bb, t: (0, 0)),           # Wz_h
          pl.BlockSpec((1, Co), lambda bb, t: (0, 0)),            # bv @ Wz_z + bz (folded)
      ],
      out_specs=[
          pl.BlockSpec((1, M, Co), lambda bb, t: (t, bb, 0)),
          pl.BlockSpec((1, BB, 1, HW), lambda bb, t: (t, bb, 0, 0)),
      ],
      scratch_shapes=[
          pltpu.VMEM((9, M + 2 * PAD, C4), jnp.float32),   # halo-padded per-tap conv slices
          pltpu.VMEM((M, Co), jnp.float32),                # recurrent hidden state
          pltpu.VMEM((M, Co), jnp.float32),                # recurrent cell state
      ],
  )

  out_flat, attn_rows = pl.pallas_call(
      kernel,
      out_shape=(
          jax.ShapeDtypeStruct((T, B * HW, Co), f32),
          jax.ShapeDtypeStruct((T, B, 1, HW), f32),
      ),
      grid_spec=grid_spec,
      compiler_params=pltpu.CompilerParams(
          dimension_semantics=("parallel", "arbitrary"),
          vmem_limit_bytes=32 * 1024 * 1024),
  )(x_flat, masks, wx_all, wh_all, convb_f, peep_tiled,
    wq_c, bq_f, wk_c, bk_f, wvz, wzh_c, bzz)

  output = jnp.transpose(out_flat.reshape(T, B, H, W, Co), (1, 4, 0, 2, 3))
  attention_scores = jnp.transpose(attn_rows.reshape(T, B, HW), (1, 0, 2))
  return output, attention_scores


def reference_forward(X, params, *, out_channels, attention_hidden_dims):
  """Pure-JAX reference matching the PyTorch module semantics (NCHW)."""
  B, Cin, T, H, W = X.shape
  HW = H * W
  Co = out_channels
  (convw_x, convw_h, convb, peep, wq, bq, wk, bk, wv, bv, wz_z, wz_h, bz) = params

  convw = jnp.concatenate([convw_x, convw_h], axis=1)              # (9, Cin+Co, 4Co)
  w_oihw = jnp.transpose(convw.reshape(3, 3, Cin + Co, 4 * Co), (3, 2, 0, 1))
  wz = jnp.concatenate([wz_z, wz_h], axis=0)                       # (2Co, Co)
  w_ci = jnp.transpose(peep[0]).reshape(Co, H, W)
  w_cf = jnp.transpose(peep[1]).reshape(Co, H, W)
  w_co = jnp.transpose(peep[2]).reshape(Co, H, W)

  h = jnp.zeros((B, Co, H, W), jnp.float32)
  c = jnp.zeros((B, Co, H, W), jnp.float32)
  outs, attns = [], []
  for t in range(T):
    xt = X[:, :, t]
    inp = jnp.concatenate([xt, h], axis=1)
    conv = lax.conv_general_dilated(inp, w_oihw, (1, 1), "SAME",
                                    dimension_numbers=("NCHW", "OIHW", "NCHW"))
    conv = conv + convb.reshape(1, 4 * Co, 1, 1)
    i_c, f_c, g_c, o_c = jnp.split(conv, 4, axis=1)
    ig = jax.nn.sigmoid(i_c + w_ci[None] * c)
    fg = jax.nn.sigmoid(f_c + w_cf[None] * c)
    c = fg * c + ig * jnp.tanh(g_c)
    og = jax.nn.sigmoid(o_c + w_co[None] * c)
    hconv = og * jnp.tanh(c)                                       # (B, Co, H, W)

    hf = hconv.reshape(B, Co, HW).transpose(0, 2, 1)               # (B, HW, Co)
    q = hf @ wq + bq[None]
    k = hf @ wk + bk[None]
    v = hf @ wv + bv[None]
    scores = jnp.einsum("bpa,bqa->bpq", q, k)
    attn = jax.nn.softmax(scores, axis=-1)
    z = jnp.einsum("bpq,bqd->bpd", attn, v)
    hnew = jnp.concatenate([z, hf], axis=-1) @ wz + bz[None]
    h = hnew.transpose(0, 2, 1).reshape(B, Co, H, W)

    outs.append(h)
    attns.append(attn[:, B // 2, :])
  return jnp.stack(outs, axis=2), jnp.stack(attns, axis=1)


if __name__ == "__main__":
  key = jax.random.PRNGKey(0)
  B, Cin, Co, A, T, H, W = 4, 4, 8, 4, 4, 8, 8
  HW = H * W
  ks = jax.random.split(key, 16)

  X = jax.random.normal(ks[0], (B, Cin, T, H, W), jnp.float32)

  # Deterministic synthetic parameters (same shapes the module's __init__ implies).
  # TODO(synk): module default (WeightsInitializer.Zeros) zero-inits the peephole params;
  # small random values are used here to exercise that code path — the math is identical.
  convw_x = 0.1 * jax.random.normal(ks[1], (9, Cin, 4 * Co), jnp.float32)
  convw_h = 0.1 * jax.random.normal(ks[2], (9, Co, 4 * Co), jnp.float32)
  convb = 0.1 * jax.random.normal(ks[3], (1, 4 * Co), jnp.float32)
  peep = 0.1 * jax.random.normal(ks[4], (3, HW, Co), jnp.float32)
  wq = 0.1 * jax.random.normal(ks[5], (Co, A), jnp.float32)
  bq = 0.1 * jax.random.normal(ks[6], (1, A), jnp.float32)
  wk = 0.1 * jax.random.normal(ks[7], (Co, A), jnp.float32)
  bk = 0.1 * jax.random.normal(ks[8], (1, A), jnp.float32)
  wv = 0.1 * jax.random.normal(ks[9], (Co, Co), jnp.float32)
  bv = 0.1 * jax.random.normal(ks[10], (1, Co), jnp.float32)
  wz_z = 0.1 * jax.random.normal(ks[11], (Co, Co), jnp.float32)
  wz_h = 0.1 * jax.random.normal(ks[12], (Co, Co), jnp.float32)
  bz = 0.1 * jax.random.normal(ks[13], (1, Co), jnp.float32)
  params = (convw_x, convw_h, convb, peep, wq, bq, wk, bk, wv, bv, wz_z, wz_h, bz)

  ref_out, ref_attn = reference_forward(X, params, out_channels=Co, attention_hidden_dims=A)

  # float32 MXU-operand path: tight check against the pure-JAX reference.
  out32, attn32 = sa_convlstm_forward(X, params, out_channels=Co,
                                      attention_hidden_dims=A, mxu_dtype=jnp.float32)
  out32, attn32 = jax.block_until_ready((out32, attn32))
  assert out32.shape == (B, Co, T, H, W)
  assert attn32.shape == (B, T, HW)
  assert jnp.allclose(out32, ref_out, atol=5e-4, rtol=5e-4), "f32 output mismatch"
  assert jnp.allclose(attn32, ref_attn, atol=5e-4, rtol=5e-4), "f32 attention mismatch"

  # bfloat16 MXU-operand path (f32 accumulation / gates / recurrent state): loose check.
  out16, attn16 = sa_convlstm_forward(X, params, out_channels=Co,
                                      attention_hidden_dims=A, mxu_dtype=jnp.bfloat16)
  out16, attn16 = jax.block_until_ready((out16, attn16))
  assert out16.shape == (B, Co, T, H, W)
  assert attn16.shape == (B, T, HW)
  assert jnp.allclose(out16, ref_out, atol=5e-2, rtol=5e-2), "bf16 output mismatch"
  assert jnp.allclose(attn16, ref_attn, atol=5e-2, rtol=5e-2), "bf16 attention mismatch"

  print("KERNEL_OK")
</pallas_src>

<mosaic_0001>
module attributes {stable_mosaic.version = 11 : i64} {
  func.func @sa_convlstm_kernel(%arg0: i32, %arg1: i32, %arg2: memref<1x128x4xf32, #tpu.memory_space<vmem>>, %arg3: memref<128x9xf32, #tpu.memory_space<vmem>>, %arg4: memref<4x288xf32, #tpu.memory_space<vmem>>, %arg5: memref<8x288xf32, #tpu.memory_space<vmem>>, %arg6: memref<1x32xf32, #tpu.memory_space<vmem>>, %arg7: memref<3x128x8xf32, #tpu.memory_space<vmem>>, %arg8: memref<8x4xf32, #tpu.memory_space<vmem>>, %arg9: memref<1x4xf32, #tpu.memory_space<vmem>>, %arg10: memref<8x4xf32, #tpu.memory_space<vmem>>, %arg11: memref<1x4xf32, #tpu.memory_space<vmem>>, %arg12: memref<8x8xf32, #tpu.memory_space<vmem>>, %arg13: memref<8x8xf32, #tpu.memory_space<vmem>>, %arg14: memref<1x8xf32, #tpu.memory_space<vmem>>, %arg15: memref<1x128x8xf32, #tpu.memory_space<vmem>>, %arg16: memref<1x2x1x64xf32, #tpu.memory_space<vmem>>, %arg17: memref<9x160x32xf32, #tpu.memory_space<vmem>>, %arg18: memref<128x8xf32, #tpu.memory_space<vmem>>, %arg19: memref<128x8xf32, #tpu.memory_space<vmem>>) attributes {dimension_semantics = [#tpu.dimension_semantics<parallel>, #tpu.dimension_semantics<arbitrary>], iteration_bounds = array<i64: 2, 4>, scalar_prefetch = 0 : i64, scratch_operands = 3 : i64, tpu.core_type = #tpu.core_type<tc>, window_params = [{transform_indices = @transform_0, window_bounds = array<i64: 1, 128, 4>}, {pipeline_mode = #tpu.pipeline_mode<synchronous>, transform_indices = @transform_1, window_bounds = array<i64: 128, 9>}, {pipeline_mode = #tpu.pipeline_mode<synchronous>, transform_indices = @transform_2, window_bounds = array<i64: 4, 288>}, {pipeline_mode = #tpu.pipeline_mode<synchronous>, transform_indices = @transform_3, window_bounds = array<i64: 8, 288>}, {pipeline_mode = #tpu.pipeline_mode<synchronous>, transform_indices = @transform_4, window_bounds = array<i64: 1, 32>}, {pipeline_mode = #tpu.pipeline_mode<synchronous>, transform_indices = @transform_5, window_bounds = array<i64: 3, 128, 8>}, {pipeline_mode = #tpu.pipeline_mode<synchronous>, transform_indices = @transform_6, window_bounds = array<i64: 8, 4>}, {pipeline_mode = #tpu.pipeline_mode<synchronous>, transform_indices = @transform_7, window_bounds = array<i64: 1, 4>}, {pipeline_mode = #tpu.pipeline_mode<synchronous>, transform_indices = @transform_8, window_bounds = array<i64: 8, 4>}, {pipeline_mode = #tpu.pipeline_mode<synchronous>, transform_indices = @transform_9, window_bounds = array<i64: 1, 4>}, {pipeline_mode = #tpu.pipeline_mode<synchronous>, transform_indices = @transform_10, window_bounds = array<i64: 8, 8>}, {pipeline_mode = #tpu.pipeline_mode<synchronous>, transform_indices = @transform_11, window_bounds = array<i64: 8, 8>}, {pipeline_mode = #tpu.pipeline_mode<synchronous>, transform_indices = @transform_12, window_bounds = array<i64: 1, 8>}, {transform_indices = @transform_13, window_bounds = array<i64: 1, 128, 8>}, {transform_indices = @transform_14, window_bounds = array<i64: 1, 2, 1, 64>}]} {
    %c0_i32 = arith.constant 0 : i32
    %0 = arith.cmpi eq, %arg1, %c0_i32 : i32
    %1 = arith.extui %0 : i1 to i32
    %c0_i32_0 = arith.constant 0 : i32
    %2 = arith.cmpi ne, %1, %c0_i32_0 : i32
    scf.if %2 {
      %cst_125 = arith.constant 0.000000e+00 : f32
      %207 = vector.broadcast %cst_125 : f32 to vector<128x8xf32>
      %c0_126 = arith.constant 0 : index
      %c0_127 = arith.constant 0 : index
      %208 = vector.load %arg18[%c0_126, %c0_127] : memref<128x8xf32, #tpu.memory_space<vmem>>, vector<128x8xf32>
      tpu.vector_store %arg18[%c0_126, %c0_127], %207 {strides = array<i32>} : memref<128x8xf32, #tpu.memory_space<vmem>>, vector<128x8xf32>,
      %cst_128 = arith.constant 0.000000e+00 : f32
      %209 = vector.broadcast %cst_128 : f32 to vector<128x8xf32>
      %c0_129 = arith.constant 0 : index
      %c0_130 = arith.constant 0 : index
      %210 = vector.load %arg19[%c0_129, %c0_130] : memref<128x8xf32, #tpu.memory_space<vmem>>, vector<128x8xf32>
      tpu.vector_store %arg19[%c0_129, %c0_130], %209 {strides = array<i32>} : memref<128x8xf32, #tpu.memory_space<vmem>>, vector<128x8xf32>,
      %cst_131 = arith.constant 0.000000e+00 : f32
      %211 = vector.broadcast %cst_131 : f32 to vector<9x160x32xf32>
      %c0_132 = arith.constant 0 : index
      %c0_133 = arith.constant 0 : index
      %c0_134 = arith.constant 0 : index
      %212 = vector.load %arg17[%c0_132, %c0_133, %c0_134] : memref<9x160x32xf32, #tpu.memory_space<vmem>>, vector<9x160x32xf32>
      tpu.vector_store %arg17[%c0_132, %c0_133, %c0_134], %211 {strides = array<i32>} : memref<9x160x32xf32, #tpu.memory_space<vmem>>, vector<9x160x32xf32>,
    } else {
    }
    %c0 = arith.constant 0 : index
    %c0_1 = arith.constant 0 : index
    %c0_2 = arith.constant 0 : index
    %3 = vector.load %arg2[%c0, %c0_1, %c0_2] : memref<1x128x4xf32, #tpu.memory_space<vmem>>, vector<1x128x4xf32>
    %4 = vector.shape_cast %3 : vector<1x128x4xf32> to vector<128x4xf32>
    %c0_3 = arith.constant 0 : index
    %c0_4 = arith.constant 0 : index
    %5 = vector.load %arg18[%c0_3, %c0_4] : memref<128x8xf32, #tpu.memory_space<vmem>>, vector<128x8xf32>
    %c0_5 = arith.constant 0 : index
    %c0_6 = arith.constant 0 : index
    %6 = vector.load %arg19[%c0_5, %c0_6] : memref<128x8xf32, #tpu.memory_space<vmem>>, vector<128x8xf32>
    %c0_7 = arith.constant 0 : index
    %c0_8 = arith.constant 0 : index
    %7 = vector.load %arg4[%c0_7, %c0_8] : memref<4x288xf32, #tpu.memory_space<vmem>>, vector<4x288xf32>
    %cst = arith.constant dense<0.000000e+00> : vector<128x288xf32>
    %8 = tpu.matmul %4, %7, %cst {dimension_numbers = #tpu.dot_dimension_numbers<[1], [0], [0], [1], [0, 0, 1, 1], [], []>} : vector<128x4xf32>, vector<4x288xf32>, vector<128x288xf32> -> vector<128x288xf32>
    %c0_9 = arith.constant 0 : index
    %c0_10 = arith.constant 0 : index
    %9 = vector.load %arg5[%c0_9, %c0_10] : memref<8x288xf32, #tpu.memory_space<vmem>>, vector<8x288xf32>
    %cst_11 = arith.constant dense<0.000000e+00> : vector<128x288xf32>
    %10 = tpu.matmul %5, %9, %cst_11 {dimension_numbers = #tpu.dot_dimension_numbers<[1], [0], [0], [1], [0, 0, 1, 1], [], []>} : vector<128x8xf32>, vector<8x288xf32>, vector<128x288xf32> -> vector<128x288xf32>
    %11 = arith.addf %8, %10 : vector<128x288xf32>
    %12 = vector.extract_strided_slice %11 {offsets = [0, 0], sizes = [128, 32], strides = [1, 1]} : vector<128x288xf32> to vector<128x32xf32>
    %c0_12 = arith.constant 0 : index
    %c16 = arith.constant 16 : index
    %c0_13 = arith.constant 0 : index
    %13 = vector.load %arg17[%c0_12, %c16, %c0_13] : memref<9x160x32xf32, #tpu.memory_space<vmem>>, vector<1x128x32xf32>
    %14 = vector.shape_cast %13 : vector<1x128x32xf32> to vector<128x32xf32>
    %15 = vector.shape_cast %12 : vector<128x32xf32> to vector<1x128x32xf32>
    tpu.vector_store %arg17[%c0_12, %c16, %c0_13], %15 {strides = array<i32>} : memref<9x160x32xf32, #tpu.memory_space<vmem>>, vector<1x128x32xf32>,
    %16 = vector.extract_strided_slice %11 {offsets = [0, 32], sizes = [128, 32], strides = [1, 1]} : vector<128x288xf32> to vector<128x32xf32>
    %c1 = arith.constant 1 : index
    %c16_14 = arith.constant 16 : index
    %c0_15 = arith.constant 0 : index
    %17 = vector.load %arg17[%c1, %c16_14, %c0_15] : memref<9x160x32xf32, #tpu.memory_space<vmem>>, vector<1x128x32xf32>
    %18 = vector.shape_cast %17 : vector<1x128x32xf32> to vector<128x32xf32>
    %19 = vector.shape_cast %16 : vector<128x32xf32> to vector<1x128x32xf32>
    tpu.vector_store %arg17[%c1, %c16_14, %c0_15], %19 {strides = array<i32>} : memref<9x160x32xf32, #tpu.memory_space<vmem>>, vector<1x128x32xf32>,
    %20 = vector.extract_strided_slice %11 {offsets = [0, 64], sizes = [128, 32], strides = [1, 1]} : vector<128x288xf32> to vector<128x32xf32>
    %c2 = arith.constant 2 : index
    %c16_16 = arith.constant 16 : index
    %c0_17 = arith.constant 0 : index
    %21 = vector.load %arg17[%c2, %c16_16, %c0_17] : memref<9x160x32xf32, #tpu.memory_space<vmem>>, vector<1x128x32xf32>
    %22 = vector.shape_cast %21 : vector<1x128x32xf32> to vector<128x32xf32>
    %23 = vector.shape_cast %20 : vector<128x32xf32> to vector<1x128x32xf32>
    tpu.vector_store %arg17[%c2, %c16_16, %c0_17], %23 {strides = array<i32>} : memref<9x160x32xf32, #tpu.memory_space<vmem>>, vector<1x128x32xf32>,
    %24 = vector.extract_strided_slice %11 {offsets = [0, 96], sizes = [128, 32], strides = [1, 1]} : vector<128x288xf32> to vector<128x32xf32>
    %c3 = arith.constant 3 : index
    %c16_18 = arith.constant 16 : index
    %c0_19 = arith.constant 0 : index
    %25 = vector.load %arg17[%c3, %c16_18, %c0_19] : memref<9x160x32xf32, #tpu.memory_space<vmem>>, vector<1x128x32xf32>
    %26 = vector.shape_cast %25 : vector<1x128x32xf32> to vector<128x32xf32>
    %27 = vector.shape_cast %24 : vector<128x32xf32> to vector<1x128x32xf32>
    tpu.vector_store %arg17[%c3, %c16_18, %c0_19], %27 {strides = array<i32>} : memref<9x160x32xf32, #tpu.memory_space<vmem>>, vector<1x128x32xf32>,
    %28 = vector.extract_strided_slice %11 {offsets = [0, 160], sizes = [128, 32], strides = [1, 1]} : vector<128x288xf32> to vector<128x32xf32>
    %c5 = arith.constant 5 : index
    %c16_20 = arith.constant 16 : index
    %c0_21 = arith.constant 0 : index
    %29 = vector.load %arg17[%c5, %c16_20, %c0_21] : memref<9x160x32xf32, #tpu.memory_space<vmem>>, vector<1x128x32xf32>
    %30 = vector.shape_cast %29 : vector<1x128x32xf32> to vector<128x32xf32>
    %31 = vector.shape_cast %28 : vector<128x32xf32> to vector<1x128x32xf32>
    tpu.vector_store %arg17[%c5, %c16_20, %c0_21], %31 {strides = array<i32>} : memref<9x160x32xf32, #tpu.memory_space<vmem>>, vector<1x128x32xf32>,
    %32 = vector.extract_strided_slice %11 {offsets = [0, 192], sizes = [128, 32], strides = [1, 1]} : vector<128x288xf32> to vector<128x32xf32>
    %c6 = arith.constant 6 : index
    %c16_22 = arith.constant 16 : index
    %c0_23 = arith.constant 0 : index
    %33 = vector.load %arg17[%c6, %c16_22, %c0_23] : memref<9x160x32xf32, #tpu.memory_space<vmem>>, vector<1x128x32xf32>
    %34 = vector.shape_cast %33 : vector<1x128x32xf32> to vector<128x32xf32>
    %35 = vector.shape_cast %32 : vector<128x32xf32> to vector<1x128x32xf32>
    tpu.vector_store %arg17[%c6, %c16_22, %c0_23], %35 {strides = array<i32>} : memref<9x160x32xf32, #tpu.memory_space<vmem>>, vector<1x128x32xf32>,
    %36 = vector.extract_strided_slice %11 {offsets = [0, 224], sizes = [128, 32], strides = [1, 1]} : vector<128x288xf32> to vector<128x32xf32>
    %c7 = arith.constant 7 : index
    %c16_24 = arith.constant 16 : index
    %c0_25 = arith.constant 0 : index
    %37 = vector.load %arg17[%c7, %c16_24, %c0_25] : memref<9x160x32xf32, #tpu.memory_space<vmem>>, vector<1x128x32xf32>
    %38 = vector.shape_cast %37 : vector<1x128x32xf32> to vector<128x32xf32>
    %39 = vector.shape_cast %36 : vector<128x32xf32> to vector<1x128x32xf32>
    tpu.vector_store %arg17[%c7, %c16_24, %c0_25], %39 {strides = array<i32>} : memref<9x160x32xf32, #tpu.memory_space<vmem>>, vector<1x128x32xf32>,
    %40 = vector.extract_strided_slice %11 {offsets = [0, 256], sizes = [128, 32], strides = [1, 1]} : vector<128x288xf32> to vector<128x32xf32>
    %c8 = arith.constant 8 : index
    %c16_26 = arith.constant 16 : index
    %c0_27 = arith.constant 0 : index
    %41 = vector.load %arg17[%c8, %c16_26, %c0_27] : memref<9x160x32xf32, #tpu.memory_space<vmem>>, vector<1x128x32xf32>
    %42 = vector.shape_cast %41 : vector<1x128x32xf32> to vector<128x32xf32>
    %43 = vector.shape_cast %40 : vector<128x32xf32> to vector<1x128x32xf32>
    tpu.vector_store %arg17[%c8, %c16_26, %c0_27], %43 {strides = array<i32>} : memref<9x160x32xf32, #tpu.memory_space<vmem>>, vector<1x128x32xf32>,
    %c0_28 = arith.constant 0 : index
    %c0_29 = arith.constant 0 : index
    %44 = vector.load %arg6[%c0_28, %c0_29] : memref<1x32xf32, #tpu.memory_space<vmem>>, vector<1x32xf32>
    %45 = vector.extract_strided_slice %11 {offsets = [0, 128], sizes = [128, 32], strides = [1, 1]} : vector<128x288xf32> to vector<128x32xf32>
    %46 = vector.broadcast %44 : vector<1x32xf32> to vector<128x32xf32>
    %47 = arith.addf %46, %45 : vector<128x32xf32>
    %c0_30 = arith.constant 0 : index
    %c7_31 = arith.constant 7 : index
    %c0_32 = arith.constant 0 : index
    %48 = vector.load %arg17[%c0_30, %c7_31, %c0_32] : memref<9x160x32xf32, #tpu.memory_space<vmem>>, vector<1x128x32xf32>
    %49 = vector.shape_cast %48 : vector<1x128x32xf32> to vector<128x32xf32>
    %c0_33 = arith.constant 0 : index
    %c0_34 = arith.constant 0 : index
    %50 = vector.load %arg3[%c0_33, %c0_34] : memref<128x9xf32, #tpu.memory_space<vmem>>, vector<128x1xf32>
    %cst_35 = arith.constant 5.000000e-01 : f32
    %51 = vector.broadcast %cst_35 : f32 to vector<128x1xf32>
    %52 = arith.cmpf ogt, %50, %51 : vector<128x1xf32>
    %cst_36 = arith.constant 0.000000e+00 : f32
    %53 = vector.shape_cast %52 : vector<128x1xi1> to vector<128x1xi1>
    %54 = vector.broadcast %53 : vector<128x1xi1> to vector<128x32xi1>
    %55 = vector.broadcast %cst_36 : f32 to vector<128x32xf32>
    %56 = arith.select %54, %49, %55 : vector<128x32xi1>, vector<128x32xf32>
    %57 = arith.addf %47, %56 : vector<128x32xf32>
    %c1_37 = arith.constant 1 : index
    %c8_38 = arith.constant 8 : index
    %c0_39 = arith.constant 0 : index
    %58 = vector.load %arg17[%c1_37, %c8_38, %c0_39] : memref<9x160x32xf32, #tpu.memory_space<vmem>>, vector<1x128x32xf32>
    %59 = vector.shape_cast %58 : vector<1x128x32xf32> to vector<128x32xf32>
    %c0_40 = arith.constant 0 : index
    %c1_41 = arith.constant 1 : index
    %60 = vector.load %arg3[%c0_40, %c1_41] : memref<128x9xf32, #tpu.memory_space<vmem>>, vector<128x1xf32>
    %cst_42 = arith.constant 5.000000e-01 : f32
    %61 = vector.broadcast %cst_42 : f32 to vector<128x1xf32>
    %62 = arith.cmpf ogt, %60, %61 : vector<128x1xf32>
    %cst_43 = arith.constant 0.000000e+00 : f32
    %63 = vector.shape_cast %62 : vector<128x1xi1> to vector<128x1xi1>
    %64 = vector.broadcast %63 : vector<128x1xi1> to vector<128x32xi1>
    %65 = vector.broadcast %cst_43 : f32 to vector<128x32xf32>
    %66 = arith.select %64, %59, %65 : vector<128x32xi1>, vector<128x32xf32>
    %67 = arith.addf %57, %66 : vector<128x32xf32>
    %c2_44 = arith.constant 2 : index
    %c9 = arith.constant 9 : index
    %c0_45 = arith.constant 0 : index
    %68 = vector.load %arg17[%c2_44, %c9, %c0_45] : memref<9x160x32xf32, #tpu.memory_space<vmem>>, vector<1x128x32xf32>
    %69 = vector.shape_cast %68 : vector<1x128x32xf32> to vector<128x32xf32>
    %c0_46 = arith.constant 0 : index
    %c2_47 = arith.constant 2 : index
    %70 = vector.load %arg3[%c0_46, %c2_47] : memref<128x9xf32, #tpu.memory_space<vmem>>, vector<128x1xf32>
    %cst_48 = arith.constant 5.000000e-01 : f32
    %71 = vector.broadcast %cst_48 : f32 to vector<128x1xf32>
    %72 = arith.cmpf ogt, %70, %71 : vector<128x1xf32>
    %cst_49 = arith.constant 0.000000e+00 : f32
    %73 = vector.shape_cast %72 : vector<128x1xi1> to vector<128x1xi1>
    %74 = vector.broadcast %73 : vector<128x1xi1> to vector<128x32xi1>
    %75 = vector.broadcast %cst_49 : f32 to vector<128x32xf32>
    %76 = arith.select %74, %69, %75 : vector<128x32xi1>, vector<128x32xf32>
    %77 = arith.addf %67, %76 : vector<128x32xf32>
    %c3_50 = arith.constant 3 : index
    %c15 = arith.constant 15 : index
    %c0_51 = arith.constant 0 : index
    %78 = vector.load %arg17[%c3_50, %c15, %c0_51] : memref<9x160x32xf32, #tpu.memory_space<vmem>>, vector<1x128x32xf32>
    %79 = vector.shape_cast %78 : vector<1x128x32xf32> to vector<128x32xf32>
    %c0_52 = arith.constant 0 : index
    %c3_53 = arith.constant 3 : index
    %80 = vector.load %arg3[%c0_52, %c3_53] : memref<128x9xf32, #tpu.memory_space<vmem>>, vector<128x1xf32>
    %cst_54 = arith.constant 5.000000e-01 : f32
    %81 = vector.broadcast %cst_54 : f32 to vector<128x1xf32>
    %82 = arith.cmpf ogt, %80, %81 : vector<128x1xf32>
    %cst_55 = arith.constant 0.000000e+00 : f32
    %83 = vector.shape_cast %82 : vector<128x1xi1> to vector<128x1xi1>
    %84 = vector.broadcast %83 : vector<128x1xi1> to vector<128x32xi1>
    %85 = vector.broadcast %cst_55 : f32 to vector<128x32xf32>
    %86 = arith.select %84, %79, %85 : vector<128x32xi1>, vector<128x32xf32>
    %87 = arith.addf %77, %86 : vector<128x32xf32>
    %c5_56 = arith.constant 5 : index
    %c17 = arith.constant 17 : index
    %c0_57 = arith.constant 0 : index
    %88 = vector.load %arg17[%c5_56, %c17, %c0_57] : memref<9x160x32xf32, #tpu.memory_space<vmem>>, vector<1x128x32xf32>
    %89 = vector.shape_cast %88 : vector<1x128x32xf32> to vector<128x32xf32>
    %c0_58 = arith.constant 0 : index
    %c5_59 = arith.constant 5 : index
    %90 = vector.load %arg3[%c0_58, %c5_59] : memref<128x9xf32, #tpu.memory_space<vmem>>, vector<128x1xf32>
    %cst_60 = arith.constant 5.000000e-01 : f32
    %91 = vector.broadcast %cst_60 : f32 to vector<128x1xf32>
    %92 = arith.cmpf ogt, %90, %91 : vector<128x1xf32>
    %cst_61 = arith.constant 0.000000e+00 : f32
    %93 = vector.shape_cast %92 : vector<128x1xi1> to vector<128x1xi1>
    %94 = vector.broadcast %93 : vector<128x1xi1> to vector<128x32xi1>
    %95 = vector.broadcast %cst_61 : f32 to vector<128x32xf32>
    %96 = arith.select %94, %89, %95 : vector<128x32xi1>, vector<128x32xf32>
    %97 = arith.addf %87, %96 : vector<128x32xf32>
    %c6_62 = arith.constant 6 : index
    %c23 = arith.constant 23 : index
    %c0_63 = arith.constant 0 : index
    %98 = vector.load %arg17[%c6_62, %c23, %c0_63] : memref<9x160x32xf32, #tpu.memory_space<vmem>>, vector<1x128x32xf32>
    %99 = vector.shape_cast %98 : vector<1x128x32xf32> to vector<128x32xf32>
    %c0_64 = arith.constant 0 : index
    %c6_65 = arith.constant 6 : index
    %100 = vector.load %arg3[%c0_64, %c6_65] : memref<128x9xf32, #tpu.memory_space<vmem>>, vector<128x1xf32>
    %cst_66 = arith.constant 5.000000e-01 : f32
    %101 = vector.broadcast %cst_66 : f32 to vector<128x1xf32>
    %102 = arith.cmpf ogt, %100, %101 : vector<128x1xf32>
    %cst_67 = arith.constant 0.000000e+00 : f32
    %103 = vector.shape_cast %102 : vector<128x1xi1> to vector<128x1xi1>
    %104 = vector.broadcast %103 : vector<128x1xi1> to vector<128x32xi1>
    %105 = vector.broadcast %cst_67 : f32 to vector<128x32xf32>
    %106 = arith.select %104, %99, %105 : vector<128x32xi1>, vector<128x32xf32>
    %107 = arith.addf %97, %106 : vector<128x32xf32>
    %c7_68 = arith.constant 7 : index
    %c24 = arith.constant 24 : index
    %c0_69 = arith.constant 0 : index
    %108 = vector.load %arg17[%c7_68, %c24, %c0_69] : memref<9x160x32xf32, #tpu.memory_space<vmem>>, vector<1x128x32xf32>
    %109 = vector.shape_cast %108 : vector<1x128x32xf32> to vector<128x32xf32>
    %c0_70 = arith.constant 0 : index
    %c7_71 = arith.constant 7 : index
    %110 = vector.load %arg3[%c0_70, %c7_71] : memref<128x9xf32, #tpu.memory_space<vmem>>, vector<128x1xf32>
    %cst_72 = arith.constant 5.000000e-01 : f32
    %111 = vector.broadcast %cst_72 : f32 to vector<128x1xf32>
    %112 = arith.cmpf ogt, %110, %111 : vector<128x1xf32>
    %cst_73 = arith.constant 0.000000e+00 : f32
    %113 = vector.shape_cast %112 : vector<128x1xi1> to vector<128x1xi1>
    %114 = vector.broadcast %113 : vector<128x1xi1> to vector<128x32xi1>
    %115 = vector.broadcast %cst_73 : f32 to vector<128x32xf32>
    %116 = arith.select %114, %109, %115 : vector<128x32xi1>, vector<128x32xf32>
    %117 = arith.addf %107, %116 : vector<128x32xf32>
    %c8_74 = arith.constant 8 : index
    %c25 = arith.constant 25 : index
    %c0_75 = arith.constant 0 : index
    %118 = vector.load %arg17[%c8_74, %c25, %c0_75] : memref<9x160x32xf32, #tpu.memory_space<vmem>>, vector<1x128x32xf32>
    %119 = vector.shape_cast %118 : vector<1x128x32xf32> to vector<128x32xf32>
    %c0_76 = arith.constant 0 : index
    %c8_77 = arith.constant 8 : index
    %120 = vector.load %arg3[%c0_76, %c8_77] : memref<128x9xf32, #tpu.memory_space<vmem>>, vector<128x1xf32>
    %cst_78 = arith.constant 5.000000e-01 : f32
    %121 = vector.broadcast %cst_78 : f32 to vector<128x1xf32>
    %122 = arith.cmpf ogt, %120, %121 : vector<128x1xf32>
    %cst_79 = arith.constant 0.000000e+00 : f32
    %123 = vector.shape_cast %122 : vector<128x1xi1> to vector<128x1xi1>
    %124 = vector.broadcast %123 : vector<128x1xi1> to vector<128x32xi1>
    %125 = vector.broadcast %cst_79 : f32 to vector<128x32xf32>
    %126 = arith.select %124, %119, %125 : vector<128x32xi1>, vector<128x32xf32>
    %127 = arith.addf %117, %126 : vector<128x32xf32>
    %128 = vector.extract_strided_slice %127 {offsets = [0, 0], sizes = [128, 8], strides = [1, 1]} : vector<128x32xf32> to vector<128x8xf32>
    %129 = vector.extract_strided_slice %127 {offsets = [0, 8], sizes = [128, 8], strides = [1, 1]} : vector<128x32xf32> to vector<128x8xf32>
    %130 = vector.extract_strided_slice %127 {offsets = [0, 16], sizes = [128, 8], strides = [1, 1]} : vector<128x32xf32> to vector<128x8xf32>
    %131 = vector.extract_strided_slice %127 {offsets = [0, 24], sizes = [128, 8], strides = [1, 1]} : vector<128x32xf32> to vector<128x8xf32>
    %c0_80 = arith.constant 0 : index
    %c0_81 = arith.constant 0 : index
    %c0_82 = arith.constant 0 : index
    %132 = vector.load %arg7[%c0_80, %c0_81, %c0_82] : memref<3x128x8xf32, #tpu.memory_space<vmem>>, vector<1x128x8xf32>
    %133 = vector.shape_cast %132 : vector<1x128x8xf32> to vector<128x8xf32>
    %134 = arith.mulf %133, %6 : vector<128x8xf32>
    %135 = arith.addf %128, %134 : vector<128x8xf32>
    %136 = arith.negf %135 : vector<128x8xf32>
    %137 = math.exp %136 : vector<128x8xf32>
    %cst_83 = arith.constant 1.000000e+00 : f32
    %138 = vector.broadcast %cst_83 : f32 to vector<128x8xf32>
    %139 = arith.addf %138, %137 : vector<128x8xf32>
    %140 = arith.divf %138, %139 : vector<128x8xf32>
    %c1_84 = arith.constant 1 : index
    %c0_85 = arith.constant 0 : index
    %c0_86 = arith.constant 0 : index
    %141 = vector.load %arg7[%c1_84, %c0_85, %c0_86] : memref<3x128x8xf32, #tpu.memory_space<vmem>>, vector<1x128x8xf32>
    %142 = vector.shape_cast %141 : vector<1x128x8xf32> to vector<128x8xf32>
    %143 = arith.mulf %142, %6 : vector<128x8xf32>
    %144 = arith.addf %129, %143 : vector<128x8xf32>
    %145 = arith.negf %144 : vector<128x8xf32>
    %146 = math.exp %145 : vector<128x8xf32>
    %cst_87 = arith.constant 1.000000e+00 : f32
    %147 = vector.broadcast %cst_87 : f32 to vector<128x8xf32>
    %148 = arith.addf %147, %146 : vector<128x8xf32>
    %149 = arith.divf %147, %148 : vector<128x8xf32>
    %150 = arith.mulf %149, %6 : vector<128x8xf32>
    %151 = math.tanh %130 : vector<128x8xf32>
    %152 = arith.mulf %140, %151 : vector<128x8xf32>
    %153 = arith.addf %150, %152 : vector<128x8xf32>
    %c2_88 = arith.constant 2 : index
    %c0_89 = arith.constant 0 : index
    %c0_90 = arith.constant 0 : index
    %154 = vector.load %arg7[%c2_88, %c0_89, %c0_90] : memref<3x128x8xf32, #tpu.memory_space<vmem>>, vector<1x128x8xf32>
    %155 = vector.shape_cast %154 : vector<1x128x8xf32> to vector<128x8xf32>
    %156 = arith.mulf %155, %153 : vector<128x8xf32>
    %157 = arith.addf %131, %156 : vector<128x8xf32>
    %158 = arith.negf %157 : vector<128x8xf32>
    %159 = math.exp %158 : vector<128x8xf32>
    %cst_91 = arith.constant 1.000000e+00 : f32
    %160 = vector.broadcast %cst_91 : f32 to vector<128x8xf32>
    %161 = arith.addf %160, %159 : vector<128x8xf32>
    %162 = arith.divf %160, %161 : vector<128x8xf32>
    %163 = math.tanh %153 : vector<128x8xf32>
    %164 = arith.mulf %162, %163 : vector<128x8xf32>
    %c0_92 = arith.constant 0 : index
    %c0_93 = arith.constant 0 : index
    %165 = vector.load %arg8[%c0_92, %c0_93] : memref<8x4xf32, #tpu.memory_space<vmem>>, vector<8x4xf32>
    %cst_94 = arith.constant dense<0.000000e+00> : vector<128x4xf32>
    %166 = tpu.matmul %164, %165, %cst_94 {dimension_numbers = #tpu.dot_dimension_numbers<[1], [0], [0], [1], [0, 0, 1, 1], [], []>} : vector<128x8xf32>, vector<8x4xf32>, vector<128x4xf32> -> vector<128x4xf32>
    %c0_95 = arith.constant 0 : index
    %c0_96 = arith.constant 0 : index
    %167 = vector.load %arg9[%c0_95, %c0_96] : memref<1x4xf32, #tpu.memory_space<vmem>>, vector<1x4xf32>
    %168 = vector.broadcast %167 : vector<1x4xf32> to vector<128x4xf32>
    %169 = arith.addf %166, %168 : vector<128x4xf32>
    %c0_97 = arith.constant 0 : index
    %c0_98 = arith.constant 0 : index
    %170 = vector.load %arg10[%c0_97, %c0_98] : memref<8x4xf32, #tpu.memory_space<vmem>>, vector<8x4xf32>
    %cst_99 = arith.constant dense<0.000000e+00> : vector<128x4xf32>
    %171 = tpu.matmul %164, %170, %cst_99 {dimension_numbers = #tpu.dot_dimension_numbers<[1], [0], [0], [1], [0, 0, 1, 1], [], []>} : vector<128x8xf32>, vector<8x4xf32>, vector<128x4xf32> -> vector<128x4xf32>
    %c0_100 = arith.constant 0 : index
    %c0_101 = arith.constant 0 : index
    %172 = vector.load %arg11[%c0_100, %c0_101] : memref<1x4xf32, #tpu.memory_space<vmem>>, vector<1x4xf32>
    %173 = vector.broadcast %172 : vector<1x4xf32> to vector<128x4xf32>
    %174 = arith.addf %171, %173 : vector<128x4xf32>
    %c0_102 = arith.constant 0 : index
    %c0_103 = arith.constant 0 : index
    %175 = vector.load %arg12[%c0_102, %c0_103] : memref<8x8xf32, #tpu.memory_space<vmem>>, vector<8x8xf32>
    %cst_104 = arith.constant dense<0.000000e+00> : vector<128x8xf32>
    %176 = tpu.matmul %164, %175, %cst_104 {dimension_numbers = #tpu.dot_dimension_numbers<[1], [0], [0], [1], [0, 0, 1, 1], [], []>} : vector<128x8xf32>, vector<8x8xf32>, vector<128x8xf32> -> vector<128x8xf32>
    %177 = vector.shape_cast %169 : vector<128x4xf32> to vector<2x64x4xf32>
    %178 = vector.shape_cast %174 : vector<128x4xf32> to vector<2x64x4xf32>
    %179 = vector.shape_cast %176 : vector<128x8xf32> to vector<2x64x8xf32>
    "tpu.trace_start"() <{level = 10 : i32, message = "bpa,bqa->bpq"}> : () -> ()
    %cst_105 = arith.constant dense<0.000000e+00> : vector<2x64x64xf32>
    %180 = tpu.matmul %177, %178, %cst_105 {dimension_numbers = #tpu.dot_dimension_numbers<[2], [2], [1], [1], [0, 0, 0, 1, 1, 1], [0], [0]>} : vector<2x64x4xf32>, vector<2x64x4xf32>, vector<2x64x64xf32> -> vector<2x64x64xf32>
    "tpu.trace_stop"() : () -> ()
    %cst_106 = arith.constant dense<0xFF800000> : vector<2x64xf32>
    %181 = vector.multi_reduction <maximumf>, %180, %cst_106 [2] : vector<2x64x64xf32> to vector<2x64xf32>
    %182 = vector.shape_cast %181 : vector<2x64xf32> to vector<2x64x1xf32>
    %183 = vector.broadcast %182 : vector<2x64x1xf32> to vector<2x64x64xf32>
    %184 = arith.subf %180, %183 : vector<2x64x64xf32>
    %185 = math.exp %184 : vector<2x64x64xf32>
    %cst_107 = arith.constant dense<0.000000e+00> : vector<2x64xf32>
    %186 = vector.multi_reduction <add>, %185, %cst_107 [2] : vector<2x64x64xf32> to vector<2x64xf32>
    %187 = vector.shape_cast %186 : vector<2x64xf32> to vector<2x64x1xf32>
    %188 = vector.broadcast %187 : vector<2x64x1xf32> to vector<2x64x64xf32>
    %189 = arith.divf %185, %188 : vector<2x64x64xf32>
    "tpu.trace_start"() <{level = 10 : i32, message = "bpq,bqd->bpd"}> : () -> ()
    %cst_108 = arith.constant dense<0.000000e+00> : vector<2x64x8xf32>
    %190 = tpu.matmul %189, %179, %cst_108 {dimension_numbers = #tpu.dot_dimension_numbers<[2], [1], [1], [2], [0, 0, 0, 1, 1, 2], [0], [0]>} : vector<2x64x64xf32>, vector<2x64x8xf32>, vector<2x64x8xf32> -> vector<2x64x8xf32>
    "tpu.trace_stop"() : () -> ()
    %191 = vector.shape_cast %190 : vector<2x64x8xf32> to vector<128x8xf32>
    %c0_109 = arith.constant 0 : index
    %c0_110 = arith.constant 0 : index
    %192 = vector.load %arg13[%c0_109, %c0_110] : memref<8x8xf32, #tpu.memory_space<vmem>>, vector<8x8xf32>
    %cst_111 = arith.constant dense<0.000000e+00> : vector<128x8xf32>
    %193 = tpu.matmul %164, %192, %cst_111 {dimension_numbers = #tpu.dot_dimension_numbers<[1], [0], [0], [1], [0, 0, 1, 1], [], []>} : vector<128x8xf32>, vector<8x8xf32>, vector<128x8xf32> -> vector<128x8xf32>
    %194 = arith.addf %191, %193 : vector<128x8xf32>
    %c0_112 = arith.constant 0 : index
    %c0_113 = arith.constant 0 : index
    %195 = vector.load %arg14[%c0_112, %c0_113] : memref<1x8xf32, #tpu.memory_space<vmem>>, vector<1x8xf32>
    %196 = vector.broadcast %195 : vector<1x8xf32> to vector<128x8xf32>
    %197 = arith.addf %194, %196 : vector<128x8xf32>
    %c0_114 = arith.constant 0 : index
    %c0_115 = arith.constant 0 : index
    %198 = vector.load %arg18[%c0_114, %c0_115] : memref<128x8xf32, #tpu.memory_space<vmem>>, vector<128x8xf32>
    tpu.vector_store %arg18[%c0_114, %c0_115], %197 {strides = array<i32>} : memref<128x8xf32, #tpu.memory_space<vmem>>, vector<128x8xf32>,
    %c0_116 = arith.constant 0 : index
    %c0_117 = arith.constant 0 : index
    %199 = vector.load %arg19[%c0_116, %c0_117] : memref<128x8xf32, #tpu.memory_space<vmem>>, vector<128x8xf32>
    tpu.vector_store %arg19[%c0_116, %c0_117], %153 {strides = array<i32>} : memref<128x8xf32, #tpu.memory_space<vmem>>, vector<128x8xf32>,
    %c0_118 = arith.constant 0 : index
    %c0_119 = arith.constant 0 : index
    %c0_120 = arith.constant 0 : index
    %200 = vector.load %arg15[%c0_118, %c0_119, %c0_120] : memref<1x128x8xf32, #tpu.memory_space<vmem>>, vector<1x128x8xf32>
    %201 = vector.shape_cast %200 : vector<1x128x8xf32> to vector<128x8xf32>
    %202 = vector.shape_cast %197 : vector<128x8xf32> to vector<1x128x8xf32>
    tpu.vector_store %arg15[%c0_118, %c0_119, %c0_120], %202 {strides = array<i32>} : memref<1x128x8xf32, #tpu.memory_space<vmem>>, vector<1x128x8xf32>,
    %203 = vector.extract_strided_slice %189 {offsets = [0, 2, 0], sizes = [2, 1, 64], strides = [1, 1, 1]} : vector<2x64x64xf32> to vector<2x1x64xf32>
    %c0_121 = arith.constant 0 : index
    %c0_122 = arith.constant 0 : index
    %c0_123 = arith.constant 0 : index
    %c0_124 = arith.constant 0 : index
    %204 = vector.load %arg16[%c0_121, %c0_122, %c0_123, %c0_124] : memref<1x2x1x64xf32, #tpu.memory_space<vmem>>, vector<1x2x1x64xf32>
    %205 = vector.shape_cast %204 : vector<1x2x1x64xf32> to vector<2x1x64xf32>
    %206 = vector.shape_cast %203 : vector<2x1x64xf32> to vector<1x2x1x64xf32>
    tpu.vector_store %arg16[%c0_121, %c0_122, %c0_123, %c0_124], %206 {strides = array<i32>} : memref<1x2x1x64xf32, #tpu.memory_space<vmem>>, vector<1x2x1x64xf32>,
    return
  }
  func.func @transform_0(%arg0: i32, %arg1: i32) -> (i32, i32, i32) {
    %c0_i32 = arith.constant 0 : i32
    %c0_i32_0 = arith.constant 0 : i32
    return %arg1, %arg0, %c0_i32 : i32, i32, i32
  }
  func.func @transform_1(%arg0: i32, %arg1: i32) -> (i32, i32) {
    %c0_i32 = arith.constant 0 : i32
    %c0_i32_0 = arith.constant 0 : i32
    %c0_i32_1 = arith.constant 0 : i32
    return %c0_i32, %c0_i32_0 : i32, i32
  }
  func.func @transform_2(%arg0: i32, %arg1: i32) -> (i32, i32) {
    %c0_i32 = arith.constant 0 : i32
    %c0_i32_0 = arith.constant 0 : i32
    %c0_i32_1 = arith.constant 0 : i32
    return %c0_i32, %c0_i32_0 : i32, i32
  }
  func.func @transform_3(%arg0: i32, %arg1: i32) -> (i32, i32) {
    %c0_i32 = arith.constant 0 : i32
    %c0_i32_0 = arith.constant 0 : i32
    %c0_i32_1 = arith.constant 0 : i32
    return %c0_i32, %c0_i32_0 : i32, i32
  }
  func.func @transform_4(%arg0: i32, %arg1: i32) -> (i32, i32) {
    %c0_i32 = arith.constant 0 : i32
    %c0_i32_0 = arith.constant 0 : i32
    %c0_i32_1 = arith.constant 0 : i32
    return %c0_i32, %c0_i32_0 : i32, i32
  }
  func.func @transform_5(%arg0: i32, %arg1: i32) -> (i32, i32, i32) {
    %c0_i32 = arith.constant 0 : i32
    %c0_i32_0 = arith.constant 0 : i32
    %c0_i32_1 = arith.constant 0 : i32
    %c0_i32_2 = arith.constant 0 : i32
    return %c0_i32, %c0_i32_0, %c0_i32_1 : i32, i32, i32
  }
  func.func @transform_6(%arg0: i32, %arg1: i32) -> (i32, i32) {
    %c0_i32 = arith.constant 0 : i32
    %c0_i32_0 = arith.constant 0 : i32
    %c0_i32_1 = arith.constant 0 : i32
    return %c0_i32, %c0_i32_0 : i32, i32
  }
  func.func @transform_7(%arg0: i32, %arg1: i32) -> (i32, i32) {
    %c0_i32 = arith.constant 0 : i32
    %c0_i32_0 = arith.constant 0 : i32
    %c0_i32_1 = arith.constant 0 : i32
    return %c0_i32, %c0_i32_0 : i32, i32
  }
  func.func @transform_8(%arg0: i32, %arg1: i32) -> (i32, i32) {
    %c0_i32 = arith.constant 0 : i32
    %c0_i32_0 = arith.constant 0 : i32
    %c0_i32_1 = arith.constant 0 : i32
    return %c0_i32, %c0_i32_0 : i32, i32
  }
  func.func @transform_9(%arg0: i32, %arg1: i32) -> (i32, i32) {
    %c0_i32 = arith.constant 0 : i32
    %c0_i32_0 = arith.constant 0 : i32
    %c0_i32_1 = arith.constant 0 : i32
    return %c0_i32, %c0_i32_0 : i32, i32
  }
  func.func @transform_10(%arg0: i32, %arg1: i32) -> (i32, i32) {
    %c0_i32 = arith.constant 0 : i32
    %c0_i32_0 = arith.constant 0 : i32
    %c0_i32_1 = arith.constant 0 : i32
    return %c0_i32, %c0_i32_0 : i32, i32
  }
  func.func @transform_11(%arg0: i32, %arg1: i32) -> (i32, i32) {
    %c0_i32 = arith.constant 0 : i32
    %c0_i32_0 = arith.constant 0 : i32
    %c0_i32_1 = arith.constant 0 : i32
    return %c0_i32, %c0_i32_0 : i32, i32
  }
  func.func @transform_12(%arg0: i32, %arg1: i32) -> (i32, i32) {
    %c0_i32 = arith.constant 0 : i32
    %c0_i32_0 = arith.constant 0 : i32
    %c0_i32_1 = arith.constant 0 : i32
    return %c0_i32, %c0_i32_0 : i32, i32
  }
  func.func @transform_13(%arg0: i32, %arg1: i32) -> (i32, i32, i32) {
    %c0_i32 = arith.constant 0 : i32
    %c0_i32_0 = arith.constant 0 : i32
    return %arg1, %arg0, %c0_i32 : i32, i32, i32
  }
  func.func @transform_14(%arg0: i32, %arg1: i32) -> (i32, i32, i32, i32) {
    %c0_i32 = arith.constant 0 : i32
    %c0_i32_0 = arith.constant 0 : i32
    %c0_i32_1 = arith.constant 0 : i32
    return %arg1, %arg0, %c0_i32, %c0_i32_0 : i32, i32, i32, i32
  }
}

</mosaic_0001>

<bundles_post_ra>
// kernel: tpu_custom_call.1
= control target key start
LH: loop header
LB: loop body
LE: loop exit
PB: predicated region body
PF: predicated region fallthrough
CT: control target
= control target key end

     0   :  { %s10148_s0 = inlined_call_operand.vmem [shape: f32[4,256,4], index: 0, kind: input, shape index: {}]   ;;  %s10149_s1 = inlined_call_operand.vmem [shape: f32[128,9], index: 1, kind: input, shape index: {}]   ;;  %s10150_s2 = inlined_call_operand.vmem [shape: f32[4,288], index: 2, kind: input, shape index: {}]   ;;  %s10151_s3 = inlined_call_operand.vmem [shape: f32[8,288], index: 3, kind: input, shape index: {}]   ;;  %s10152_s4 = inlined_call_operand.vmem [shape: f32[1,32], index: 4, kind: input, shape index: {}]   ;;  %s10153_s5 = inlined_call_operand.vmem [shape: f32[3,128,8], index: 5, kind: input, shape index: {}]   ;;  %s10154_s6 = inlined_call_operand.vmem [shape: f32[8,4], index: 6, kind: input, shape index: {}]   ;;  %s10155_s7 = inlined_call_operand.vmem [shape: f32[1,4], index: 7, kind: input, shape index: {}]   ;;  %s10156_s8 = inlined_call_operand.vmem [shape: f32[8,4], index: 8, kind: input, shape index: {}]   ;;  %s10157_s9 = inlined_call_operand.vmem [shape: f32[1,4], index: 9, kind: input, shape index: {}]   ;;  %s10158_s10 = inlined_call_operand.vmem [shape: f32[8,8], index: 10, kind: input, shape index: {}]   ;;  %s10159_s11 = inlined_call_operand.vmem [shape: f32[8,8], index: 11, kind: input, shape index: {}]   ;;  %s10160_s12 = inlined_call_operand.vmem [shape: f32[1,8], index: 12, kind: input, shape index: {}]   ;;  %s10161_s13 = inlined_call_operand.vmem [shape: f32[4,256,8], index: 13, kind: output, shape index: {0}]   ;;  %s10162_s14 = inlined_call_operand.hbm [shape: f32[4,4,1,64], index: 14, kind: output, shape index: {1}]  }
   0x1   :  { %10232 = sst [smem:[#allocation70_spill]] %s10148_s0 }
   0x2   :  { %10233 = sst [smem:[#allocation71_spill]] %s10160_s12 }
   0x3   :  { %10234 = sst [smem:[#allocation72_spill]] %s10162_s14 }
   0x4   :  { %20 = vsyncpa [#allocation6], 0 }
   0x5   :  { %22 = vsyncpa [#allocation6 + $0x1], 0  ;;  %s7119_s29 = smov 0   ;;  %s7121_s30 = smov 0  }
   0x6   :  { %s7123_s15 = smov 0   ;;  %s7125_s16 = smov 0  }
   0x7   :  { %s7127_s17 = smov 0   ;;  %s7129_s18 = smov 0  }
   0x8   :  { %s7131_s19 = smov 0   ;;  %s7133_s20 = smov 0  }
   0x9 LB: > { %10235 = sst [smem:[#allocation8_spill]] %s6993_s29  ;;  %s5570_s21 = sadd.s32 4294967295, %s7021_s20   ;;  %s7021_s20 = sphi %s7133_s20, %s28_s20   ;;  %s7017_s19 = sphi %s7131_s19, %s10511_s19   ;;  %s7013_s18 = sphi %s7129_s18, %s10510_s18   ;;  %s7009_s17 = sphi %s7127_s17, %s10509_s17   ;;  %s7005_s16 = sphi %s7125_s16, %s10508_s16   ;;  %s7001_s15 = sphi %s7123_s15, %s10507_s15   ;;  %s6997_s30 = sphi %s7121_s30, %s10513_s30   ;;  %s6993_s29 = sphi %s7119_s29, %s10512_s29  }
   0xa   : > { %10236 = sst [smem:[#allocation9_spill]] %s7001_s15  ;;  %s5571_s22 = sadd.s32 4294967294, %s7021_s20  }
   0xb   : > { %10237 = sst [smem:[#allocation10_spill]] %s7013_s18  ;;  %s37_s23 = sadd.s32 1, %s7013_s18 }
   0xc   : > { %10238 = sst [smem:[#allocation11_spill]] %s7017_s19  ;;  %p38_p0 = scmp.ge.s32.totalorder %s37_s23, 4 }
   0xd   : > { %10239 = sst [smem:[#allocation12_spill]] %s7021_s20  ;;  %s40_s24 = sadd.s32 1, %s7017_s19 }
   0xe   : > { %p367_p1 = scmp.ne.s32.totalorder %s7001_s15, %s6997_s30  ;;  %p368_p2 = scmp.eq.s32.totalorder %s5570_s21, 7 }
   0xf   : > { %s10515_s23 = smov (%p38_p0, %s37_s23), 0  ;;  %s10517_s24 = smov (!%p38_p0, %s40_s24), %s7017_s19 }
  0x10   : > { %10240 = sst [smem:[#allocation13_spill]] %s10515_s23  ;;  %s352_s25 = ssub.s32 %s7013_s18, %s10515_s23 }
  0x11   : > { %p7170_p3 = por %p368_p2, %p367_p1  ;;  %p42_p4 = scmp.ge.s32.totalorder %s10517_s24, 2 }
  0x12   : > { %p373_p5 = scmp.ne.s32.totalorder %s6997_s30, %s6993_s29  ;;  %p374_p6 = scmp.eq.s32.totalorder %s5571_s22, 7 }
  0x13   : > { %p5574_p7 = scmp.ge.s32.totalorder %s7021_s20, 1  ;;  %s10519_s24 = smov (%p42_p4, %s10517_s24), 0 }
  0x14   : > { %10242 = sst [smem:[#allocation14_spill]] %s10519_s24  ;;  %p7179_p8 = por %p374_p6, %p373_p5 }
  0x15   : > { %p441_p9 = scmp.lt.s32.totalorder %s7021_s20, 9  ;;  %s353_s28 = ssub.s32 %s7017_s19, %s10519_s24 }
  0x16   : > { %s10243_s27 = scalar_select %p7179_p8, 1, 0 }
  0x17   : > { %s357_s21 = sadd.s32 1, %s7001_s15  ;;  %s354_s12 = sor.u32 %s353_s28, %s352_s25 }
  0x18   : > { %10244 = sst [smem:[#allocation15_spill]] %s10243_s27  ;;  %p442_p10 = pnand %p5574_p7, %p441_p9 }
  0x19   : > { %p355_p11 = scmp.eq.s32.totalorder %s354_s12, 0 }
  0x1a   : > { %445 = sbr.rel (%p442_p10) target bundleno = 2580 (0xa14), region = 72 }
  0x1b   : > { %s7188_s23 = scalar_select %p355_p11, %s7001_s15, %s357_s21  }
  0x1d   : > { %10245 = sst [smem:[#allocation16_spill]] %s7188_s23 }
  0x21   : > { %s497_s22 = sand.u32 1, %s6997_s30   ;;  %s5576_s18 = sshll.u32 %s7009_s17, 4 }
  0x22   : > { %s5575_s29 = sshll.u32 %s497_s22, 1  ;;  %p501_p12 = scmp.lt.s32.totalorder %s7005_s16, 3 }
  0x23   : > { %p503_p13 = scmp.lt.s32.totalorder %s5576_s18, 31  ;;  %s10246_s0 = sld [smem:[#allocation70_spill]] }
  0x24   : > { %s502_s27 = scalar_select %p501_p12, %s7005_s16, 3 }
  0x25   : > { %s10521_s18 = smov (!%p503_p13, %s5576_s18), 31  ;;  %s7206_s14 = scalar_lea.vmem [#allocation5], %s5575_s29 }
  0x26   : > { %s5577_s24 = sshll.u32 %s502_s27, 5  ;;  %p5582_p0 = scmp.ne.s32.totalorder %s7005_s16, 0 }
  0x27   : > { %s506_s25 = sadd.s32 %s5577_s24, %s10521_s18  ;;  %vm525_vm0 = vcmask (!%p5582_p0), 64512   ;;  %vm558_vm1 = vcmask (!%p5582_p0), 261120   ;;  %v7023_v0 = vmov (!%p5582_p0), 0.0  }
  0x28   : > { %s5578_s28 = sshll.u32 %s506_s25, 3  ;;  %524 = sbr.rel (%p5582_p0) target bundleno = 123 (0x7b), region = 76  ;;  %526 = vst.msk [vmem:[#allocation3] sm:$0xff] (!%p5582_p0), %vm525_vm0, %v7023_v0  ;;  %527 = vst.msk [vmem:[#allocation3 + $0x8] sm:$0xff] (!%p5582_p0), %vm525_vm0, %v7023_v0 }
  0x29   : > { %s7199_s19 = scalar_lea.vmem %s10246_s0, %s5578_s28  ;;  %s7204_s20 = scalar_lea.vmem %s10161_s13, %s5578_s28  ;;  %528 = vst.msk [vmem:[#allocation3 + $0x10] sm:$0xff] (!%p5582_p0), %vm525_vm0, %v7023_v0  ;;  %529 = vst.msk [vmem:[#allocation3 + $0x18] sm:$0xff] (!%p5582_p0), %vm525_vm0, %v7023_v0 }
  0x2a   : > { %530 = vst.msk [vmem:[#allocation3 + $0x20] sm:$0xff] (!%p5582_p0), %vm525_vm0, %v7023_v0  ;;  %531 = vst.msk [vmem:[#allocation3 + $0x28] sm:$0xff] (!%p5582_p0), %vm525_vm0, %v7023_v0 }
  0x2b   : > { %532 = vst.msk [vmem:[#allocation3 + $0x30] sm:$0xff] (!%p5582_p0), %vm525_vm0, %v7023_v0  ;;  %533 = vst.msk [vmem:[#allocation3 + $0x38] sm:$0xff] (!%p5582_p0), %vm525_vm0, %v7023_v0 }
  0x2c   : > { %534 = vst.msk [vmem:[#allocation3 + $0x40] sm:$0xff] (!%p5582_p0), %vm525_vm0, %v7023_v0  ;;  %535 = vst.msk [vmem:[#allocation3 + $0x48] sm:$0xff] (!%p5582_p0), %vm525_vm0, %v7023_v0 }
  0x2d   : > { %536 = vst.msk [vmem:[#allocation3 + $0x50] sm:$0xff] (!%p5582_p0), %vm525_vm0, %v7023_v0  ;;  %537 = vst.msk [vmem:[#allocation3 + $0x58] sm:$0xff] (!%p5582_p0), %vm525_vm0, %v7023_v0 }
  0x2e   : > { %538 = vst.msk [vmem:[#allocation3 + $0x60] sm:$0xff] (!%p5582_p0), %vm525_vm0, %v7023_v0  ;;  %539 = vst.msk [vmem:[#allocation3 + $0x68] sm:$0xff] (!%p5582_p0), %vm525_vm0, %v7023_v0 }
  0x2f   : > { %540 = vst.msk [vmem:[#allocation3 + $0x70] sm:$0xff] %vm525_vm0, %v7023_v0  ;;  %541 = vst.msk [vmem:[#allocation3 + $0x78] sm:$0xff] %vm525_vm0, %v7023_v0 }
  0x30   : > { %542 = vst.msk [vmem:[#allocation4] sm:$0xff] %vm525_vm0, %v7023_v0  ;;  %543 = vst.msk [vmem:[#allocation4 + $0x8] sm:$0xff] %vm525_vm0, %v7023_v0 }
  0x31   : > { %544 = vst.msk [vmem:[#allocation4 + $0x10] sm:$0xff] %vm525_vm0, %v7023_v0  ;;  %545 = vst.msk [vmem:[#allocation4 + $0x18] sm:$0xff] %vm525_vm0, %v7023_v0 }
  0x32   : > { %546 = vst.msk [vmem:[#allocation4 + $0x20] sm:$0xff] %vm525_vm0, %v7023_v0  ;;  %547 = vst.msk [vmem:[#allocation4 + $0x28] sm:$0xff] %vm525_vm0, %v7023_v0 }
  0x33   : > { %548 = vst.msk [vmem:[#allocation4 + $0x30] sm:$0xff] %vm525_vm0, %v7023_v0  ;;  %549 = vst.msk [vmem:[#allocation4 + $0x38] sm:$0xff] %vm525_vm0, %v7023_v0 }
  0x34   : > { %550 = vst.msk [vmem:[#allocation4 + $0x40] sm:$0xff] %vm525_vm0, %v7023_v0  ;;  %551 = vst.msk [vmem:[#allocation4 + $0x48] sm:$0xff] %vm525_vm0, %v7023_v0 }
  0x35   : > { %552 = vst.msk [vmem:[#allocation4 + $0x50] sm:$0xff] %vm525_vm0, %v7023_v0  ;;  %553 = vst.msk [vmem:[#allocation4 + $0x58] sm:$0xff] %vm525_vm0, %v7023_v0 }
  0x36   : > { %554 = vst.msk [vmem:[#allocation4 + $0x60] sm:$0xff] %vm525_vm0, %v7023_v0  ;;  %555 = vst.msk [vmem:[#allocation4 + $0x68] sm:$0xff] %vm525_vm0, %v7023_v0 }
  0x37   : > { %556 = vst.msk [vmem:[#allocation4 + $0x70] sm:$0xff] %vm525_vm0, %v7023_v0  ;;  %557 = vst.msk [vmem:[#allocation4 + $0x78] sm:$0xff] %vm525_vm0, %v7023_v0 }
  0x38   : > { %559 = vst.msk [vmem:[#allocation2] sm:$0xff] %vm558_vm1, %v7023_v0  ;;  %560 = vst.msk [vmem:[#allocation2 + $0x8] sm:$0xff] %vm558_vm1, %v7023_v0 }
  0x39   : > { %561 = vst.msk [vmem:[#allocation2 + $0x10] sm:$0xff] %vm558_vm1, %v7023_v0  ;;  %562 = vst.msk [vmem:[#allocation2 + $0x18] sm:$0xff] %vm558_vm1, %v7023_v0 }
  0x3a   : > { %563 = vst.msk [vmem:[#allocation2 + $0x20] sm:$0xff] %vm558_vm1, %v7023_v0  ;;  %564 = vst.msk [vmem:[#allocation2 + $0x28] sm:$0xff] %vm558_vm1, %v7023_v0 }
  0x3b   : > { %565 = vst.msk [vmem:[#allocation2 + $0x30] sm:$0xff] %vm558_vm1, %v7023_v0  ;;  %566 = vst.msk [vmem:[#allocation2 + $0x38] sm:$0xff] %vm558_vm1, %v7023_v0 }
  0x3c   : > { %567 = vst.msk [vmem:[#allocation2 + $0x40] sm:$0xff] %vm558_vm1, %v7023_v0  ;;  %568 = vst.msk [vmem:[#allocation2 + $0x48] sm:$0xff] %vm558_vm1, %v7023_v0 }
  0x3d   : > { %569 = vst.msk [vmem:[#allocation2 + $0x50] sm:$0xff] %vm558_vm1, %v7023_v0  ;;  %570 = vst.msk [vmem:[#allocation2 + $0x58] sm:$0xff] %vm558_vm1, %v7023_v0 }
  0x3e   : > { %571 = vst.msk [vmem:[#allocation2 + $0x60] sm:$0xff] %vm558_vm1, %v7023_v0  ;;  %572 = vst.msk [vmem:[#allocation2 + $0x68] sm:$0xff] %vm558_vm1, %v7023_v0 }
  0x3f   : > { %573 = vst.msk [vmem:[#allocation2 + $0x70] sm:$0xff] %vm558_vm1, %v7023_v0  ;;  %574 = vst.msk [vmem:[#allocation2 + $0x78] sm:$0xff] %vm558_vm1, %v7023_v0 }
  0x40   : > { %575 = vst.msk [vmem:[#allocation2 + $0x80] sm:$0xff] %vm558_vm1, %v7023_v0  ;;  %580 = vst.msk [vmem:[#allocation2 + $0xa8] sm:$0xff] %vm558_vm1, %v7023_v0 }
  0x41   : > { %581 = vst.msk [vmem:[#allocation2 + $0xb0] sm:$0xff] %vm558_vm1, %v7023_v0  ;;  %582 = vst.msk [vmem:[#allocation2 + $0xb8] sm:$0xff] %vm558_vm1, %v7023_v0 }
  0x42   : > { %583 = vst.msk [vmem:[#allocation2 + $0xc0] sm:$0xff] %vm558_vm1, %v7023_v0  ;;  %584 = vst.msk [vmem:[#allocation2 + $0xc8] sm:$0xff] %vm558_vm1, %v7023_v0 }
  0x43   : > { %585 = vst.msk [vmem:[#allocation2 + $0xd0] sm:$0xff] %vm558_vm1, %v7023_v0  ;;  %586 = vst.msk [vmem:[#allocation2 + $0xd8] sm:$0xff] %vm558_vm1, %v7023_v0 }
  0x44   : > { %587 = vst.msk [vmem:[#allocation2 + $0xe0] sm:$0xff] %vm558_vm1, %v7023_v0  ;;  %588 = vst.msk [vmem:[#allocation2 + $0xe8] sm:$0xff] %vm558_vm1, %v7023_v0 }
  0x45   : > { %589 = vst.msk [vmem:[#allocation2 + $0xf0] sm:$0xff] %vm558_vm1, %v7023_v0  ;;  %590 = vst.msk [vmem:[#allocation2 + $0xf8] sm:$0xff] %vm558_vm1, %v7023_v0 }
  0x46   : > { %591 = vst.msk [vmem:[#allocation2 + $0x100] sm:$0xff] %vm558_vm1, %v7023_v0  ;;  %592 = vst.msk [vmem:[#allocation2 + $0x108] sm:$0xff] %vm558_vm1, %v7023_v0 }
  0x47   : > { %593 = vst.msk [vmem:[#allocation2 + $0x110] sm:$0xff] %vm558_vm1, %v7023_v0  ;;  %594 = vst.msk [vmem:[#allocation2 + $0x118] sm:$0xff] %vm558_vm1, %v7023_v0 }
  0x48   : > { %595 = vst.msk [vmem:[#allocation2 + $0x120] sm:$0xff] %vm558_vm1, %v7023_v0  ;;  %600 = vst.msk [vmem:[#allocation2 + $0x148] sm:$0xff] %vm558_vm1, %v7023_v0 }
  0x49   : > { %601 = vst.msk [vmem:[#allocation2 + $0x150] sm:$0xff] %vm558_vm1, %v7023_v0  ;;  %602 = vst.msk [vmem:[#allocation2 + $0x158] sm:$0xff] %vm558_vm1, %v7023_v0 }
  0x4a   : > { %603 = vst.msk [vmem:[#allocation2 + $0x160] sm:$0xff] %vm558_vm1, %v7023_v0  ;;  %604 = vst.msk [vmem:[#allocation2 + $0x168] sm:$0xff] %vm558_vm1, %v7023_v0 }
  0x4b   : > { %605 = vst.msk [vmem:[#allocation2 + $0x170] sm:$0xff] %vm558_vm1, %v7023_v0  ;;  %606 = vst.msk [vmem:[#allocation2 + $0x178] sm:$0xff] %vm558_vm1, %v7023_v0 }
  0x4c   : > { %607 = vst.msk [vmem:[#allocation2 + $0x180] sm:$0xff] %vm558_vm1, %v7023_v0  ;;  %608 = vst.msk [vmem:[#allocation2 + $0x188] sm:$0xff] %vm558_vm1, %v7023_v0 }
  0x4d   : > { %609 = vst.msk [vmem:[#allocation2 + $0x190] sm:$0xff] %vm558_vm1, %v7023_v0  ;;  %610 = vst.msk [vmem:[#allocation2 + $0x198] sm:$0xff] %vm558_vm1, %v7023_v0 }
  0x4e   : > { %611 = vst.msk [vmem:[#allocation2 + $0x1a0] sm:$0xff] %vm558_vm1, %v7023_v0  ;;  %612 = vst.msk [vmem:[#allocation2 + $0x1a8] sm:$0xff] %vm558_vm1, %v7023_v0 }
  0x4f   : > { %613 = vst.msk [vmem:[#allocation2 + $0x1b0] sm:$0xff] %vm558_vm1, %v7023_v0  ;;  %614 = vst.msk [vmem:[#allocation2 + $0x1b8] sm:$0xff] %vm558_vm1, %v7023_v0 }
  0x50   : > { %615 = vst.msk [vmem:[#allocation2 + $0x1c0] sm:$0xff] %vm558_vm1, %v7023_v0  ;;  %616 = vst.msk [vmem:[#allocation2 + $0x1c8] sm:$0xff] %vm558_vm1, %v7023_v0 }
  0x51   : > { %620 = vst.msk [vmem:[#allocation2 + $0x1e8] sm:$0xff] %vm558_vm1, %v7023_v0  ;;  %621 = vst.msk [vmem:[#allocation2 + $0x1f0] sm:$0xff] %vm558_vm1, %v7023_v0 }
  0x52   : > { %622 = vst.msk [vmem:[#allocation2 + $0x1f8] sm:$0xff] %vm558_vm1, %v7023_v0  ;;  %623 = vst.msk [vmem:[#allocation2 + $0x200] sm:$0xff] %vm558_vm1, %v7023_v0 }
  0x53   : > { %624 = vst.msk [vmem:[#allocation2 + $0x208] sm:$0xff] %vm558_vm1, %v7023_v0  ;;  %625 = vst.msk [vmem:[#allocation2 + $0x210] sm:$0xff] %vm558_vm1, %v7023_v0 }
  0x54   : > { %626 = vst.msk [vmem:[#allocation2 + $0x218] sm:$0xff] %vm558_vm1, %v7023_v0  ;;  %627 = vst.msk [vmem:[#allocation2 + $0x220] sm:$0xff] %vm558_vm1, %v7023_v0 }
  0x55   : > { %628 = vst.msk [vmem:[#allocation2 + $0x228] sm:$0xff] %vm558_vm1, %v7023_v0  ;;  %629 = vst.msk [vmem:[#allocation2 + $0x230] sm:$0xff] %vm558_vm1, %v7023_v0 }
  0x56   : > { %630 = vst.msk [vmem:[#allocation2 + $0x238] sm:$0xff] %vm558_vm1, %v7023_v0  ;;  %631 = vst.msk [vmem:[#allocation2 + $0x240] sm:$0xff] %vm558_vm1, %v7023_v0 }
  0x57   : > { %632 = vst.msk [vmem:[#allocation2 + $0x248] sm:$0xff] %vm558_vm1, %v7023_v0  ;;  %633 = vst.msk [vmem:[#allocation2 + $0x250] sm:$0xff] %vm558_vm1, %v7023_v0 }
  0x58   : > { %634 = vst.msk [vmem:[#allocation2 + $0x258] sm:$0xff] %vm558_vm1, %v7023_v0  ;;  %635 = vst.msk [vmem:[#allocation2 + $0x260] sm:$0xff] %vm558_vm1, %v7023_v0 }
  0x59   : > { %636 = vst.msk [vmem:[#allocation2 + $0x268] sm:$0xff] %vm558_vm1, %v7023_v0  ;;  %661 = vst.msk [vmem:[#allocation2 + $0x330] sm:$0xff] %vm558_vm1, %v7023_v0 }
  0x5a   : > { %662 = vst.msk [vmem:[#allocation2 + $0x338] sm:$0xff] %vm558_vm1, %v7023_v0  ;;  %663 = vst.msk [vmem:[#allocation2 + $0x340] sm:$0xff] %vm558_vm1, %v7023_v0 }
  0x5b   : > { %664 = vst.msk [vmem:[#allocation2 + $0x348] sm:$0xff] %vm558_vm1, %v7023_v0  ;;  %665 = vst.msk [vmem:[#allocation2 + $0x350] sm:$0xff] %vm558_vm1, %v7023_v0 }
  0x5c   : > { %666 = vst.msk [vmem:[#allocation2 + $0x358] sm:$0xff] %vm558_vm1, %v7023_v0  ;;  %667 = vst.msk [vmem:[#allocation2 + $0x360] sm:$0xff] %vm558_vm1, %v7023_v0 }
  0x5d   : > { %668 = vst.msk [vmem:[#allocation2 + $0x368] sm:$0xff] %vm558_vm1, %v7023_v0  ;;  %669 = vst.msk [vmem:[#allocation2 + $0x370] sm:$0xff] %vm558_vm1, %v7023_v0 }
  0x5e   : > { %670 = vst.msk [vmem:[#allocation2 + $0x378] sm:$0xff] %vm558_vm1, %v7023_v0  ;;  %671 = vst.msk [vmem:[#allocation2 + $0x380] sm:$0xff] %vm558_vm1, %v7023_v0 }
  0x5f   : > { %672 = vst.msk [vmem:[#allocation2 + $0x388] sm:$0xff] %vm558_vm1, %v7023_v0  ;;  %673 = vst.msk [vmem:[#allocation2 + $0x390] sm:$0xff] %vm558_vm1, %v7023_v0 }
  0x60   : > { %674 = vst.msk [vmem:[#allocation2 + $0x398] sm:$0xff] %vm558_vm1, %v7023_v0  ;;  %675 = vst.msk [vmem:[#allocation2 + $0x3a0] sm:$0xff] %vm558_vm1, %v7023_v0 }
  0x61   : > { %676 = vst.msk [vmem:[#allocation2 + $0x3a8] sm:$0xff] %vm558_vm1, %v7023_v0  ;;  %677 = vst.msk [vmem:[#allocation2 + $0x3b0] sm:$0xff] %vm558_vm1, %v7023_v0 }
  0x62   : > { %681 = vst.msk [vmem:[#allocation2 + $0x3d0] sm:$0xff] %vm558_vm1, %v7023_v0  ;;  %682 = vst.msk [vmem:[#allocation2 + $0x3d8] sm:$0xff] %vm558_vm1, %v7023_v0 }
  0x63   : > { %683 = vst.msk [vmem:[#allocation2 + $0x3e0] sm:$0xff] %vm558_vm1, %v7023_v0  ;;  %684 = vst.msk [vmem:[#allocation2 + $0x3e8] sm:$0xff] %vm558_vm1, %v7023_v0 }
  0x64   : > { %685 = vst.msk [vmem:[#allocation2 + $0x3f0] sm:$0xff] %vm558_vm1, %v7023_v0  ;;  %686 = vst.msk [vmem:[#allocation2 + $0x3f8] sm:$0xff] %vm558_vm1, %v7023_v0 }
  0x65   : > { %687 = vst.msk [vmem:[#allocation2 + $0x400] sm:$0xff] %vm558_vm1, %v7023_v0  ;;  %688 = vst.msk [vmem:[#allocation2 + $0x408] sm:$0xff] %vm558_vm1, %v7023_v0 }
  0x66   : > { %689 = vst.msk [vmem:[#allocation2 + $0x410] sm:$0xff] %vm558_vm1, %v7023_v0  ;;  %690 = vst.msk [vmem:[#allocation2 + $0x418] sm:$0xff] %vm558_vm1, %v7023_v0 }
  0x67   : > { %691 = vst.msk [vmem:[#allocation2 + $0x420] sm:$0xff] %vm558_vm1, %v7023_v0  ;;  %692 = vst.msk [vmem:[#allocation2 + $0x428] sm:$0xff] %vm558_vm1, %v7023_v0 }
  0x68   : > { %693 = vst.msk [vmem:[#allocation2 + $0x430] sm:$0xff] %vm558_vm1, %v7023_v0  ;;  %694 = vst.msk [vmem:[#allocation2 + $0x438] sm:$0xff] %vm558_vm1, %v7023_v0 }
  0x69   : > { %695 = vst.msk [vmem:[#allocation2 + $0x440] sm:$0xff] %vm558_vm1, %v7023_v0  ;;  %696 = vst.msk [vmem:[#allocation2 + $0x448] sm:$0xff] %vm558_vm1, %v7023_v0 }
  0x6a   : > { %697 = vst.msk [vmem:[#allocation2 + $0x450] sm:$0xff] %vm558_vm1, %v7023_v0  ;;  %702 = vst.msk [vmem:[#allocation2 + $0x478] sm:$0xff] %vm558_vm1, %v7023_v0 }
  0x6b   : > { %703 = vst.msk [vmem:[#allocation2 + $0x480] sm:$0xff] %vm558_vm1, %v7023_v0  ;;  %704 = vst.msk [vmem:[#allocation2 + $0x488] sm:$0xff] %vm558_vm1, %v7023_v0 }
  0x6c   : > { %705 = vst.msk [vmem:[#allocation2 + $0x490] sm:$0xff] %vm558_vm1, %v7023_v0  ;;  %706 = vst.msk [vmem:[#allocation2 + $0x498] sm:$0xff] %vm558_vm1, %v7023_v0 }
  0x6d   : > { %707 = vst.msk [vmem:[#allocation2 + $0x4a0] sm:$0xff] %vm558_vm1, %v7023_v0  ;;  %708 = vst.msk [vmem:[#allocation2 + $0x4a8] sm:$0xff] %vm558_vm1, %v7023_v0 }
  0x6e   : > { %709 = vst.msk [vmem:[#allocation2 + $0x4b0] sm:$0xff] %vm558_vm1, %v7023_v0  ;;  %710 = vst.msk [vmem:[#allocation2 + $0x4b8] sm:$0xff] %vm558_vm1, %v7023_v0 }
  0x6f   : > { %711 = vst.msk [vmem:[#allocation2 + $0x4c0] sm:$0xff] %vm558_vm1, %v7023_v0  ;;  %712 = vst.msk [vmem:[#allocation2 + $0x4c8] sm:$0xff] %vm558_vm1, %v7023_v0 }
  0x70   : > { %713 = vst.msk [vmem:[#allocation2 + $0x4d0] sm:$0xff] %vm558_vm1, %v7023_v0  ;;  %714 = vst.msk [vmem:[#allocation2 + $0x4d8] sm:$0xff] %vm558_vm1, %v7023_v0 }
  0x71   : > { %715 = vst.msk [vmem:[#allocation2 + $0x4e0] sm:$0xff] %vm558_vm1, %v7023_v0  ;;  %716 = vst.msk [vmem:[#allocation2 + $0x4e8] sm:$0xff] %vm558_vm1, %v7023_v0 }
  0x72   : > { %717 = vst.msk [vmem:[#allocation2 + $0x4f0] sm:$0xff] %vm558_vm1, %v7023_v0  ;;  %722 = vst.msk [vmem:[#allocation2 + $0x518] sm:$0xff] %vm558_vm1, %v7023_v0 }
  0x73   : > { %723 = vst.msk [vmem:[#allocation2 + $0x520] sm:$0xff] %vm558_vm1, %v7023_v0  ;;  %724 = vst.msk [vmem:[#allocation2 + $0x528] sm:$0xff] %vm558_vm1, %v7023_v0 }
  0x74   : > { %725 = vst.msk [vmem:[#allocation2 + $0x530] sm:$0xff] %vm558_vm1, %v7023_v0  ;;  %726 = vst.msk [vmem:[#allocation2 + $0x538] sm:$0xff] %vm558_vm1, %v7023_v0 }
  0x75   : > { %727 = vst.msk [vmem:[#allocation2 + $0x540] sm:$0xff] %vm558_vm1, %v7023_v0  ;;  %728 = vst.msk [vmem:[#allocation2 + $0x548] sm:$0xff] %vm558_vm1, %v7023_v0 }
  0x76   : > { %729 = vst.msk [vmem:[#allocation2 + $0x550] sm:$0xff] %vm558_vm1, %v7023_v0  ;;  %730 = vst.msk [vmem:[#allocation2 + $0x558] sm:$0xff] %vm558_vm1, %v7023_v0 }
  0x77   : > { %731 = vst.msk [vmem:[#allocation2 + $0x560] sm:$0xff] %vm558_vm1, %v7023_v0  ;;  %732 = vst.msk [vmem:[#allocation2 + $0x568] sm:$0xff] %vm558_vm1, %v7023_v0 }
  0x78   : > { %733 = vst.msk [vmem:[#allocation2 + $0x570] sm:$0xff] %vm558_vm1, %v7023_v0  ;;  %734 = vst.msk [vmem:[#allocation2 + $0x578] sm:$0xff] %vm558_vm1, %v7023_v0 }
  0x79   : > { %735 = vst.msk [vmem:[#allocation2 + $0x580] sm:$0xff] %vm558_vm1, %v7023_v0  ;;  %736 = vst.msk [vmem:[#allocation2 + $0x588] sm:$0xff] %vm558_vm1, %v7023_v0 }
  0x7a   : > { %737 = vst.msk [vmem:[#allocation2 + $0x590] sm:$0xff] %vm558_vm1, %v7023_v0  ;;  %738 = vst.msk [vmem:[#allocation2 + $0x598] sm:$0xff] %vm558_vm1, %v7023_v0 }
  0x7b PF: > { %v790_v1 = vld [vmem:[%s10151_s3 + $0x8] sm:$0xff]  ;;  %v789_v2 = vld [vmem:[%s10151_s3] sm:$0xff]  ;;  %v10184_v4 = vmov 1   ;;  %vm10224_vm3 = vcmask 64512   ;;  %v7025_v6 = vmov 0.0   ;;  %v10180_v7 = vmov 0  }
  0x7c   : > { %v2007_v3 = vld [vmem:[%s10149_s1] sm:$0xff]  ;;  %841 = vmatprep.subr.mxu0 %v790_v1  ;;  %6523 = vset.pattern.permute.xlu1 %v10184_v4  ;;  %v791_v9 = vld [vmem:[%s10151_s3 + $0x10] sm:$0xff]  ;;  %v2010_v11 = vld [vmem:[%s10149_s1 + $0x18] sm:$0xff]  ;;  %vm1199_vm6 = vcmask 1043456   ;;  %vm10219_vm9 = vcmask 31744   ;;  %v10175_v34 = vmov 3  }
  0x7d   : > { %vm2023_vm2 = vcmp.gt.f32.partialorder %v2007_v3, 0.5  ;;  %v7551_v5 = vld [vmem:[#allocation3] sm:$0xff]  ;;  %842 = vmatpush1.msra.mxu0 %v789_v2  ;;  %905 = vmatprep.mubr.f32.mxu0 %v7025_v6  ;;  %v2009_v10 = vld [vmem:[%s10149_s1 + $0x10] sm:$0xff]  ;;  %v7570_v12 = vld [vmem:[#allocation3 + $0x8] sm:$0xff]  ;;  %vm2026_vm5 = vcmp.gt.f32.partialorder %v2010_v11, 0.5  ;;  %v10186_v39 = vmov 2  }
  0x7e   : > { %v7555_v8 = vsel %vm2023_vm2, 1, %v10180_v7  ;;  %5583 = vmatmul.mubr.msk.f32.vlgmr.msra.gmra.mrb[0].mxu0 %vm10224_vm3, %v7551_v5  ;;  %vm2025_vm4 = vcmp.gt.f32.partialorder %v2009_v10, 0.5  ;;  %6018 = vmatprep.subr.mxu0 %v791_v9  ;;  %v2008_v15 = vld [vmem:[%s10149_s1 + $0x8] sm:$0xff]  ;;  %v7587_v16 = vld [vmem:[#allocation3 + $0x10] sm:$0xff]  ;;  %v7595_v19 = vsel %vm2026_vm5, 1, %v10180_v7  ;;  %v7605_v21 = vld [vmem:[%s10150_s2] sm:$0xff] }
  0x7f   : > { %2168 = vperm.xlu1 %6523, %v7555_v8   ;;  %911 = vmatprep.mubr.f32.mxu0 %v7025_v6  ;;  %v7573_v13 = vsel %vm2025_vm4, 1, %v10180_v7  ;;  %v7575_v14 = vld [vmem:[#allocation3 + $0x40] sm:$0xff]  ;;  %v7589_v17 = vld [vmem:[#allocation3 + $0x48] sm:$0xff]  ;;  %vm2024_vm7 = vcmp.gt.f32.partialorder %v2008_v15, 0.5  ;;  %v1149_v22 = vcombine.high %v7605_v21, %v7605_v21  ;;  %v7617_v23 = vld [vmem:[#allocation3 + $0x18] sm:$0xff]  ;;  %v10178_v44 = vmov 5  }
  0x80   : > { %6019 = vmatpush3.msra.mxu0 %v791_v9  ;;  %6366 = vmatprep.subr.mxu1 %v791_v9  ;;  %v788_v18 = vld [vmem:[%s10150_s2 + $0x8] sm:$0xf]  ;;  %v7597_v20 = vld [vmem:[#allocation3 + $0x50] sm:$0xff]  ;;  %v7619_v24 = vld [vmem:[#allocation3 + $0x58] sm:$0xff]  ;;  %v7622_v25 = vsel %vm2024_vm7, 1, %v10180_v7  ;;  %v10182_v55 = vmov 6  }
  0x81   : > { %6367 = vmatpush3.msra.mxu1 %v791_v9  ;;  %6032 = vmatprep.mubr.msk.f32.mxu1 %vm10224_vm3, %v7575_v14  ;;  %v7624_v26 = vld [vmem:[#allocation3 + $0x60] sm:$0xff]  ;;  %v7629_v27 = vld [vmem:[#allocation3 + $0x68] sm:$0xff]  ;;  %v7636_v28 = vld [vmem:[#allocation3 + $0x70] sm:$0xff]  ;;  %v10176_v59 = vmov 7   ;;  %v10173_v63 = vmov 8   ;;  %vm1512_vm4 = vcmask 261120  }
  0x82   : > { %5584 = vmatmul.mubr.msk.f32.gmra.mrb[2].mxu0 %vm10224_vm3, %v7570_v12  ;;  %6033 = vmatmul.mubr.msk.f32.vlgmr.msra.gmra.mrb[0].mxu1 %vm10224_vm3, %v7589_v17  ;;  %v7640_v29 = vld [vmem:[#allocation3 + $0x20] sm:$0xff]  ;;  %v7650_v31 = vld [vmem:[#allocation3 + $0x78] sm:$0xff]  ;;  %v7659_v33 = vld [vmem:[#allocation3 + $0x28] sm:$0xff]  ;;  %s7033_s25 = smov 32   ;;  %s7034_s28 = smov 96  }
  0x83   : > { %6525 = vset.pattern.permute.xlu1 %v10180_v7  ;;  %917 = vmatprep.mubr.f32.mxu0 %v7025_v6  ;;  %v2011_v30 = vld [vmem:[%s10149_s1 + $0x20] sm:$0xff]  ;;  %v7671_v36 = vld [vmem:[%s7199_s19 + $0x8] sm:$0xff]  ;;  %v7676_v37 = vld [vmem:[%s7199_s19 + $0x10] sm:$0xff]  ;;  %s7035_s29 = smov 64   ;;  %s7036_s12 = smov 112  }
  0x84   : > { %2062 = vperm.xlu1 %6525, %v7573_v13   ;;  %6044 = vmatprep.subr.msk.mxu1 %vm1199_vm6, %v788_v18  ;;  %vm2027_vm8 = vcmp.gt.f32.partialorder %v2011_v30, 0.5  ;;  %v7656_v32 = vld [vmem:[%s7199_s19] sm:$0xff]  ;;  %v7680_v38 = vld [vmem:[#allocation3 + $0x30] sm:$0xff]  ;;  %v7688_v40 = vld [vmem:[%s7199_s19 + $0x18] sm:$0xff]  ;;  %s7037_s23 = smov 8   ;;  %s10231_s21 = smov 16  }
  0x85   : > { %6035 = vmatprep.mubr.msk.f32.mxu1 %vm10224_vm3, %v7597_v20  ;;  %6045 = vmatpush3.msk.msra.mxu1 %vm1199_vm6, %v788_v18  ;;  %v7666_v35 = vsel %vm2027_vm8, 1, %v10180_v7  ;;  %v7694_v41 = vld [vmem:[%s7199_s19 + $0x20] sm:$0xff]  ;;  %v7697_v42 = vld [vmem:[#allocation3 + $0x38] sm:$0xff]  ;;  %v7706_v43 = vld [vmem:[%s7199_s19 + $0x28] sm:$0xff]  ;;  %s7040_s18 = smov 24   ;;  %s5451_s15 = sshll.u32 %s7206_s14, 4  ;;  %s10034_s15 = int_to_ptr.vmem [resolvable:$true] %s5451_s15 }
  0x86   : > { %5585 = vmatmul.mubr.msk.f32.gmra.mrb[4].mxu0 %vm10224_vm3, %v7587_v16  ;;  %6524 = vset.pattern.permute.xlu0 %v10184_v4  ;;  %v7712_v45 = vld [vmem:[%s7199_s19 + $0x30] sm:$0xff]  ;;  %v7722_v46 = vld [vmem:[%s7199_s19 + $0x38] sm:$0xff]  ;;  %v2012_v47 = vld [vmem:[%s10149_s1 + $0x28] sm:$0xff]  ;;  %s6927_s0 = scalar_lea.vmem %s10034_s15, 32 }
  0x87   : > { %923 = vmatprep.mubr.f32.mxu0 %v7025_v6  ;;  %6036 = vmatmul.mubr.msk.f32.gmra.mrb[2].mxu1 %vm10224_vm3, %v7619_v24  ;;  %v7730_v48 = vld [vmem:[%s7199_s19 + $0x40] sm:$0xff]  ;;  %vm2028_vm10 = vcmp.gt.f32.partialorder %v2012_v47, 0.5  ;;  %v7740_v49 = vld [vmem:[%s7199_s19 + $0x48] sm:$0xff]  ;;  %v2013_v50 = vld [vmem:[%s10149_s1 + $0x30] sm:$0xff]  ;;  %p6928_p1 = scmp.ne.s32.totalorder %s10034_s15, %s6927_s0 }
  0x88   : > { %2065 = vperm.xlu1 %6525, %v7595_v19   ;;  %5615 = vmatprep.subr.msk.mxu0 %vm1199_vm6, %v1149_v22  ;;  %v7751_v51 = vsel %vm2028_vm10, 1, %v10180_v7  ;;  %vm2029_vm11 = vcmp.gt.f32.partialorder %v2013_v50, 0.5  ;;  %v7757_v52 = vld [vmem:[%s7199_s19 + $0x50] sm:$0xff]  ;;  %v7766_v53 = vld [vmem:[%s7199_s19 + $0x58] sm:$0xff]  ;;  %v7779_v56 = vld [vmem:[%s7199_s19 + $0x60] sm:$0xff] }
  0x89   : > { %6038 = vmatprep.mubr.msk.f32.mxu1 %vm10224_vm3, %v7624_v26  ;;  %2171 = vperm.xlu0 %6524, %v7622_v25   ;;  %v7769_v54 = vsel %vm2029_vm11, 1, %v10180_v7  ;;  %v7783_v57 = vld [vmem:[%s7199_s19 + $0x68] sm:$0xff]  ;;  %v7788_v58 = vld [vmem:[%s7199_s19 + $0x70] sm:$0xff]  ;;  %v7801_v60 = vld [vmem:[%s7199_s19 + $0x78] sm:$0xff]  ;;  %s10469_s19 = sld [smem:[#allocation72_spill]]  ;;  %p6929_p2 = pnand %p6928_p1, %p7170_p3 }
  0x8a   : > { %5586 = vmatmul.mubr.msk.f32.gmra.mrb[6].mxu0 %vm10224_vm3, %v7617_v23  ;;  %v2014_v61 = vld [vmem:[%s10149_s1 + $0x38] sm:$0xff]  ;;  %v2015_v0 = vld [vmem:[%s10149_s1 + $0x40] sm:$0xff]  ;;  %v2016_v2 = vld [vmem:[%s10149_s1 + $0x48] sm:$0xff] }
  0x8b   : > { %929 = vmatprep.mubr.f32.mxu0 %v7025_v6  ;;  %6039 = vmatmul.mubr.msk.f32.gmra.mrb[4].mxu1 %vm10224_vm3, %v7629_v27  ;;  %vm2030_vm12 = vcmp.gt.f32.partialorder %v2014_v61, 0.5  ;;  %vm2031_vm13 = vcmp.gt.f32.partialorder %v2015_v0, 0.5  ;;  %vm2032_vm14 = vcmp.gt.f32.partialorder %v2016_v2, 0.5  ;;  %p6930_p4 = pneg %p6929_p2 }
  0x8c   : > { %6526 = vset.pattern.permute.xlu1 %v10184_v4  ;;  %6041 = vmatprep.mubr.msk.f32.mxu1 %vm10224_vm3, %v7636_v28  ;;  %v7826_v62 = vsel %vm2030_vm12, 1, %v10180_v7  ;;  %v7889_v1 = vsel %vm2031_vm13, 1, %v10180_v7  ;;  %v7913_v3 = vsel %vm2032_vm14, 1, %v10180_v7 }
  0x8d   : > { %2174 = vperm.xlu1 %6526, %v7573_v13   ;;  %2177 = vperm.xlu0 %6524, %v7595_v19  }
  0x8e   : > { %5587 = vmatmul.mubr.msk.f32.gmra.mrb[8].mxu0 %vm10224_vm3, %v7640_v29 }
  0x8f   : > { %935 = vmatprep.mubr.f32.mxu0 %v7025_v6  ;;  %6042 = vmatmul.mubr.msk.f32.gmra.mrb[6].mxu1 %vm10224_vm3, %v7650_v31 }
  0x90   : > { %6046 = vmatprep.mubr.msk.f32.mxu1 %vm10219_vm9, %v7656_v32 }
  0x91   : > { %6527 = vset.pattern.permute.xlu1 %v10175_v34  ;;  %2180 = vperm.xlu0 %6524, %v7666_v35  }
  0x92   : > { %2395 = vperm.xlu1 %6527, %v7622_v25   ;;  %5588 = vmatmul.mubr.msk.f32.gmra.mrb[10].mxu0 %vm10224_vm3, %v7659_v33 }
  0x93   : > { %941 = vmatprep.mubr.f32.mxu0 %v7025_v6  ;;  %6047 = vmatmul.mubr.msk.f32.vlgmr.msra.gmra.mrb[8].mxu1 %vm10219_vm9, %v7671_v36 }
  0x94   : > { %6049 = vmatprep.mubr.msk.f32.mxu1 %vm10219_vm9, %v7676_v37 }
  0x95   : > { %6531 = vset.pattern.permute.xlu0 %v10180_v7 }
  0x96   : > { %6528 = vset.pattern.permute.xlu1 %v10186_v39  ;;  %5589 = vmatmul.mubr.msk.f32.gmra.mrb[12].mxu0 %vm10224_vm3, %v7680_v38 }
  0x97   : > { %2286 = vperm.xlu1 %6528, %v7573_v13   ;;  %947 = vmatprep.mubr.f32.mxu0 %v7025_v6 }
  0x98   : > { %6050 = vmatmul.mubr.msk.f32.gmra.mrb[10].mxu1 %vm10219_vm9, %v7688_v40  ;;  %2056 = vperm.xlu0 %6531, %v7555_v8  }
  0x99   : > { %6052 = vmatprep.mubr.msk.f32.mxu1 %vm10219_vm9, %v7694_v41 }
  0x9a   : > { %5590 = vmatmul.mubr.msk.f32.gmra.mrb[14].mxu0 %vm10224_vm3, %v7697_v42 }
  0x9b   : > { %6529 = vset.pattern.permute.xlu1 %v10178_v44  ;;  %953 = vmatprep.mubr.f32.mxu0 %v7025_v6 }
  0x9c   : > { %2504 = vperm.xlu1 %6529, %v7555_v8   ;;  %6053 = vmatmul.mubr.msk.f32.gmra.mrb[12].mxu1 %vm10219_vm9, %v7706_v43 }
  0x9d   : > { %2059 = vperm.xlu0 %6531, %v7622_v25   ;;  %6055 = vmatprep.mubr.msk.f32.mxu1 %vm10219_vm9, %v7712_v45 }
  0x9e   : > { %5591 = vmatmul.mubr.msk.f32.gmra.mrb[16].mxu0 %vm10224_vm3, %v7575_v14 }
  0x9f   : > { %959 = vmatprep.mubr.f32.mxu0 %v7025_v6 }
  0xa0   : > { %6530 = vset.pattern.permute.xlu1 %v10186_v39  ;;  %6056 = vmatmul.mubr.msk.f32.gmra.mrb[14].mxu1 %vm10219_vm9, %v7722_v46 }
  0xa1   : > { %2289 = vperm.xlu1 %6530, %v7595_v19   ;;  %6058 = vmatprep.mubr.msk.f32.mxu1 %vm10219_vm9, %v7730_v48 }
  0xa2   : > { %2068 = vperm.xlu0 %6531, %v7666_v35   ;;  %5592 = vmatmul.mubr.msk.f32.gmra.mrb[18].mxu0 %vm10224_vm3, %v7589_v17  ;;  %v2018_v17 = vld [vmem:[%s10149_s1 + $0x58] sm:$0xff] }
  0xa3   : > { %965 = vmatprep.mubr.f32.mxu0 %v7025_v6  ;;  %vm2034_vm0 = vcmp.gt.f32.partialorder %v2018_v17, 0.5 }
  0xa4   : > { %6059 = vmatmul.mubr.msk.f32.gmra.mrb[0].mxu1 %vm10219_vm9, %v7740_v49 }
  0xa5   : > { %6532 = vset.pattern.permute.xlu1 %v10175_v34  ;;  %6061 = vmatprep.mubr.msk.f32.mxu1 %vm10219_vm9, %v7757_v52 }
  0xa6   : > { %2398 = vperm.xlu1 %6532, %v7573_v13   ;;  %2071 = vperm.xlu0 %6531, %v7751_v51  }
  0xa7   : > { %5593 = vmatmul.mubr.msk.f32.gmra.mrb[20].mxu0 %vm10224_vm3, %v7597_v20  ;;  %v7977_v20 = vsel %vm2034_vm0, 1, %v10180_v7 }
  0xa8   : > { %971 = vmatprep.mubr.f32.mxu0 %v7025_v6  ;;  %6062 = vmatmul.mubr.msk.f32.gmra.mrb[2].mxu1 %vm10219_vm9, %v7766_v53 }
  0xa9   : > { %6064 = vmatprep.mubr.msk.f32.mxu1 %vm10219_vm9, %v7779_v56 }
  0xaa   : > { %6533 = vset.pattern.permute.xlu1 %v10182_v55  ;;  %2074 = vperm.xlu0 %6531, %v7769_v54  }
  0xab   : > { %2616 = vperm.xlu1 %6533, %v7555_v8   ;;  %5594 = vmatmul.mubr.msk.f32.gmra.mrb[22].mxu0 %vm10224_vm3, %v7619_v24 }
  0xac   : > { %977 = vmatprep.mubr.f32.mxu0 %v7025_v6  ;;  %6065 = vmatmul.mubr.msk.f32.gmra.mrb[4].mxu1 %vm10219_vm9, %v7783_v57 }
  0xad   : > { %6067 = vmatprep.mubr.msk.f32.mxu1 %vm10219_vm9, %v7788_v58 }
  0xae   : > { %6538 = vset.pattern.permute.xlu0 %v10176_v59 }
  0xaf   : > { %6534 = vset.pattern.permute.xlu1 %v10184_v4  ;;  %5595 = vmatmul.mubr.msk.f32.gmra.mrb[24].mxu0 %vm10224_vm3, %v7624_v26 }
  0xb0   : > { %2183 = vperm.xlu1 %6534, %v7751_v51   ;;  %983 = vmatprep.mubr.f32.mxu0 %v7025_v6 }
  0xb1   : > { %2728 = vperm.xlu0 %6538, %v7555_v8   ;;  %6068 = vmatmul.mubr.msk.f32.gmra.mrb[6].mxu1 %vm10219_vm9, %v7801_v60 }
  0xb3   : > { %5596 = vmatmul.mubr.msk.f32.gmra.mrb[26].mxu0 %vm10224_vm3, %v7629_v27  ;;  %v2019_v27 = vld [vmem:[%s10149_s1 + $0x60] sm:$0xff] }
  0xb4   : > { %6535 = vset.pattern.permute.xlu1 %v10182_v55  ;;  %989 = vmatprep.mubr.f32.mxu0 %v7025_v6  ;;  %vm2035_vm1 = vcmp.gt.f32.partialorder %v2019_v27, 0.5 }
  0xb5   : > { %2619 = vperm.xlu1 %6535, %v7622_v25   ;;  %2737 = vperm.xlu0 %6538, %v7595_v19  }
  0xb7   : > { %5597 = vmatmul.mubr.msk.f32.gmra.mrb[28].mxu0 %vm10224_vm3, %v7636_v28 }
  0xb8   : > { %995 = vmatprep.mubr.f32.mxu0 %v7025_v6 }
  0xb9   : > { %6536 = vset.pattern.permute.xlu1 %v10186_v39  ;;  %2743 = vperm.xlu0 %6538, %v7751_v51  }
  0xba   : > { %2292 = vperm.xlu1 %6536, %v7666_v35  }
  0xbb   : > { %5598 = vmatmul.mubr.msk.f32.gmra.mrb[30].mxu0 %vm10224_vm3, %v7650_v31 }
  0xbc   : > { %6020 = vmatprep.mubr.msk.f32.mxu0 %vm10224_vm3, %v7551_v5 }
  0xbd   : > { %2749 = vperm.xlu0 %6538, %v7826_v62  }
  0xbe   : > { %6537 = vset.pattern.permute.xlu1 %v10178_v44 }
  0xbf   : > { %2510 = vperm.xlu1 %6537, %v7573_v13   ;;  %6021 = vmatmul.mubr.msk.f32.vlgmr.msra.gmra.mrb[32].mxu0 %vm10224_vm3, %v7570_v12 }
  0xc0   : > { %5616 = vmatpush1.msk.msra.mxu0 %vm1199_vm6, %v7605_v21  ;;  %6023 = vmatprep.mubr.msk.f32.mxu0 %vm10224_vm3, %v7587_v16 }
  0xc3   : > { %6539 = vset.pattern.permute.xlu1 %v10180_v7  ;;  %6024 = vmatmul.mubr.msk.f32.gmra.mrb[34].mxu0 %vm10224_vm3, %v7617_v23 }
  0xc4   : > { %2077 = vperm.xlu1 %6539, %v7826_v62   ;;  %6026 = vmatprep.mubr.msk.f32.mxu0 %vm10224_vm3, %v7640_v29  ;;  %v8009_v29 = vsel %vm2035_vm1, 1, %v10180_v7 }
  0xc7   : > { %6027 = vmatmul.mubr.msk.f32.gmra.mrb[36].mxu0 %vm10224_vm3, %v7659_v33 }
  0xc8   : > { %6540 = vset.pattern.permute.xlu1 %v10178_v44  ;;  %6029 = vmatprep.mubr.msk.f32.mxu0 %vm10224_vm3, %v7680_v38 }
  0xc9   : > { %2513 = vperm.xlu1 %6540, %v7595_v19  }
  0xcb   : > { %6030 = vmatmul.mubr.msk.f32.gmra.mrb[38].mxu0 %vm10224_vm3, %v7697_v42 }
  0xcc   : > { %1270 = vmatprep.mubr.f32.mxu0 %v7025_v6 }
  0xcd   : > { %6541 = vset.pattern.permute.xlu1 %v10176_v59 }
  0xce   : > { %2731 = vperm.xlu1 %6541, %v7622_v25  }
  0xcf   : > { %5617 = vmatmul.mubr.msk.f32.vlgmr.msra.gmra.mrb[0].mxu0 %vm10219_vm9, %v7656_v32  ;;  %v2020_v32 = vld [vmem:[%s10149_s1 + $0x68] sm:$0xff] }
  0xd0   : > { %1276 = vmatprep.mubr.f32.mxu0 %v7025_v6  ;;  %vm2036_vm2 = vcmp.gt.f32.partialorder %v2020_v32, 0.5 }
  0xd2   : > { %6542 = vset.pattern.permute.xlu1 %v10184_v4 }
  0xd3   : > { %2186 = vperm.xlu1 %6542, %v7769_v54   ;;  %5618 = vmatmul.mubr.msk.f32.gmra.mrb[2].mxu0 %vm10219_vm9, %v7671_v36  ;;  %v8027_v36 = vsel %vm2036_vm2, 1, %v10180_v7 }
  0xd4   : > { %1282 = vmatprep.mubr.f32.mxu0 %v7025_v6 }
  0xd7   : > { %6543 = vset.pattern.permute.xlu1 %v10182_v55  ;;  %5619 = vmatmul.mubr.msk.f32.gmra.mrb[4].mxu0 %vm10219_vm9, %v7676_v37 }
  0xd8   : > { %2622 = vperm.xlu1 %6543, %v7573_v13   ;;  %1288 = vmatprep.mubr.f32.mxu0 %v7025_v6 }
  0xdb   : > { %5620 = vmatmul.mubr.msk.f32.gmra.mrb[6].mxu0 %vm10219_vm9, %v7688_v40 }
  0xdc   : > { %6544 = vset.pattern.permute.xlu1 %v10173_v63  ;;  %1294 = vmatprep.mubr.f32.mxu0 %v7025_v6 }
  0xdd   : > { %2840 = vperm.xlu1 %6544, %v7555_v8  }
  0xdf   : > { %5621 = vmatmul.mubr.msk.f32.gmra.mrb[8].mxu0 %vm10219_vm9, %v7694_v41 }
  0xe0   : > { %1300 = vmatprep.mubr.f32.mxu0 %v7025_v6 }
  0xe1   : > { %6545 = vset.pattern.permute.xlu1 %v10184_v4 }
  0xe2   : > { %2189 = vperm.xlu1 %6545, %v7826_v62  }
  0xe3   : > { %5622 = vmatmul.mubr.msk.f32.gmra.mrb[10].mxu0 %vm10219_vm9, %v7706_v43 }
  0xe4   : > { %1306 = vmatprep.mubr.f32.mxu0 %v7025_v6 }
  0xe6   : > { %6546 = vset.pattern.permute.xlu1 %v10182_v55 }
  0xe7   : > { %2625 = vperm.xlu1 %6546, %v7595_v19   ;;  %5623 = vmatmul.mubr.msk.f32.gmra.mrb[12].mxu0 %vm10219_vm9, %v7712_v45 }
  0xe8   : > { %1312 = vmatprep.mubr.f32.mxu0 %v7025_v6 }
  0xeb   : > { %6547 = vset.pattern.permute.xlu1 %v10180_v7  ;;  %5624 = vmatmul.mubr.msk.f32.gmra.mrb[14].mxu0 %vm10219_vm9, %v7722_v46 }
  0xec   : > { %2080 = vperm.xlu1 %6547, %v7889_v1   ;;  %1318 = vmatprep.mubr.f32.mxu0 %v7025_v6 }
  0xef   : > { %5625 = vmatmul.mubr.msk.f32.gmra.mrb[16].mxu0 %vm10219_vm9, %v7730_v48 }
  0xf0   : > { %6548 = vset.pattern.permute.xlu1 %v10178_v44  ;;  %1324 = vmatprep.mubr.f32.mxu0 %v7025_v6 }
  0xf1   : > { %2516 = vperm.xlu1 %6548, %v7666_v35  }
  0xf3   : > { %5626 = vmatmul.mubr.msk.f32.gmra.mrb[18].mxu0 %vm10219_vm9, %v7740_v49 }
  0xf4   : > { %1330 = vmatprep.mubr.f32.mxu0 %v7025_v6 }
  0xf5   : > { %6549 = vset.pattern.permute.xlu1 %v10176_v59 }
  0xf6   : > { %2734 = vperm.xlu1 %6549, %v7573_v13  }
  0xf7   : > { %5627 = vmatmul.mubr.msk.f32.gmra.mrb[20].mxu0 %vm10219_vm9, %v7757_v52 }
  0xf8   : > { %1336 = vmatprep.mubr.f32.mxu0 %v7025_v6 }
  0xfa   : > { %6550 = vset.pattern.permute.xlu1 %v10180_v7 }
  0xfb   : > { %2083 = vperm.xlu1 %6550, %v7913_v3   ;;  %5628 = vmatmul.mubr.msk.f32.gmra.mrb[22].mxu0 %vm10219_vm9, %v7766_v53 }
  0xfc   : > { %1342 = vmatprep.mubr.f32.mxu0 %v7025_v6 }
  0xfe   : > { %v7920_v5 = vpop.permute.xlu1 %2168 }
  0xff   : > { %6551 = vset.pattern.permute.xlu1 %v10178_v44  ;;  %5629 = vmatmul.mubr.msk.f32.gmra.mrb[24].mxu0 %vm10219_vm9, %v7779_v56  ;;  %vm2215_vm12 = vcmp.eq.s32.totalorder %v7920_v5, 1 }
 0x100   : > { %2519 = vperm.xlu1 %6551, %v7751_v51   ;;  %1348 = vmatprep.mubr.f32.mxu0 %v7025_v6 }
 0x103   : > { %5630 = vmatmul.mubr.msk.f32.gmra.mrb[26].mxu0 %vm10219_vm9, %v7783_v57  ;;  %v7929_v9 = vpop.permute.xlu1 %2062 }
 0x104   : > { %6552 = vset.pattern.permute.xlu1 %v10184_v4  ;;  %1354 = vmatprep.mubr.f32.mxu0 %v7025_v6  ;;  %vm2105_vm7 = vcmp.eq.s32.totalorder %v7929_v9, 1 }
 0x105   : > { %2192 = vperm.xlu1 %6552, %v7889_v1  }
 0x107   : > { %5631 = vmatmul.mubr.msk.f32.gmra.mrb[28].mxu0 %vm10219_vm9, %v7788_v58  ;;  %v7936_v10 = vpop.permute.xlu1 %2065 }
 0x108   : > { %10247 = vst [vmem:[#allocation17_spill] sm:$0xff] %v7936_v10  ;;  %1360 = vmatprep.mubr.f32.mxu0 %v7025_v6  ;;  %v2017_v6 = vld [vmem:[%s10149_s1 + $0x50] sm:$0xff] }
 0x109   : > { %6553 = vset.pattern.permute.xlu1 %v10182_v55  ;;  %vm2033_vm15 = vcmp.gt.f32.partialorder %v2017_v6, 0.5 }
 0x10a   : > { %2628 = vperm.xlu1 %6553, %v7666_v35   ;;  %v7959_v15 = vsel %vm2033_vm15, 1, %v10180_v7 }
 0x10b   : > { %5632 = vmatmul.mubr.msk.f32.gmra.mrb[30].mxu0 %vm10219_vm9, %v7801_v60 }
 0x10c   : > { %v7943_v11 = vpop.permute.xlu1 %2174 }
 0x10d   : > { %vm2217_vm10 = vcmp.eq.s32.totalorder %v7943_v11, 1 }
 0x10e   : > { %6554 = vset.pattern.permute.xlu1 %v10173_v63 }
 0x10f   : > { %2846 = vperm.xlu1 %6554, %v7573_v13  }
 0x111   : > { %v7947_v12 = vpop.permute.xlu1 %2395 }
 0x112   : > { %10248 = vst [vmem:[#allocation18_spill] sm:$0xff] %v7947_v12 }
 0x113   : > { %6555 = vset.pattern.permute.xlu1 %v10184_v4 }
 0x114   : > { %2195 = vperm.xlu1 %6555, %v7913_v3  }
 0x116   : > { %v7954_v14 = vpop.permute.xlu1 %2286 }
 0x117   : > { %vm2329_vm11 = vcmp.eq.s32.totalorder %v7954_v14, 1 }
 0x118   : > { %6556 = vset.pattern.permute.xlu1 %v10182_v55 }
 0x119   : > { %2631 = vperm.xlu1 %6556, %v7751_v51  }
 0x11b   : > { %v7961_v13 = vpop.permute.xlu1 %2504 }
 0x11c   : > { %vm2551_vm2 = vcmp.eq.s32.totalorder %v7961_v13, 1 }
 0x11d   : > { %6557 = vset.pattern.permute.xlu1 %v10180_v7 }
 0x11e   : > { %2086 = vperm.xlu1 %6557, %v7959_v15  }
 0x120   : > { %v7965_v16 = vpop.permute.xlu1 %2289 }
 0x121   : > { %10249 = vst [vmem:[#allocation19_spill] sm:$0xff] %v7965_v16 }
 0x122   : > { %6558 = vset.pattern.permute.xlu1 %v10178_v44 }
 0x123   : > { %2522 = vperm.xlu1 %6558, %v7769_v54  }
 0x125   : > { %v7972_v18 = vpop.permute.xlu1 %2398 }
 0x126   : > { %vm2441_vm13 = vcmp.eq.s32.totalorder %v7972_v18, 1 }
 0x127   : > { %6559 = vset.pattern.permute.xlu1 %v10176_v59 }
 0x128   : > { %2740 = vperm.xlu1 %6559, %v7666_v35  }
 0x12a   : > { %v7979_v21 = vpop.permute.xlu1 %2616 }
 0x12c   : > { %6560 = vset.pattern.permute.xlu1 %v10180_v7 }
 0x12d   : > { %2089 = vperm.xlu1 %6560, %v7977_v20  }
 0x12f   : > { %v7983_v22 = vpop.permute.xlu1 %2183 }
 0x130   : > { %10250 = vst [vmem:[#allocation20_spill] sm:$0xff] %v7983_v22 }
 0x131   : > { %6561 = vset.pattern.permute.xlu1 %v10178_v44 }
 0x132   : > { %2525 = vperm.xlu1 %6561, %v7826_v62  }
 0x134   : > { %v7987_v23 = vpop.permute.xlu1 %2619 }
 0x135   : > { %10251 = vst [vmem:[#allocation21_spill] sm:$0xff] %v7987_v23 }
 0x136   : > { %6562 = vset.pattern.permute.xlu1 %v10184_v4 }
 0x137   : > { %2198 = vperm.xlu1 %6562, %v7959_v15  }
 0x139   : > { %v7992_v24 = vpop.permute.xlu1 %2292 }
 0x13b   : > { %6563 = vset.pattern.permute.xlu1 %v10182_v55 }
 0x13c   : > { %2634 = vperm.xlu1 %6563, %v7769_v54  }
 0x13e   : > { %v7997_v26 = vpop.permute.xlu1 %2510 }
 0x13f   : > { %vm2553_vm15 = vcmp.eq.s32.totalorder %v7997_v26, 1 }
 0x140   : > { %6564 = vset.pattern.permute.xlu1 %v10173_v63 }
 0x141   : > { %2852 = vperm.xlu1 %6564, %v7666_v35  }
 0x143   : > { %v8004_v28 = vpop.permute.xlu1 %2077 }
 0x144   : > { %10252 = vst [vmem:[#allocation22_spill] sm:$0xff] %v8004_v28 }
 0x145   : > { %6565 = vset.pattern.permute.xlu1 %v10184_v4 }
 0x146   : > { %2201 = vperm.xlu1 %6565, %v7977_v20  }
 0x148   : > { %v8011_v30 = vpop.permute.xlu1 %2513 }
 0x149   : > { %10253 = vst [vmem:[#allocation23_spill] sm:$0xff] %v8011_v30 }
 0x14a   : > { %6566 = vset.pattern.permute.xlu1 %v10182_v55 }
 0x14b   : > { %2637 = vperm.xlu1 %6566, %v7826_v62  }
 0x14d   : > { %v8015_v31 = vpop.permute.xlu1 %2731 }
 0x14e   : > { %10254 = vst [vmem:[#allocation24_spill] sm:$0xff] %v8015_v31 }
 0x14f   : > { %6567 = vset.pattern.permute.xlu1 %v10180_v7 }
 0x150   : > { %2092 = vperm.xlu1 %6567, %v8009_v29  }
 0x152   : > { %v8023_v33 = vpop.permute.xlu1 %2186 }
 0x154   : > { %6568 = vset.pattern.permute.xlu1 %v10178_v44 }
 0x155   : > { %2528 = vperm.xlu1 %6568, %v7889_v1  }
 0x157   : > { %v8031_v37 = vpop.permute.xlu1 %2622 }
 0x159   : > { %6569 = vset.pattern.permute.xlu1 %v10176_v59 }
 0x15a   : > { %2746 = vperm.xlu1 %6569, %v7769_v54  }
 0x15c   : > { %v8035_v38 = vpop.permute.xlu1 %2840 }
 0x15e   : > { %6570 = vset.pattern.permute.xlu1 %v10180_v7 }
 0x15f   : > { %2095 = vperm.xlu1 %6570, %v8027_v36  }
 0x161   : > { %v8039_v42 = vpop.permute.xlu1 %2189 }
 0x162   : > { %10255 = vst [vmem:[#allocation25_spill] sm:$0xff] %v8039_v42 }
 0x163   : > { %6571 = vset.pattern.permute.xlu1 %v10178_v44 }
 0x164   : > { %2531 = vperm.xlu1 %6571, %v7913_v3  }
 0x166   : > { %v6048_v40 = vpop.f32.mrb[8].mxu1  ;;  %v8043_v47 = vpop.permute.xlu1 %2625 }
 0x167   : > { %v1433_v41 = vpop.f32.mrb[9].mxu1  ;;  %10256 = vst [vmem:[#allocation26_spill] sm:$0xff] %v8043_v47 }
 0x168   : > { %6572 = vset.pattern.permute.xlu1 %v10184_v4 }
 0x169   : > { %2204 = vperm.xlu1 %6572, %v8009_v29  }
 0x16b   : > { %v6051_v43 = vpop.f32.mrb[10].mxu1  ;;  %v8046_v52 = vpop.permute.xlu1 %2080 }
 0x16c   : > { %v1443_v45 = vpop.f32.mrb[11].mxu1  ;;  %10257 = vst [vmem:[#allocation27_spill] sm:$0xff] %v8046_v52 }
 0x16d   : > { %6573 = vset.pattern.permute.xlu1 %v10182_v55 }
 0x16e   : > { %2640 = vperm.xlu1 %6573, %v7889_v1  }
 0x16f   : > { %v6054_v46 = vpop.f32.mrb[12].mxu1 }
 0x170   : > { %v1453_v48 = vpop.f32.mrb[13].mxu1  ;;  %v8050_v57 = vpop.permute.xlu1 %2516 }
 0x172   : > { %6574 = vset.pattern.permute.xlu1 %v10173_v63 }
 0x173   : > { %v6057_v49 = vpop.f32.mrb[14].mxu1 }
 0x174   : > { %v1463_v50 = vpop.f32.mrb[15].mxu1 }
 0x175   : > { %v8052_v58 = vpop.permute.xlu1 %2734 }
 0x177   : > { %v6060_v53 = vpop.f32.mrb[0].mxu1 }
 0x178   : > { %1961 = vst.msk [vmem:[#allocation2 + $0x558] sm:$0xff] %vm1512_vm4, %v6060_v53  ;;  %v1473_v56 = vpop.f32.mrb[1].mxu1 }
 0x179   : > { %1960 = vst.msk [vmem:[#allocation2 + $0x550] sm:$0xff] %vm1512_vm4, %v1473_v56 }
 0x17a   : > { %v8054_v60 = vpop.permute.xlu1 %2083 }
 0x17b   : > { %10258 = vst [vmem:[#allocation28_spill] sm:$0xff] %v8054_v60  ;;  %v8208_v60 = vpop.permute.xlu0 %2171 }
 0x17c   : > { %10276 = vst [vmem:[#allocation46_spill] sm:$0xff] %v8208_v60 }
 0x17f   : > { %v8056_v61 = vpop.permute.xlu1 %2519 }
 0x180   : > { %10259 = vst [vmem:[#allocation29_spill] sm:$0xff] %v8056_v61 }
 0x184   : > { %v8058_v17 = vpop.permute.xlu1 %2192 }
 0x185   : > { %10260 = vst [vmem:[#allocation30_spill] sm:$0xff] %v8058_v17 }
 0x189   : > { %v8063_v63 = vpop.permute.xlu1 %2628 }
 0x192   : > { %v6022_v0 = vpop.f32.mrb[32].mxu0 }
 0x193   : > { %v1439_v2 = vadd.f32 %v6048_v40, %v6022_v0  ;;  %v1068_v6 = vpop.f32.mrb[33].mxu0 }
 0x194   : > { %v8067_v6 = vpop.permute.xlu1 %2846 }
 0x195   : > { %1953 = vst.msk [vmem:[#allocation2 + $0x518] sm:$0xff] %vm1512_vm4, %v1439_v2 }
 0x196   : > { %v6025_v27 = vpop.f32.mrb[34].mxu0 }
 0x197   : > { %v1449_v32 = vadd.f32 %v6051_v43, %v6025_v27  ;;  %v1078_v41 = vpop.f32.mrb[35].mxu0 }
 0x198   : > { %v1444_v53 = vadd.f32 %v1443_v45, %v1078_v41 }
 0x199   : > { %1955 = vst.msk [vmem:[#allocation2 + $0x528] sm:$0xff] %vm1512_vm4, %v1449_v32 }
 0x19a   : > { %1954 = vst.msk [vmem:[#allocation2 + $0x520] sm:$0xff] %vm1512_vm4, %v1444_v53  ;;  %v6028_v56 = vpop.f32.mrb[36].mxu0 }
 0x19b   : > { %v1459_v34 = vadd.f32 %v6054_v46, %v6028_v56  ;;  %v1088_v59 = vpop.f32.mrb[37].mxu0  ;;  %v8081_v46 = vld [vmem:[%s10152_s4] ss:$0 sm:$0xff] }
 0x19c   : > { %v1454_v44 = vadd.f32 %v1453_v48, %v1088_v59  ;;  %v8076_v59 = vpop.permute.xlu1 %2195 }
 0x19d   : > { %1957 = vst.msk [vmem:[#allocation2 + $0x538] sm:$0xff] %vm1512_vm4, %v1459_v34  ;;  %10262 = vst [vmem:[#allocation32_spill] sm:$0xff] %v8076_v59 }
 0x19e   : > { %1956 = vst.msk [vmem:[#allocation2 + $0x530] sm:$0xff] %vm1512_vm4, %v1454_v44  ;;  %v6031_v40 = vpop.f32.mrb[38].mxu0 }
 0x19f   : > { %v1469_v0 = vadd.f32 %v6057_v49, %v6031_v40  ;;  %v1098_v2 = vpop.f32.mrb[39].mxu0 }
 0x1a0   : > { %v1464_v43 = vadd.f32 %v1463_v50, %v1098_v2  ;;  %v8096_v32 = vpop.permute.xlu1 %2631 }
 0x1a1   : > { %1959 = vst.msk [vmem:[#allocation2 + $0x548] sm:$0xff] %vm1512_vm4, %v1469_v0  ;;  %10264 = vst [vmem:[#allocation34_spill] sm:$0xff] %v8096_v32 }
 0x1a2   : > { %1958 = vst.msk [vmem:[#allocation2 + $0x540] sm:$0xff] %vm1512_vm4, %v1464_v43  ;;  %v1272_v45 = vpop.f32.mrb[0].mxu0 }
 0x1a3   : > { %1513 = vst.msk [vmem:[#allocation2 + $0x10] sm:$0xff] %vm1512_vm4, %v1272_v45  ;;  %1675 = vrot.lane.b32.xlu0 %v1272_v45, %s7033_s25  ;;  %1545 = vrot.lane.b32.xlu1 %v1272_v45, %s7034_s28  ;;  %v8074_v34 = vpop.f32.mrb[1].mxu0 }
 0x1a4   : > { %10261 = vst [vmem:[#allocation31_spill] sm:$0xff] %v8074_v34  ;;  %v8110_v0 = vpop.permute.xlu1 %2086 }
 0x1a5   : > { %10266 = vst [vmem:[#allocation36_spill] sm:$0xff] %v8110_v0 }
 0x1a6   : > { %v1278_v44 = vpop.f32.mrb[2].mxu0 }
 0x1a7   : > { %1514 = vst.msk [vmem:[#allocation2 + $0x18] sm:$0xff] %vm1512_vm4, %v1278_v44  ;;  %1610 = vrot.lane.b32.xlu1 %v1272_v45, %s7035_s29  ;;  %1756 = vrot.lane.b32.xlu0 %v8074_v34, %s7034_s28  ;;  %v1280_v48 = vpop.f32.mrb[3].mxu0 }
 0x1a8   : > { %v8088_v49 = vadd.f32 %v8081_v46, %v1280_v48  ;;  %v8132_v7 = vpop.permute.xlu1 %2522 }
 0x1a9   : > { %10268 = vst [vmem:[#allocation38_spill] sm:$0xff] %v8132_v7 }
 0x1aa   : > { %10263 = vst [vmem:[#allocation33_spill] sm:$0xff] %v8088_v49  ;;  %v1284_v50 = vpop.f32.mrb[4].mxu0 }
 0x1ab   : > { %1515 = vst.msk [vmem:[#allocation2 + $0x20] sm:$0xff] %vm1512_vm4, %v1284_v50  ;;  %1821 = vrot.lane.b32.xlu0 %v8074_v34, %s7035_s29  ;;  %1612 = vrot.lane.b32.xlu1 %v1278_v44, %s7035_s29  ;;  %v8094_v27 = vpop.f32.mrb[5].mxu0 }
 0x1ac   : > { %v8144_v32 = vpop.permute.xlu1 %2740 }
 0x1ae   : > { %v8098_v41 = vpop.f32.mrb[6].mxu0 }
 0x1af   : > { %1516 = vst.msk [vmem:[#allocation2 + $0x28] sm:$0xff] %vm1512_vm4, %v8098_v41  ;;  %1547 = vrot.lane.b32.xlu1 %v1278_v44, %s7034_s28  ;;  %1825 = vrot.lane.b32.xlu0 %v8094_v27, %s7035_s29  ;;  %v1292_v53 = vpop.f32.mrb[7].mxu0 }
 0x1b0   : > { %v8106_v56 = vadd.f32 %v8081_v46, %v1292_v53 }
 0x1b2   : > { %10265 = vst [vmem:[#allocation35_spill] sm:$0xff] %v8106_v56  ;;  %v8108_v40 = vpop.f32.mrb[8].mxu0 }
 0x1b3   : > { %1517 = vst.msk [vmem:[#allocation2 + $0x30] sm:$0xff] %vm1512_vm4, %v8108_v40  ;;  %1677 = vrot.lane.b32.xlu1 %v1278_v44, %s7033_s25  ;;  %1890 = vrot.lane.b32.xlu0 %v8094_v27, %s7033_s25  ;;  %v8117_v2 = vpop.f32.mrb[9].mxu0 }
 0x1b6   : > { %v8119_v43 = vpop.f32.mrb[10].mxu0 }
 0x1b7   : > { %1518 = vst.msk [vmem:[#allocation2 + $0x38] sm:$0xff] %vm1512_vm4, %v8119_v43  ;;  %1758 = vrot.lane.b32.xlu1 %v1280_v48, %s7034_s28  ;;  %1616 = vrot.lane.b32.xlu0 %v8098_v41, %s7035_s29  ;;  %v8126_v45 = vpop.f32.mrb[11].mxu0 }
 0x1b8   : > { %v8130_v44 = vadd.f32 %v8081_v46, %v8126_v45 }
 0x1ba   : > { %10267 = vst [vmem:[#allocation37_spill] sm:$0xff] %v8130_v44  ;;  %v8134_v55 = vpop.f32.mrb[12].mxu0 }
 0x1bb   : > { %1519 = vst.msk [vmem:[#allocation2 + $0x40] sm:$0xff] %vm1512_vm4, %v8134_v55  ;;  %1823 = vrot.lane.b32.xlu1 %v1280_v48, %s7035_s29  ;;  %1762 = vrot.lane.b32.xlu0 %v1292_v53, %s7034_s28  ;;  %v8140_v4 = vpop.f32.mrb[13].mxu0 }
 0x1be   : > { %v8142_v39 = vpop.f32.mrb[14].mxu0 }
 0x1bf   : > { %1520 = vst.msk [vmem:[#allocation2 + $0x48] sm:$0xff] %vm1512_vm4, %v8142_v39  ;;  %1888 = vrot.lane.b32.xlu1 %v1280_v48, %s7033_s25  ;;  %1827 = vrot.lane.b32.xlu0 %v1292_v53, %s7035_s29  ;;  %v8150_v61 = vpop.f32.mrb[15].mxu0  ;;  %v8164_v48 = vpop.permute.xlu1 %2089 }
 0x1c0   : > { %v8154_v47 = vadd.f32 %v8081_v46, %v8150_v61  ;;  %10270 = vst [vmem:[#allocation40_spill] sm:$0xff] %v8164_v48 }
 0x1c2   : > { %10269 = vst [vmem:[#allocation39_spill] sm:$0xff] %v8154_v47  ;;  %v8156_v31 = vpop.f32.mrb[16].mxu0 }
 0x1c3   : > { %1521 = vst.msk [vmem:[#allocation2 + $0x50] sm:$0xff] %vm1512_vm4, %v8156_v31  ;;  %1549 = vrot.lane.b32.xlu1 %v1284_v50, %s7034_s28  ;;  %1892 = vrot.lane.b32.xlu0 %v1292_v53, %s7033_s25  ;;  %v8162_v59 = vpop.f32.mrb[17].mxu0  ;;  %v8181_v23 = vpop.permute.xlu1 %2525 }
 0x1c4   : > { %10272 = vst [vmem:[#allocation42_spill] sm:$0xff] %v8181_v23 }
 0x1c6   : > { %v8166_v44 = vpop.f32.mrb[18].mxu0 }
 0x1c7   : > { %1522 = vst.msk [vmem:[#allocation2 + $0x58] sm:$0xff] %vm1512_vm4, %v8166_v44  ;;  %1614 = vrot.lane.b32.xlu1 %v1284_v50, %s7035_s29  ;;  %1553 = vrot.lane.b32.xlu0 %v8108_v40, %s7034_s28  ;;  %v8173_v47 = vpop.f32.mrb[19].mxu0 }
 0x1c8   : > { %v8177_v30 = vadd.f32 %v8081_v46, %v8173_v47 }
 0x1ca   : > { %10271 = vst [vmem:[#allocation41_spill] sm:$0xff] %v8177_v30  ;;  %v8179_v53 = vpop.f32.mrb[20].mxu0  ;;  %v8204_v30 = vpop.permute.xlu1 %2198 }
 0x1cb   : > { %1523 = vst.msk [vmem:[#allocation2 + $0x60] sm:$0xff] %vm1512_vm4, %v8179_v53  ;;  %1679 = vrot.lane.b32.xlu1 %v1284_v50, %s7033_s25  ;;  %1829 = vrot.lane.b32.xlu0 %v8117_v2, %s7035_s29  ;;  %v8188_v48 = vpop.f32.mrb[21].mxu0  ;;  %10275 = vst [vmem:[#allocation45_spill] sm:$0xff] %v8204_v30 }
 0x1cc   : > { %10273 = vst [vmem:[#allocation43_spill] sm:$0xff] %v8188_v48 }
 0x1ce   : > { %v8190_v56 = vpop.f32.mrb[22].mxu0  ;;  %v8224_v22 = vpop.permute.xlu1 %2634 }
 0x1cf   : > { %1524 = vst.msk [vmem:[#allocation2 + $0x68] sm:$0xff] %vm1512_vm4, %v8190_v56  ;;  %1760 = vrot.lane.b32.xlu1 %v8094_v27, %s7034_s28  ;;  %1894 = vrot.lane.b32.xlu0 %v8117_v2, %s7033_s25  ;;  %v8198_v23 = vpop.f32.mrb[23].mxu0  ;;  %10278 = vst [vmem:[#allocation48_spill] sm:$0xff] %v8224_v22 }
 0x1d0   : > { %v8202_v50 = vadd.f32 %v8081_v46, %v8198_v23 }
 0x1d2   : > { %10274 = vst [vmem:[#allocation44_spill] sm:$0xff] %v8202_v50  ;;  %v8206_v42 = vpop.f32.mrb[24].mxu0 }
 0x1d3   : > { %1525 = vst.msk [vmem:[#allocation2 + $0x70] sm:$0xff] %vm1512_vm4, %v8206_v42  ;;  %1551 = vrot.lane.b32.xlu1 %v8098_v41, %s7034_s28  ;;  %1555 = vrot.lane.b32.xlu0 %v8119_v43, %s7034_s28  ;;  %v8216_v28 = vpop.f32.mrb[25].mxu0 }
 0x1d4   : > { %v8220_v50 = vadd.f32 %v8081_v46, %v8216_v28 }
 0x1d6   : > { %10277 = vst [vmem:[#allocation47_spill] sm:$0xff] %v8220_v50  ;;  %v8222_v49 = vpop.f32.mrb[26].mxu0  ;;  %v8238_v50 = vpop.permute.xlu0 %2177 }
 0x1d7   : > { %1526 = vst.msk [vmem:[#allocation2 + $0x78] sm:$0xff] %vm1512_vm4, %v8222_v49  ;;  %1681 = vrot.lane.b32.xlu1 %v8098_v41, %s7033_s25  ;;  %1831 = vrot.lane.b32.xlu0 %v8126_v45, %s7035_s29  ;;  %v8232_v16 = vpop.f32.mrb[27].mxu0  ;;  %10280 = vst [vmem:[#allocation50_spill] sm:$0xff] %v8238_v50 }
 0x1d8   : > { %v8236_v60 = vadd.f32 %v8081_v46, %v8232_v16 }
 0x1da   : > { %10279 = vst [vmem:[#allocation49_spill] sm:$0xff] %v8236_v60  ;;  %v8240_v12 = vpop.f32.mrb[28].mxu0  ;;  %v8254_v60 = vpop.permute.xlu1 %2852 }
 0x1db   : > { %1527 = vst.msk [vmem:[#allocation2 + $0x80] sm:$0xff] %vm1512_vm4, %v8240_v12  ;;  %1618 = vrot.lane.b32.xlu1 %v8108_v40, %s7035_s29  ;;  %1896 = vrot.lane.b32.xlu0 %v8126_v45, %s7033_s25  ;;  %v8248_v41 = vpop.f32.mrb[29].mxu0  ;;  %v8258_v30 = vpop.permute.xlu0 %2180 }
 0x1dc   : > { %v8252_v10 = vadd.f32 %v8081_v46, %v8248_v41 }
 0x1de   : > { %10281 = vst [vmem:[#allocation51_spill] sm:$0xff] %v8252_v10  ;;  %v8256_v50 = vpop.f32.mrb[30].mxu0  ;;  %v8270_v7 = vpop.permute.xlu1 %2201 }
 0x1df   : > { %10282 = vst [vmem:[#allocation52_spill] sm:$0xff] %v8256_v50  ;;  %1683 = vrot.lane.b32.xlu1 %v8108_v40, %s7033_s25  ;;  %1557 = vrot.lane.b32.xlu0 %v8134_v55, %s7034_s28  ;;  %v8264_v0 = vpop.f32.mrb[31].mxu0  ;;  %10284 = vst [vmem:[#allocation54_spill] sm:$0xff] %v8270_v7  ;;  %v8276_v10 = vpop.permute.xlu0 %2056 }
 0x1e0   : > { %v8268_v22 = vadd.f32 %v8081_v46, %v8264_v0  ;;  %vm2103_vm8 = vcmp.eq.s32.totalorder %v8276_v10, 1 }
 0x1e2   : > { %10283 = vst [vmem:[#allocation53_spill] sm:$0xff] %v8268_v22  ;;  %v8278_v40 = vpop.permute.xlu1 %2637 }
 0x1e3   : > { %1764 = vrot.lane.b32.xlu1 %v8117_v2, %s7034_s28  ;;  %1833 = vrot.lane.b32.xlu0 %v8140_v4, %s7035_s29  ;;  %10285 = vst [vmem:[#allocation55_spill] sm:$0xff] %v8278_v40  ;;  %v8284_v17 = vpop.permute.xlu0 %2059 }
 0x1e4   : > { %10286 = vst [vmem:[#allocation56_spill] sm:$0xff] %v8284_v17 }
 0x1e6   : > { %v8292_v7 = vpop.permute.xlu1 %2092 }
 0x1e7   : > { %1620 = vrot.lane.b32.xlu1 %v8119_v43, %s7035_s29  ;;  %1898 = vrot.lane.b32.xlu0 %v8140_v4, %s7033_s25  ;;  %v8290_v22 = vpop.permute.xlu0 %2068  ;;  %10287 = vst [vmem:[#allocation57_spill] sm:$0xff] %v8292_v7 }
 0x1e8   : > { %vm2107_vm0 = vcmp.eq.s32.totalorder %v8290_v22, 1  ;;  %v8690_v22 = vld [vmem:[%s10152_s4] ss:$0 sm:$0xff] }
 0x1ea   : > { %v8300_v52 = vpop.permute.xlu1 %2528 }
 0x1eb   : > { %1685 = vrot.lane.b32.xlu1 %v8119_v43, %s7033_s25  ;;  %1624 = vrot.lane.b32.xlu0 %v8142_v39, %s7035_s29  ;;  %v8298_v40 = vpop.permute.xlu0 %2071  ;;  %10289 = vst [vmem:[#allocation59_spill] sm:$0xff] %v8300_v52 }
 0x1ec   : > { %10288 = vst [vmem:[#allocation58_spill] sm:$0xff] %v8298_v40 }
 0x1ef   : > { %1766 = vrot.lane.b32.xlu1 %v8126_v45, %s7034_s28  ;;  %1835 = vrot.lane.b32.xlu0 %v8150_v61, %s7035_s29  ;;  %v8310_v43 = vpop.permute.xlu0 %2074  ;;  %v8312_v45 = vpop.permute.xlu1 %2746 }
 0x1f0   : > { %10290 = vst [vmem:[#allocation60_spill] sm:$0xff] %v8312_v45 }
 0x1f3   : > { %1622 = vrot.lane.b32.xlu1 %v8134_v55, %s7035_s29  ;;  %1900 = vrot.lane.b32.xlu0 %v8150_v61, %s7033_s25  ;;  %v8318_v7 = vpop.permute.xlu0 %2728  ;;  %v8320_v40 = vpop.permute.xlu1 %2095 }
 0x1f4   : > { %10291 = vst [vmem:[#allocation61_spill] sm:$0xff] %v8320_v40 }
 0x1f7   : > { %1687 = vrot.lane.b32.xlu1 %v8134_v55, %s7033_s25  ;;  %1561 = vrot.lane.b32.xlu0 %v8156_v31, %s7034_s28  ;;  %v8330_v55 = vpop.permute.xlu0 %2737  ;;  %v8332_v17 = vpop.permute.xlu1 %2531 }
 0x1f8   : > { %10292 = vst [vmem:[#allocation62_spill] sm:$0xff] %v8330_v55  ;;  %10293 = vst [vmem:[#allocation63_spill] sm:$0xff] %v8332_v17 }
 0x1fb   : > { %1768 = vrot.lane.b32.xlu1 %v8140_v4, %s7034_s28  ;;  %1837 = vrot.lane.b32.xlu0 %v8162_v59, %s7035_s29  ;;  %v8338_v40 = vpop.permute.xlu0 %2743  ;;  %v8340_v52 = vpop.permute.xlu1 %2204 }
 0x1fc   : > { %10294 = vst [vmem:[#allocation64_spill] sm:$0xff] %v8338_v40  ;;  %10295 = vst [vmem:[#allocation65_spill] sm:$0xff] %v8340_v52  ;;  %v10301_v40 = vmov 0  }
 0x1ff   : > { %1559 = vrot.lane.b32.xlu1 %v8142_v39, %s7034_s28  ;;  %1902 = vrot.lane.b32.xlu0 %v8162_v59, %s7033_s25 }
 0x203   : > { %1689 = vrot.lane.b32.xlu1 %v8142_v39, %s7033_s25  ;;  %1628 = vrot.lane.b32.xlu0 %v8166_v44, %s7035_s29  ;;  %v8350_v39 = vpop.permute.xlu0 %2749 }
 0x204   : > { %10296 = vst [vmem:[#allocation66_spill] sm:$0xff] %v8350_v39 }
 0x207   : > { %1770 = vrot.lane.b32.xlu1 %v8150_v61, %s7034_s28  ;;  %1839 = vrot.lane.b32.xlu0 %v8173_v47, %s7035_s29  ;;  %v8352_v61 = vpop.permute.xlu1 %2640 }
 0x208   : > { %10297 = vst [vmem:[#allocation67_spill] sm:$0xff] %v8352_v61 }
 0x20b   : > { %1626 = vrot.lane.b32.xlu1 %v8156_v31, %s7035_s29  ;;  %1565 = vrot.lane.b32.xlu0 %v8179_v53, %s7034_s28 }
 0x20f   : > { %1691 = vrot.lane.b32.xlu1 %v8156_v31, %s7033_s25  ;;  %1632 = vrot.lane.b32.xlu0 %v8190_v56, %s7035_s29 }
 0x213   : > { %1772 = vrot.lane.b32.xlu1 %v8162_v59, %s7034_s28  ;;  %1841 = vrot.lane.b32.xlu0 %v8188_v48, %s7035_s29 }
 0x215   : > { %v1676_v52 = vpop.permute.xlu0 %1675  ;;  %v1546_v17 = vpop.permute.xlu1 %1545 }
 0x216   : > { %1724 = vst.msk [vmem:[#allocation2 + $0x1f0] sm:$0xff] %vm1512_vm4, %v1676_v52  ;;  %1594 = vst.msk [vmem:[#allocation2 + $0xb0] sm:$0xff] %vm1512_vm4, %v1546_v17 }
 0x217   : > { %1563 = vrot.lane.b32.xlu1 %v8166_v44, %s7034_s28  ;;  %1569 = vrot.lane.b32.xlu0 %v8206_v42, %s7034_s28 }
 0x219   : > { %v1611_v31 = vpop.permute.xlu1 %1610  ;;  %v1757_v39 = vpop.permute.xlu0 %1756 }
 0x21a   : > { %1659 = vst.msk [vmem:[#allocation2 + $0x150] sm:$0xff] %vm1512_vm4, %v1611_v31  ;;  %1805 = vst.msk [vmem:[#allocation2 + $0x330] sm:$0xff] %vm1512_vm4, %v1757_v39 }
 0x21b   : > { %1693 = vrot.lane.b32.xlu1 %v8166_v44, %s7033_s25  ;;  %1904 = vrot.lane.b32.xlu0 %v8173_v47, %s7033_s25 }
 0x21d   : > { %v1822_v52 = vpop.permute.xlu0 %1821  ;;  %v1613_v17 = vpop.permute.xlu1 %1612 }
 0x21e   : > { %1870 = vst.msk [vmem:[#allocation2 + $0x3d0] sm:$0xff] %vm1512_vm4, %v1822_v52  ;;  %1660 = vst.msk [vmem:[#allocation2 + $0x158] sm:$0xff] %vm1512_vm4, %v1613_v17 }
 0x21f   : > { %1774 = vrot.lane.b32.xlu1 %v8173_v47, %s7034_s28  ;;  %1906 = vrot.lane.b32.xlu0 %v8188_v48, %s7033_s25  ;;  %v10298_v47 = vmov 2  }
 0x221   : > { %v1548_v31 = vpop.permute.xlu1 %1547  ;;  %v1826_v39 = vpop.permute.xlu0 %1825 }
 0x222   : > { %1595 = vst.msk [vmem:[#allocation2 + $0xb8] sm:$0xff] %vm1512_vm4, %v1548_v31  ;;  %1872 = vst.msk [vmem:[#allocation2 + $0x3e0] sm:$0xff] %vm1512_vm4, %v1826_v39 }
 0x223   : > { %1630 = vrot.lane.b32.xlu1 %v8179_v53, %s7035_s29  ;;  %2755 = vperm.xlu0 %6538, %v7913_v3  }
 0x225   : > { %v1678_v44 = vpop.permute.xlu1 %1677  ;;  %v1891_v52 = vpop.permute.xlu0 %1890 }
 0x226   : > { %1725 = vst.msk [vmem:[#allocation2 + $0x1f8] sm:$0xff] %vm1512_vm4, %v1678_v44  ;;  %1937 = vst.msk [vmem:[#allocation2 + $0x480] sm:$0xff] %vm1512_vm4, %v1891_v52 }
 0x227   : > { %1695 = vrot.lane.b32.xlu1 %v8179_v53, %s7033_s25  ;;  %6582 = vset.pattern.permute.xlu0 %v10298_v47 }
 0x228   : > { %2280 = vperm.xlu0 %6582, %v7555_v8  }
 0x229   : > { %v1759_v17 = vpop.permute.xlu1 %1758  ;;  %v1617_v31 = vpop.permute.xlu0 %1616 }
 0x22a   : > { %1806 = vst.msk [vmem:[#allocation2 + $0x338] sm:$0xff] %vm1512_vm4, %v1759_v17  ;;  %1662 = vst.msk [vmem:[#allocation2 + $0x168] sm:$0xff] %vm1512_vm4, %v1617_v31 }
 0x22b   : > { %1776 = vrot.lane.b32.xlu1 %v8188_v48, %s7034_s28 }
 0x22c   : > { %2283 = vperm.xlu0 %6582, %v7622_v25  }
 0x22d   : > { %v1824_v39 = vpop.permute.xlu1 %1823  ;;  %v1763_v44 = vpop.permute.xlu0 %1762 }
 0x22e   : > { %1871 = vst.msk [vmem:[#allocation2 + $0x3d8] sm:$0xff] %vm1512_vm4, %v1824_v39  ;;  %1808 = vst.msk [vmem:[#allocation2 + $0x348] sm:$0xff] %vm1512_vm4, %v1763_v44  ;;  %v10299_v39 = vmov 1  }
 0x22f   : > { %1567 = vrot.lane.b32.xlu1 %v8190_v56, %s7034_s28 }
 0x230   : > { %2295 = vperm.xlu0 %6582, %v7751_v51  }
 0x231   : > { %v1889_v53 = vpop.permute.xlu1 %1888  ;;  %v1828_v52 = vpop.permute.xlu0 %1827 }
 0x232   : > { %1936 = vst.msk [vmem:[#allocation2 + $0x478] sm:$0xff] %vm1512_vm4, %v1889_v53  ;;  %1873 = vst.msk [vmem:[#allocation2 + $0x3e8] sm:$0xff] %vm1512_vm4, %v1828_v52 }
 0x233   : > { %2858 = vperm.xlu1 %6574, %v7769_v54  }
 0x234   : > { %2298 = vperm.xlu0 %6582, %v7769_v54  }
 0x235   : > { %v1550_v17 = vpop.permute.xlu1 %1549  ;;  %v1893_v31 = vpop.permute.xlu0 %1892 }
 0x236   : > { %1596 = vst.msk [vmem:[#allocation2 + $0xc0] sm:$0xff] %vm1512_vm4, %v1550_v17  ;;  %1938 = vst.msk [vmem:[#allocation2 + $0x488] sm:$0xff] %vm1512_vm4, %v1893_v31 }
 0x237   : > { %1697 = vrot.lane.b32.xlu1 %v8190_v56, %s7033_s25  ;;  %v10300_v56 = vmov 6  }
 0x238   : > { %2301 = vperm.xlu0 %6582, %v7826_v62   ;;  %6575 = vset.pattern.permute.xlu1 %v10299_v39 }
 0x239   : > { %v1615_v44 = vpop.permute.xlu1 %1614  ;;  %v1554_v53 = vpop.permute.xlu0 %1553 }
 0x23a   : > { %1661 = vst.msk [vmem:[#allocation2 + $0x160] sm:$0xff] %vm1512_vm4, %v1615_v44  ;;  %1598 = vst.msk [vmem:[#allocation2 + $0xd0] sm:$0xff] %vm1512_vm4, %v1554_v53  ;;  %v2021_v53 = vld [vmem:[%s10149_s1 + $0x70] sm:$0xff] }
 0x23b   : > { %2207 = vperm.xlu1 %6575, %v8027_v36   ;;  %vm2037_vm5 = vcmp.gt.f32.partialorder %v2021_v53, 0.5 }
 0x23c   : > { %2304 = vperm.xlu0 %6582, %v7889_v1   ;;  %v8431_v55 = vsel %vm2037_vm5, 1, %v10301_v40  ;;  %vm2665_vm5 = vcmp.eq.s32.totalorder %v8031_v37, 1 }
 0x23d   : > { %v1680_v52 = vpop.permute.xlu1 %1679  ;;  %v1830_v17 = vpop.permute.xlu0 %1829 }
 0x23e   : > { %1726 = vst.msk [vmem:[#allocation2 + $0x200] sm:$0xff] %vm1512_vm4, %v1680_v52  ;;  %1874 = vst.msk [vmem:[#allocation2 + $0x3f0] sm:$0xff] %vm1512_vm4, %v1830_v17 }
 0x23f   : > { %6576 = vset.pattern.permute.xlu1 %v10300_v56 }
 0x240   : > { %2643 = vperm.xlu1 %6576, %v7913_v3   ;;  %2307 = vperm.xlu0 %6582, %v7913_v3  }
 0x241   : > { %v1761_v31 = vpop.permute.xlu1 %1760  ;;  %v1895_v44 = vpop.permute.xlu0 %1894 }
 0x242   : > { %1807 = vst.msk [vmem:[#allocation2 + $0x340] sm:$0xff] %vm1512_vm4, %v1761_v31  ;;  %1939 = vst.msk [vmem:[#allocation2 + $0x490] sm:$0xff] %vm1512_vm4, %v1895_v44 }
 0x244   : > { %1634 = vrot.lane.b32.xlu1 %v8206_v42, %s7035_s29  ;;  %2310 = vperm.xlu0 %6582, %v7959_v15  }
 0x245   : > { %v1552_v52 = vpop.permute.xlu1 %1551  ;;  %v1556_v17 = vpop.permute.xlu0 %1555  ;;  %6577 = vset.pattern.permute.xlu1 %v10301_v40  ;;  %v2377_v11 = vld [vmem:[#allocation2 + $0x1ff] sm:$0xff] }
 0x246   : > { %1597 = vst.msk [vmem:[#allocation2 + $0xc8] sm:$0xff] %vm1512_vm4, %v1552_v52  ;;  %1599 = vst.msk [vmem:[#allocation2 + $0xd8] sm:$0xff] %vm1512_vm4, %v1556_v17  ;;  %v10302_v17 = vmov 5   ;;  %v2457_v14 = vsel %vm2441_vm13, %v2377_v11, 0.0  ;;  %vm2775_vm13 = vcmp.eq.s32.totalorder %v8318_v7, 1 }
 0x248   : > { %1778 = vrot.lane.b32.xlu1 %v8198_v23, %s7034_s28  ;;  %2313 = vperm.xlu0 %6582, %v7977_v20  }
 0x249   : > { %v1682_v31 = vpop.permute.xlu1 %1681  ;;  %v1832_v44 = vpop.permute.xlu0 %1831 }
 0x24a   : > { %1727 = vst.msk [vmem:[#allocation2 + $0x208] sm:$0xff] %vm1512_vm4, %v1682_v31  ;;  %1875 = vst.msk [vmem:[#allocation2 + $0x3f8] sm:$0xff] %vm1512_vm4, %v1832_v44 }
 0x24c   : > { %2098 = vperm.xlu1 %6577, %v8431_v55   ;;  %2316 = vperm.xlu0 %6582, %v8009_v29  }
 0x24d   : > { %v1619_v52 = vpop.permute.xlu1 %1618  ;;  %v1897_v53 = vpop.permute.xlu0 %1896 }
 0x24e   : > { %1663 = vst.msk [vmem:[#allocation2 + $0x170] sm:$0xff] %vm1512_vm4, %v1619_v52  ;;  %1940 = vst.msk [vmem:[#allocation2 + $0x498] sm:$0xff] %vm1512_vm4, %v1897_v53  ;;  %v10303_v52 = vmov 7   ;;  %v2022_v53 = vld [vmem:[%s10149_s1 + $0x78] sm:$0xff] }
 0x24f   : > { %vm2038_vm6 = vcmp.gt.f32.partialorder %v2022_v53, 0.5 }
 0x250   : > { %6578 = vset.pattern.permute.xlu1 %v10302_v17  ;;  %2319 = vperm.xlu0 %6582, %v8027_v36  }
 0x251   : > { %v1684_v48 = vpop.permute.xlu1 %1683  ;;  %v1558_v61 = vpop.permute.xlu0 %1557  ;;  %2534 = vperm.xlu1 %6578, %v7959_v15  }
 0x252   : > { %1728 = vst.msk [vmem:[#allocation2 + $0x210] sm:$0xff] %vm1512_vm4, %v1684_v48  ;;  %1600 = vst.msk [vmem:[#allocation2 + $0xe0] sm:$0xff] %vm1512_vm4, %v1558_v61 }
 0x254   : > { %1636 = vrot.lane.b32.xlu0 %v8222_v49, %s7035_s29 }
 0x255   : > { %v1765_v31 = vpop.permute.xlu1 %1764  ;;  %v1834_v44 = vpop.permute.xlu0 %1833  ;;  %6579 = vset.pattern.permute.xlu1 %v10303_v52 }
 0x256   : > { %1809 = vst.msk [vmem:[#allocation2 + $0x350] sm:$0xff] %vm1512_vm4, %v1765_v31  ;;  %1876 = vst.msk [vmem:[#allocation2 + $0x400] sm:$0xff] %vm1512_vm4, %v1834_v44  ;;  %2752 = vperm.xlu1 %6579, %v7889_v1   ;;  %v8461_v31 = vsel %vm2038_vm6, 1, %v10301_v40  ;;  %vm2219_vm6 = vcmp.eq.s32.totalorder %v8258_v30, 1 }
 0x258   : > { %1843 = vrot.lane.b32.xlu0 %v8198_v23, %s7035_s29 }
 0x259   : > { %v1621_v48 = vpop.permute.xlu1 %1620  ;;  %v1899_v61 = vpop.permute.xlu0 %1898 }
 0x25a   : > { %1664 = vst.msk [vmem:[#allocation2 + $0x178] sm:$0xff] %vm1512_vm4, %v1621_v48  ;;  %1941 = vst.msk [vmem:[#allocation2 + $0x4a0] sm:$0xff] %vm1512_vm4, %v1899_v61  ;;  %1780 = vrot.lane.b32.xlu1 %v8216_v28, %s7034_s28 }
 0x25b   : > { %6580 = vset.pattern.permute.xlu1 %v10301_v40 }
 0x25c   : > { %1845 = vrot.lane.b32.xlu0 %v8216_v28, %s7035_s29 }
 0x25d   : > { %v1686_v44 = vpop.permute.xlu1 %1685  ;;  %v1625_v45 = vpop.permute.xlu0 %1624 }
 0x25e   : > { %1729 = vst.msk [vmem:[#allocation2 + $0x218] sm:$0xff] %vm1512_vm4, %v1686_v44  ;;  %1666 = vst.msk [vmem:[#allocation2 + $0x188] sm:$0xff] %vm1512_vm4, %v1625_v45  ;;  %2101 = vperm.xlu1 %6580, %v8461_v31  }
 0x260   : > { %1573 = vrot.lane.b32.xlu0 %v8240_v12, %s7034_s28 }
 0x261   : > { %v1767_v53 = vpop.permute.xlu1 %1766  ;;  %v1836_v48 = vpop.permute.xlu0 %1835 }
 0x262   : > { %1810 = vst.msk [vmem:[#allocation2 + $0x358] sm:$0xff] %vm1512_vm4, %v1767_v53  ;;  %1877 = vst.msk [vmem:[#allocation2 + $0x408] sm:$0xff] %vm1512_vm4, %v1836_v48  ;;  %6581 = vset.pattern.permute.xlu1 %v10302_v17  ;;  %v10304_v48 = vmov 3  }
 0x263   : > { %2537 = vperm.xlu1 %6581, %v7977_v20  }
 0x264   : > { %1908 = vrot.lane.b32.xlu0 %v8198_v23, %s7033_s25 }
 0x265   : > { %v1623_v40 = vpop.permute.xlu1 %1622  ;;  %v1901_v45 = vpop.permute.xlu0 %1900 }
 0x266   : > { %1665 = vst.msk [vmem:[#allocation2 + $0x180] sm:$0xff] %vm1512_vm4, %v1623_v40  ;;  %1942 = vst.msk [vmem:[#allocation2 + $0x4a8] sm:$0xff] %vm1512_vm4, %v1901_v45 }
 0x267   : > { %1571 = vrot.lane.b32.xlu1 %v8222_v49, %s7034_s28 }
 0x268   : > { %1784 = vrot.lane.b32.xlu0 %v8248_v41, %s7034_s28  ;;  %6583 = vset.pattern.permute.xlu1 %v10299_v39 }
 0x269   : > { %v1688_v61 = vpop.permute.xlu1 %1687  ;;  %v1562_v44 = vpop.permute.xlu0 %1561 }
 0x26a   : > { %1730 = vst.msk [vmem:[#allocation2 + $0x220] sm:$0xff] %vm1512_vm4, %v1688_v61  ;;  %1602 = vst.msk [vmem:[#allocation2 + $0xf0] sm:$0xff] %vm1512_vm4, %v1562_v44  ;;  %v10305_v44 = vmov 8  }
 0x26b   : > { %1699 = vrot.lane.b32.xlu1 %v8206_v42, %s7033_s25 }
 0x26c   : > { %2325 = vperm.xlu0 %6582, %v8461_v31  }
 0x26d   : > { %v1769_v23 = vpop.permute.xlu1 %1768  ;;  %v1838_v53 = vpop.permute.xlu0 %1837 }
 0x26e   : > { %1811 = vst.msk [vmem:[#allocation2 + $0x360] sm:$0xff] %vm1512_vm4, %v1769_v23  ;;  %1878 = vst.msk [vmem:[#allocation2 + $0x410] sm:$0xff] %vm1512_vm4, %v1838_v53 }
 0x26f   : > { %2210 = vperm.xlu1 %6583, %v8431_v55  }
 0x270   : > { %6590 = vset.pattern.permute.xlu0 %v10304_v48 }
 0x271   : > { %v1560_v40 = vpop.permute.xlu1 %1559  ;;  %v1903_v45 = vpop.permute.xlu0 %1902  ;;  %2392 = vperm.xlu0 %6590, %v7555_v8  }
 0x272   : > { %1601 = vst.msk [vmem:[#allocation2 + $0xe8] sm:$0xff] %vm1512_vm4, %v1560_v40  ;;  %1943 = vst.msk [vmem:[#allocation2 + $0x4b0] sm:$0xff] %vm1512_vm4, %v1903_v45  ;;  %v6063_v40 = vpop.f32.mrb[2].mxu1 }
 0x273   : > { %6584 = vset.pattern.permute.xlu1 %v10300_v56  ;;  %1963 = vst.msk [vmem:[#allocation2 + $0x568] sm:$0xff] %vm1512_vm4, %v6063_v40 }
 0x274   : > { %2646 = vperm.xlu1 %6584, %v7959_v15  }
 0x275   : > { %v1690_v42 = vpop.permute.xlu1 %1689  ;;  %v1629_v61 = vpop.permute.xlu0 %1628  ;;  %2401 = vperm.xlu0 %6590, %v7595_v19  }
 0x276   : > { %1731 = vst.msk [vmem:[#allocation2 + $0x228] sm:$0xff] %vm1512_vm4, %v1690_v42  ;;  %1668 = vst.msk [vmem:[#allocation2 + $0x198] sm:$0xff] %vm1512_vm4, %v1629_v61 }
 0x278   : > { %6585 = vset.pattern.permute.xlu1 %v10305_v44 }
 0x279   : > { %v1771_v23 = vpop.permute.xlu1 %1770  ;;  %v1840_v8 = vpop.permute.xlu0 %1839  ;;  %2864 = vperm.xlu1 %6585, %v7889_v1   ;;  %2404 = vperm.xlu0 %6590, %v7666_v35  }
 0x27a   : > { %1812 = vst.msk [vmem:[#allocation2 + $0x368] sm:$0xff] %vm1512_vm4, %v1771_v23  ;;  %1879 = vst.msk [vmem:[#allocation2 + $0x418] sm:$0xff] %vm1512_vm4, %v1840_v8  ;;  %v1483_v35 = vpop.f32.mrb[3].mxu1 }
 0x27b   : > { %1962 = vst.msk [vmem:[#allocation2 + $0x560] sm:$0xff] %vm1512_vm4, %v1483_v35 }
 0x27d   : > { %v1627_v53 = vpop.permute.xlu1 %1626  ;;  %v1566_v48 = vpop.permute.xlu0 %1565  ;;  %1701 = vrot.lane.b32.xlu1 %v8222_v49, %s7033_s25  ;;  %2407 = vperm.xlu0 %6590, %v7751_v51  }
 0x27e   : > { %1667 = vst.msk [vmem:[#allocation2 + $0x190] sm:$0xff] %vm1512_vm4, %v1627_v53  ;;  %1604 = vst.msk [vmem:[#allocation2 + $0x100] sm:$0xff] %vm1512_vm4, %v1566_v48  ;;  %6586 = vset.pattern.permute.xlu1 %v10299_v39 }
 0x281   : > { %v1692_v45 = vpop.permute.xlu1 %1691  ;;  %v1633_v42 = vpop.permute.xlu0 %1632  ;;  %2213 = vperm.xlu1 %6586, %v8461_v31   ;;  %2410 = vperm.xlu0 %6590, %v7769_v54  }
 0x282   : > { %1732 = vst.msk [vmem:[#allocation2 + $0x230] sm:$0xff] %vm1512_vm4, %v1692_v45  ;;  %1670 = vst.msk [vmem:[#allocation2 + $0x1a8] sm:$0xff] %vm1512_vm4, %v1633_v42  ;;  %v6066_v42 = vpop.f32.mrb[4].mxu1 }
 0x283   : > { %1965 = vst.msk [vmem:[#allocation2 + $0x578] sm:$0xff] %vm1512_vm4, %v6066_v42 }
 0x285   : > { %v1773_v49 = vpop.permute.xlu1 %1772  ;;  %v1842_v61 = vpop.permute.xlu0 %1841  ;;  %6587 = vset.pattern.permute.xlu1 %v10300_v56  ;;  %2413 = vperm.xlu0 %6590, %v7826_v62  }
 0x286   : > { %1813 = vst.msk [vmem:[#allocation2 + $0x370] sm:$0xff] %vm1512_vm4, %v1773_v49  ;;  %1880 = vst.msk [vmem:[#allocation2 + $0x420] sm:$0xff] %vm1512_vm4, %v1842_v61  ;;  %2649 = vperm.xlu1 %6587, %v7977_v20   ;;  %v1493_v49 = vpop.f32.mrb[5].mxu1 }
 0x287   : > { %1964 = vst.msk [vmem:[#allocation2 + $0x570] sm:$0xff] %vm1512_vm4, %v1493_v49 }
 0x289   : > { %v1564_v39 = vpop.permute.xlu1 %1563  ;;  %v1570_v23 = vpop.permute.xlu0 %1569  ;;  %2416 = vperm.xlu0 %6590, %v7889_v1  }
 0x28a   : > { %1603 = vst.msk [vmem:[#allocation2 + $0xf8] sm:$0xff] %vm1512_vm4, %v1564_v39  ;;  %1606 = vst.msk [vmem:[#allocation2 + $0x110] sm:$0xff] %vm1512_vm4, %v1570_v23  ;;  %1638 = vrot.lane.b32.xlu1 %v8240_v12, %s7035_s29 }
 0x28b   : > { %6588 = vset.pattern.permute.xlu1 %v10298_v47 }
 0x28d   : > { %v1694_v54 = vpop.permute.xlu1 %1693  ;;  %v1905_v8 = vpop.permute.xlu0 %1904  ;;  %2419 = vperm.xlu0 %6590, %v7913_v3  }
 0x28e   : > { %1733 = vst.msk [vmem:[#allocation2 + $0x238] sm:$0xff] %vm1512_vm4, %v1694_v54  ;;  %1944 = vst.msk [vmem:[#allocation2 + $0x4b8] sm:$0xff] %vm1512_vm4, %v1905_v8  ;;  %1782 = vrot.lane.b32.xlu1 %v8232_v16, %s7034_s28 }
 0x291   : > { %v1775_v1 = vpop.permute.xlu1 %1774  ;;  %v1907_v53 = vpop.permute.xlu0 %1906  ;;  %2422 = vperm.xlu0 %6590, %v7959_v15  }
 0x292   : > { %1814 = vst.msk [vmem:[#allocation2 + $0x378] sm:$0xff] %vm1512_vm4, %v1775_v1  ;;  %1945 = vst.msk [vmem:[#allocation2 + $0x4c0] sm:$0xff] %vm1512_vm4, %v1907_v53  ;;  %2322 = vperm.xlu1 %6588, %v8431_v55  }
 0x295   : > { %v1631_v47 = vpop.permute.xlu1 %1630  ;;  %2425 = vperm.xlu0 %6590, %v7977_v20  }
 0x296   : > { %1669 = vst.msk [vmem:[#allocation2 + $0x1a0] sm:$0xff] %vm1512_vm4, %v1631_v47  ;;  %6589 = vset.pattern.permute.xlu1 %v10303_v52 }
 0x297   : > { %2758 = vperm.xlu1 %6589, %v7959_v15  }
 0x299   : > { %v1696_v48 = vpop.permute.xlu1 %1695  ;;  %2428 = vperm.xlu0 %6590, %v8009_v29  }
 0x29a   : > { %1734 = vst.msk [vmem:[#allocation2 + $0x240] sm:$0xff] %vm1512_vm4, %v1696_v48 }
 0x29b   : > { %1640 = vrot.lane.b32.xlu1 %v8256_v50, %s7035_s29 }
 0x29c   : > { %6591 = vset.pattern.permute.xlu1 %v10302_v17 }
 0x29d   : > { %v1777_v40 = vpop.permute.xlu1 %1776  ;;  %2431 = vperm.xlu0 %6590, %v8027_v36  }
 0x29e   : > { %1815 = vst.msk [vmem:[#allocation2 + $0x380] sm:$0xff] %vm1512_vm4, %v1777_v40 }
 0x29f   : > { %1910 = vrot.lane.b32.xlu1 %v8216_v28, %s7033_s25  ;;  %v6069_v28 = vpop.f32.mrb[6].mxu1 }
 0x2a0   : > { %1967 = vst.msk [vmem:[#allocation2 + $0x588] sm:$0xff] %vm1512_vm4, %v6069_v28 }
 0x2a1   : > { %v1568_v35 = vpop.permute.xlu1 %1567  ;;  %1703 = vrot.lane.b32.xlu0 %v8240_v12, %s7033_s25  ;;  %v1503_v12 = vpop.f32.mrb[7].mxu1 }
 0x2a2   : > { %1605 = vst.msk [vmem:[#allocation2 + $0x108] sm:$0xff] %vm1512_vm4, %v1568_v35  ;;  %v8553_v45 = vpop.permute.xlu0 %2755  ;;  %1966 = vst.msk [vmem:[#allocation2 + $0x580] sm:$0xff] %vm1512_vm4, %v1503_v12 }
 0x2a3   : > { %2543 = vperm.xlu1 %6591, %v8027_v36  }
 0x2a5   : > { %2434 = vperm.xlu0 %6590, %v8431_v55  }
 0x2a7   : > { %v8559_v61 = vpop.permute.xlu0 %2280  ;;  %6592 = vset.pattern.permute.xlu1 %v10303_v52 }
 0x2a8   : > { %2761 = vperm.xlu1 %6592, %v7977_v20   ;;  %vm2327_vm14 = vcmp.eq.s32.totalorder %v8559_v61, 1  ;;  %v1995_v61 = vld [vmem:[#allocation2 + $0x27] sm:$0xff] }
 0x2a9   : > { %1705 = vrot.lane.b32.xlu0 %v8256_v50, %s7033_s25  ;;  %v2123_v5 = vsel %vm2107_vm0, %v1995_v61, 0.0  ;;  %v2156_v50 = vld [vmem:[#allocation2 + $0xd0] sm:$0xff] }
 0x2ab   : > { %v8567_v39 = vpop.permute.xlu0 %2283 }
 0x2ac   : > { %1847 = vrot.lane.b32.xlu1 %v8232_v16, %s7035_s29 }
 0x2ad   : > { %2437 = vperm.xlu0 %6590, %v8461_v31   ;;  %6593 = vset.pattern.permute.xlu1 %v10300_v56 }
 0x2af   : > { %v8573_v23 = vpop.permute.xlu0 %2295 }
 0x2b0   : > { %2652 = vperm.xlu1 %6593, %v8009_v29   ;;  %vm2332_vm9 = vcmp.eq.s32.totalorder %v8573_v23, 1 }
 0x2b1   : > { %6595 = vset.pattern.permute.xlu0 %v10302_v17 }
 0x2b2   : > { %v8577_v54 = vpop.permute.xlu1 %2858  ;;  %2507 = vperm.xlu0 %6595, %v7622_v25  }
 0x2b3   : > { %v8580_v8 = vpop.permute.xlu0 %2298 }
 0x2b4   : > { %6594 = vset.pattern.permute.xlu1 %v10305_v44 }
 0x2b5   : > { %2870 = vperm.xlu1 %6594, %v7959_v15  }
 0x2b6   : > { %v1698_v1 = vpop.permute.xlu1 %1697  ;;  %2540 = vperm.xlu0 %6595, %v8009_v29  }
 0x2b7   : > { %1735 = vst.msk [vmem:[#allocation2 + $0x248] sm:$0xff] %vm1512_vm4, %v1698_v1  ;;  %v8586_v53 = vpop.permute.xlu0 %2301 }
 0x2b9   : > { %1849 = vrot.lane.b32.xlu1 %v8248_v41, %s7035_s29 }
 0x2ba   : > { %v8590_v17 = vpop.permute.xlu1 %2207  ;;  %2546 = vperm.xlu0 %6595, %v8431_v55   ;;  %6596 = vset.pattern.permute.xlu1 %v10300_v56 }
 0x2bb   : > { %v8594_v47 = vpop.permute.xlu0 %2304 }
 0x2bd   : > { %2655 = vperm.xlu1 %6596, %v8027_v36  }
 0x2be   : > { %2549 = vperm.xlu0 %6595, %v8461_v31  }
 0x2bf   : > { %v8598_v15 = vpop.permute.xlu1 %2643  ;;  %v8600_v48 = vpop.permute.xlu0 %2307 }
 0x2c1   : > { %1786 = vrot.lane.b32.xlu1 %v8264_v0, %s7034_s28 }
 0x2c2   : > { %6598 = vset.pattern.permute.xlu0 %v10305_v44  ;;  %6597 = vset.pattern.permute.xlu1 %v10303_v52 }
 0x2c3   : > { %v1635_v40 = vpop.permute.xlu1 %1634  ;;  %v8606_v35 = vpop.permute.xlu0 %2310  ;;  %2843 = vperm.xlu0 %6598, %v7622_v25  }
 0x2c4   : > { %1671 = vst.msk [vmem:[#allocation2 + $0x1b0] sm:$0xff] %vm1512_vm4, %v1635_v40  ;;  %v1993_v40 = vld [vmem:[#allocation2 + $0x17] sm:$0xff] }
 0x2c5   : > { %1912 = vrot.lane.b32.xlu1 %v8232_v16, %s7033_s25 }
 0x2c7   : > { %v1779_v42 = vpop.permute.xlu1 %1778  ;;  %v8612_v49 = vpop.permute.xlu0 %2313  ;;  %2849 = vperm.xlu0 %6598, %v7595_v19  }
 0x2c8   : > { %1816 = vst.msk [vmem:[#allocation2 + $0x388] sm:$0xff] %vm1512_vm4, %v1779_v42 }
 0x2c9   : > { %2764 = vperm.xlu1 %6597, %v8009_v29  }
 0x2cb   : > { %v8617_v28 = vpop.permute.xlu1 %2098  ;;  %v8619_v12 = vpop.permute.xlu0 %2316  ;;  %2855 = vperm.xlu0 %6598, %v7751_v51  }
 0x2cd   : > { %1914 = vrot.lane.b32.xlu1 %v8248_v41, %s7033_s25 }
 0x2cf   : > { %v8624_v25 = vpop.permute.xlu0 %2319  ;;  %2861 = vperm.xlu0 %6598, %v7826_v62  }
 0x2d0   : > { %v8627_v16 = vpop.permute.xlu1 %2534 }
 0x2d1   : > { %2767 = vperm.xlu1 %6597, %v8027_v36  }
 0x2d3   : > { %v1637_v19 = vpop.permute.xlu0 %1636  ;;  %2867 = vperm.xlu0 %6598, %v7913_v3  }
 0x2d4   : > { %1672 = vst.msk [vmem:[#allocation2 + $0x1b8] sm:$0xff] %vm1512_vm4, %v1637_v19  ;;  %v2121_v19 = vsel %vm2105_vm7, %v1993_v40, 0.0  ;;  %v2151_v40 = vld [vmem:[#allocation2 + $0xa8] sm:$0xff]  ;;  %vm2663_vm7 = vcmp.eq.s32.totalorder %v7979_v21, 1  ;;  %v1997_v21 = vld [vmem:[#allocation2 + $0x37] sm:$0xff] }
 0x2d5   : > { %v8632_v1 = vpop.permute.xlu1 %2752  ;;  %6599 = vset.pattern.permute.xlu1 %v10300_v56  ;;  %v2231_v18 = vsel %vm2215_vm12, %v2151_v40, 0.0  ;;  %v1979_v40 = vadd.f32 %v8690_v22, %v8117_v2  ;;  %vm2777_vm12 = vcmp.eq.s32.totalorder %v8052_v58, 1 }
 0x2d6   : > { %2658 = vperm.xlu1 %6599, %v8431_v55  }
 0x2d7   : > { %v1844_v51 = vpop.permute.xlu0 %1843  ;;  %2873 = vperm.xlu0 %6598, %v7977_v20  }
 0x2d8   : > { %1881 = vst.msk [vmem:[#allocation2 + $0x428] sm:$0xff] %vm1512_vm4, %v1844_v51 }
 0x2d9   : > { %v1781_v62 = vpop.permute.xlu1 %1780 }
 0x2da   : > { %1817 = vst.msk [vmem:[#allocation2 + $0x390] sm:$0xff] %vm1512_vm4, %v1781_v62  ;;  %2661 = vperm.xlu1 %6599, %v8461_v31   ;;  %v1977_v62 = vadd.f32 %v8081_v46, %v8094_v27 }
 0x2db   : > { %v1846_v41 = vpop.permute.xlu0 %1845  ;;  %1851 = vrot.lane.b32.xlu0 %v8264_v0, %s7035_s29  ;;  %s7041_s29 = smov 104  }
 0x2dc   : > { %1882 = vst.msk [vmem:[#allocation2 + $0x430] sm:$0xff] %vm1512_vm4, %v1846_v41  ;;  %v2265_v41 = vld [vmem:[#allocation2 + $0x159] sm:$0xff]  ;;  %v2137_v10 = vadd.f32 %v2121_v19, %v1977_v62  ;;  %v2263_v19 = vld [vmem:[#allocation2 + $0x149] sm:$0xff] }
 0x2dd   : > { %v8643_v3 = vpop.permute.xlu1 %2101 }
 0x2de   : > { %6600 = vset.pattern.permute.xlu1 %v10305_v44 }
 0x2df   : > { %v1574_v56 = vpop.permute.xlu0 %1573  ;;  %2876 = vperm.xlu0 %6598, %v8009_v29   ;;  %2879 = vperm.xlu1 %6600, %v8027_v36   ;;  %v1991_v29 = vld [vmem:[#allocation2 + $0x7] sm:$0xff]  ;;  %v2153_v36 = vld [vmem:[#allocation2 + $0xb8] sm:$0xff] }
 0x2e0   : > { %1608 = vst.msk [vmem:[#allocation2 + $0x120] sm:$0xff] %vm1512_vm4, %v1574_v56  ;;  %v2119_v9 = vsel %vm2103_vm8, %v1991_v29, 0.0  ;;  %v2233_v56 = vsel %vm2217_vm10, %v2153_v36, 0.0  ;;  %v2489_v29 = vld [vmem:[#allocation2 + $0x341] sm:$0xff]  ;;  %vm2331_vm8 = vcmp.eq.s32.totalorder %v7992_v24, 1  ;;  %vm2221_vm10 = vcmp.eq.s32.totalorder %v8023_v33, 1 }
 0x2e1   : > { %v2569_v62 = vsel %vm2553_vm15, %v2489_v29, 0.0  ;;  %vm2889_vm15 = vcmp.eq.s32.totalorder %v8067_v6, 1  ;;  %v2825_v24 = vld [vmem:[#allocation2 + $0x529] sm:$0xff] }
 0x2e2   : > { %v8649_v20 = vpop.permute.xlu1 %2537 }
 0x2e3   : > { %v1909_v42 = vpop.permute.xlu0 %1908  ;;  %1916 = vrot.lane.b32.xlu0 %v8264_v0, %s7033_s25  ;;  %6601 = vset.pattern.permute.xlu1 %v10303_v52  ;;  %v1975_v0 = vadd.f32 %v8081_v46, %v8074_v34  ;;  %v2345_v46 = vsel %vm2329_vm11, %v2265_v41, 0.0  ;;  %vm2109_vm11 = vcmp.eq.s32.totalorder %v8310_v43, 1  ;;  %v10336_v34 = vld [vmem:[#allocation23_spill] sm:$0xff] }
 0x2e4   : > { %1946 = vst.msk [vmem:[#allocation2 + $0x4c8] sm:$0xff] %vm1512_vm4, %v1909_v42  ;;  %2770 = vperm.xlu1 %6601, %v8431_v55   ;;  %6602 = vset.pattern.permute.xlu0 %v10303_v52  ;;  %v2249_v42 = vadd.f32 %v2233_v56, %v2137_v10  ;;  %v2601_v10 = vld [vmem:[#allocation2 + $0x3e7] sm:$0xff]  ;;  %v2125_v7 = vsel %vm2109_vm11, %v1997_v21, 0.0 }
 0x2e5   : > { %v2135_v36 = vadd.f32 %v2119_v9, %v1975_v0  ;;  %v2343_v0 = vsel %vm2327_vm14, %v2263_v19, 0.0  ;;  %v2681_v13 = vsel %vm2665_vm5, %v2601_v10, 0.0  ;;  %v2139_v19 = vadd.f32 %v2123_v5, %v1979_v40  ;;  %v2157_v5 = vld [vmem:[#allocation2 + $0xd8] sm:$0xff]  ;;  %v2379_v40 = vld [vmem:[#allocation2 + $0x20f] sm:$0xff]  ;;  %v1999_v21 = vld [vmem:[#allocation2 + $0x47] sm:$0xff] }
 0x2e6   : > { %v1572_v51 = vpop.permute.xlu1 %1571  ;;  %vm2887_vm14 = vcmp.eq.s32.totalorder %v8035_v38, 1  ;;  %vm2667_vm5 = vcmp.eq.s32.totalorder %v8063_v63, 1  ;;  %v2237_v43 = vsel %vm2221_vm10, %v2157_v5, 0.0 }
 0x2e7   : > { %1607 = vst.msk [vmem:[#allocation2 + $0x118] sm:$0xff] %vm1512_vm4, %v1572_v51  ;;  %v1785_v52 = vpop.permute.xlu0 %1784  ;;  %2773 = vperm.xlu0 %6602, %v8461_v31   ;;  %v2247_v9 = vadd.f32 %v2231_v18, %v2135_v36  ;;  %v2713_v18 = vld [vmem:[#allocation2 + $0x488] sm:$0xff] }
 0x2e8   : > { %1819 = vst.msk [vmem:[#allocation2 + $0x3a0] sm:$0xff] %vm1512_vm4, %v1785_v52  ;;  %6603 = vset.pattern.permute.xlu1 %v10305_v44  ;;  %v2793_v10 = vsel %vm2777_vm12, %v2713_v18, 0.0 }
 0x2e9   : > { %2882 = vperm.xlu1 %6603, %v8431_v55   ;;  %v2361_v55 = vadd.f32 %v2345_v46, %v2249_v42  ;;  %v2359_v11 = vadd.f32 %v2343_v0, %v2247_v9  ;;  %v2487_v46 = vld [vmem:[#allocation2 + $0x331] sm:$0xff]  ;;  %v2823_v9 = vld [vmem:[#allocation2 + $0x519] sm:$0xff] }
 0x2ea   : > { %v1700_v27 = vpop.permute.xlu1 %1699  ;;  %v2599_v42 = vld [vmem:[#allocation2 + $0x3d7] sm:$0xff] }
 0x2eb   : > { %1736 = vst.msk [vmem:[#allocation2 + $0x250] sm:$0xff] %vm1512_vm4, %v1700_v27  ;;  %v8674_v51 = vpop.permute.xlu0 %2325  ;;  %6604 = vset.pattern.permute.xlu0 %v10305_v44  ;;  %v2473_v52 = vadd.f32 %v2457_v14, %v2361_v55  ;;  %v2375_v44 = vld [vmem:[#allocation2 + $0x1ef] sm:$0xff]  ;;  %v2567_v55 = vsel %vm2551_vm2, %v2487_v46, 0.0  ;;  %v2711_v0 = vld [vmem:[#allocation2 + $0x478] sm:$0xff]  ;;  %v2679_v2 = vsel %vm2663_vm7, %v2599_v42, 0.0  ;;  %vm2333_vm2 = vcmp.eq.s32.totalorder %v8580_v8, 1 }
 0x2ec   : > { %v2267_v14 = vld [vmem:[#allocation2 + $0x169] sm:$0xff]  ;;  %v2491_v42 = vld [vmem:[#allocation2 + $0x351] sm:$0xff]  ;;  %vm2891_vm7 = vcmp.eq.s32.totalorder %v8254_v60, 1 }
 0x2ed   : > { %2885 = vperm.xlu1 %6603, %v8461_v31   ;;  %v2585_v26 = vadd.f32 %v2569_v62, %v2473_v52  ;;  %v2155_v31 = vld [vmem:[#allocation2 + $0xc8] sm:$0xff]  ;;  %v2347_v52 = vsel %vm2331_vm8, %v2267_v14, 0.0 }
 0x2ee   : > { %v8681_v41 = vpop.permute.xlu1 %2210  ;;  %v2235_v30 = vsel %vm2219_vm6, %v2155_v31, 0.0  ;;  %vm2779_vm6 = vcmp.eq.s32.totalorder %v8144_v32, 1  ;;  %v2159_v8 = vld [vmem:[#allocation2 + $0xe8] sm:$0xff] }
 0x2ef   : > { %v2697_v62 = vadd.f32 %v2681_v13, %v2585_v26  ;;  %v2791_v26 = vsel %vm2775_vm13, %v2711_v0, 0.0  ;;  %v1981_v13 = vadd.f32 %v8690_v22, %v8140_v4  ;;  %v10310_v32 = vld [vmem:[#allocation38_spill] sm:$0xff]  ;;  %vm2335_vm13 = vcmp.eq.s32.totalorder %v8594_v47, 1 }
 0x2f0   : > { %v2393_v56 = vpop.permute.xlu0 %2392  ;;  %vm2557_vm12 = vcmp.eq.s32.totalorder %v10310_v32, 1  ;;  %v2607_v32 = vld [vmem:[#allocation2 + $0x417] sm:$0xff] }
 0x2f1   : > { %vm2439_vm1 = vcmp.eq.s32.totalorder %v2393_v56, 1  ;;  %v2251_v56 = vadd.f32 %v2235_v30, %v2139_v19  ;;  %v2809_v31 = vadd.f32 %v2793_v10, %v2697_v62  ;;  %v2603_v30 = vld [vmem:[#allocation2 + $0x3f7] sm:$0xff]  ;;  %v2141_v0 = vadd.f32 %v2125_v7, %v1981_v13  ;;  %v2605_v13 = vld [vmem:[#allocation2 + $0x407] sm:$0xff] }
 0x2f2   : > { %v2455_v27 = vsel %vm2439_vm1, %v2375_v44, 0.0  ;;  %vm2555_vm1 = vcmp.eq.s32.totalorder %v8050_v57, 1  ;;  %v2905_v57 = vsel %vm2889_vm15, %v2825_v24, 0.0  ;;  %v2683_v6 = vsel %vm2667_vm5, %v2603_v30, 0.0  ;;  %v2827_v24 = vld [vmem:[#allocation2 + $0x539] sm:$0xff] }
 0x2f3   : > { %v2471_v29 = vadd.f32 %v2455_v27, %v2359_v11  ;;  %v8694_v36 = vpop.permute.xlu1 %2646  ;;  %v2363_v58 = vadd.f32 %v2347_v52, %v2251_v56  ;;  %v2571_v38 = vsel %vm2555_vm1, %v2491_v42, 0.0  ;;  %v8725_v4 = vadd.f32 %v2905_v57, %v2809_v31  ;;  %v10309_v56 = vld [vmem:[#allocation30_spill] sm:$0xff] }
 0x2f4   : > { %v8697_v37 = vpop.permute.xlu0 %2401  ;;  %v2253_v33 = vadd.f32 %v2237_v43, %v2141_v0  ;;  %vm2223_vm10 = vcmp.eq.s32.totalorder %v10309_v56, 1  ;;  %v2717_v0 = vld [vmem:[#allocation2 + $0x4a8] sm:$0xff] }
 0x2f5   : > { %v2583_v61 = vadd.f32 %v2567_v55, %v2471_v29  ;;  %v2903_v29 = vsel %vm2887_vm14, %v2823_v9, 0.0  ;;  %10307 = vst [vmem:[#allocation69_spill] sm:$0xff] %v8725_v4 }
 0x2f7   : > { %v2695_v44 = vadd.f32 %v2679_v2, %v2583_v61  ;;  %v2269_v61 = vld [vmem:[#allocation2 + $0x179] sm:$0xff] }
 0x2f8   : > { %v8706_v11 = vpop.permute.xlu1 %2864  ;;  %v2405_v46 = vpop.permute.xlu0 %2404  ;;  %v2715_v2 = vld [vmem:[#allocation2 + $0x498] sm:$0xff]  ;;  %v2349_v63 = vsel %vm2333_vm2, %v2269_v61, 0.0 }
 0x2f9   : > { %v2807_v27 = vadd.f32 %v2791_v26, %v2695_v44  ;;  %vm2443_vm0 = vcmp.eq.s32.totalorder %v2405_v46, 1  ;;  %v10308_v44 = vld [vmem:[#allocation27_spill] sm:$0xff]  ;;  %v2795_v10 = vsel %vm2779_vm6, %v2715_v2, 0.0  ;;  %v2365_v31 = vadd.f32 %v2349_v63, %v2253_v33  ;;  %v10313_v63 = vld [vmem:[#allocation60_spill] sm:$0xff] }
 0x2fa   : > { %v2459_v14 = vsel %vm2443_vm0, %v2379_v40, 0.0  ;;  %vm2111_vm8 = vcmp.eq.s32.totalorder %v10308_v44, 1  ;;  %v2907_v40 = vsel %vm2891_vm7, %v2827_v24, 0.0  ;;  %vm2781_vm15 = vcmp.eq.s32.totalorder %v10313_v63, 1  ;;  %v2829_v44 = vld [vmem:[#allocation2 + $0x549] sm:$0xff] }
 0x2fb   : > { %v8716_v55 = vadd.f32 %v2903_v29, %v2807_v27  ;;  %v2475_v19 = vadd.f32 %v2459_v14, %v2363_v58  ;;  %v2381_v27 = vld [vmem:[#allocation2 + $0x21f] sm:$0xff]  ;;  %v2127_v42 = vsel %vm2111_vm8, %v1999_v21, 0.0  ;;  %v1983_v29 = vadd.f32 %v8690_v22, %v8162_v59 }
 0x2fc   : > { %v1702_v18 = vpop.permute.xlu1 %1701  ;;  %v8723_v62 = vpop.permute.xlu0 %2407  ;;  %v2493_v58 = vld [vmem:[#allocation2 + $0x361] sm:$0xff]  ;;  %vm2893_vm0 = vcmp.eq.s32.totalorder %v8577_v54, 1  ;;  %v2797_v21 = vsel %vm2781_vm15, %v2717_v0, 0.0  ;;  %v10314_v54 = vld [vmem:[#allocation59_spill] sm:$0xff]  ;;  %vm2783_vm6 = vcmp.eq.s32.totalorder %v8632_v1, 1  ;;  %vm2895_vm7 = vcmp.eq.s32.totalorder %v8706_v11, 1 }
 0x2fd   : > { %10306 = vst [vmem:[#allocation68_spill] sm:$0xff] %v8716_v55  ;;  %6606 = vtanh.f32 %v8716_v55  ;;  %v2587_v52 = vadd.f32 %v2571_v38, %v2475_v19  ;;  %1737 = vst.msk [vmem:[#allocation2 + $0x258] sm:$0xff] %vm1512_vm4, %v1702_v18  ;;  %v2239_v19 = vsel %vm2223_vm10, %v2159_v8, 0.0  ;;  %v2573_v57 = vsel %vm2557_vm12, %v2493_v58, 0.0  ;;  %v10312_v38 = vld [vmem:[#allocation48_spill] sm:$0xff]  ;;  %v2271_v18 = vld [vmem:[#allocation2 + $0x189] sm:$0xff] }
 0x2fe   : > { %6608 = vtanh.f32 %v8725_v4  ;;  %vm2669_vm14 = vcmp.eq.s32.totalorder %v10312_v38, 1  ;;  %v2143_v60 = vadd.f32 %v2127_v42, %v1983_v29  ;;  %v2351_v47 = vsel %vm2335_vm13, %v2271_v18, 0.0  ;;  %v10316_v29 = vld [vmem:[#allocation67_spill] sm:$0xff]  ;;  %v2600_v4 = vld [vmem:[#allocation2 + $0x3df] sm:$0xff]  ;;  %v10346_v55 = vld [vmem:[#allocation34_spill] sm:$0xff] }
 0x2ff   : > { %v2699_v9 = vadd.f32 %v2683_v6, %v2587_v52  ;;  %v2685_v2 = vsel %vm2669_vm14, %v2605_v13, 0.0  ;;  %v2909_v8 = vsel %vm2893_vm0, %v2829_v44, 0.0  ;;  %vm2559_vm2 = vcmp.eq.s32.totalorder %v10314_v54, 1  ;;  %v2719_v38 = vld [vmem:[#allocation2 + $0x4b8] sm:$0xff] }
 0x300   : > { %v8735_v26 = vpop.permute.xlu1 %2213  ;;  %v2411_v46 = vpop.permute.xlu0 %2410  ;;  %v2255_v6 = vadd.f32 %v2239_v19, %v2143_v60  ;;  %vm2671_vm5 = vcmp.eq.s32.totalorder %v10316_v29, 1  ;;  %v2831_v60 = vld [vmem:[#allocation2 + $0x559] sm:$0xff]  ;;  %v2799_v0 = vsel %vm2783_vm6, %v2719_v38, 0.0  ;;  %vm2561_vm13 = vcmp.eq.s32.totalorder %v8627_v16, 1 }
 0x301   : > { %v2811_v5 = vadd.f32 %v2795_v10, %v2699_v9  ;;  %vm2445_vm11 = vcmp.eq.s32.totalorder %v2411_v46, 1  ;;  %v2383_v10 = vld [vmem:[#allocation2 + $0x22f] sm:$0xff]  ;;  %v2687_v19 = vsel %vm2671_vm5, %v2607_v32, 0.0  ;;  %v2911_v1 = vsel %vm2895_vm7, %v2831_v60, 0.0  ;;  %v10318_v44 = vld [vmem:[#allocation36_spill] sm:$0xff] }
 0x302   : > { %v2461_v7 = vsel %vm2445_vm11, %v2381_v27, 0.0  ;;  %v2367_v56 = vadd.f32 %v2351_v47, %v2255_v6  ;;  %v2495_v46 = vld [vmem:[#allocation2 + $0x371] sm:$0xff]  ;;  %vm2113_vm8 = vcmp.eq.s32.totalorder %v10318_v44, 1  ;;  %vm2337_vm11 = vcmp.eq.s32.totalorder %v8606_v35, 1  ;;  %v2273_v29 = vld [vmem:[#allocation2 + $0x199] sm:$0xff] }
 0x303   : > { %v8744_v14 = vadd.f32 %v2907_v40, %v2811_v5  ;;  %v2477_v30 = vadd.f32 %v2461_v7, %v2365_v31  ;;  %v2575_v42 = vsel %vm2559_vm2, %v2495_v46, 0.0  ;;  %v2161_v46 = vld [vmem:[#allocation2 + $0xf8] sm:$0xff]  ;;  %vm2673_vm15 = vcmp.eq.s32.totalorder %v8694_v36, 1 }
 0x304   : > { %v8748_v43 = vpop.permute.xlu0 %2413  ;;  %v1994_v44 = vld [vmem:[#allocation2 + $0x1f] sm:$0xff]  ;;  %vm2328_vm7 = vcmp.eq.s32.totalorder %v8567_v39, 1 }
 0x305   : > { %10311 = vst [vmem:[#allocation27_spill] sm:$0xff] %v8744_v14  ;;  %6610 = vtanh.f32 %v8744_v14  ;;  %v2589_v59 = vadd.f32 %v2573_v57, %v2477_v30  ;;  %v8752_v61 = vpop.permute.xlu1 %2649  ;;  %v10337_v39 = vld [vmem:[#allocation37_spill] sm:$0xff] }
 0x307   : > { %v6607_v52 = vpop.eup %6606  ;;  %v2701_v33 = vadd.f32 %v2685_v2, %v2589_v59 }
 0x308   : > { %v2417_v9 = vpop.permute.xlu0 %2416  ;;  %3400 = vrot.lane.b32.xlu0 %v6607_v52, %s7036_s12  ;;  %v6609_v27 = vpop.eup %6608 }
 0x309   : > { %v2813_v24 = vadd.f32 %v2797_v21, %v2701_v33  ;;  %vm2447_vm1 = vcmp.eq.s32.totalorder %v2417_v9, 1  ;;  %v1639_v31 = vpop.permute.xlu1 %1638 }
 0x30a   : > { %v2463_v5 = vsel %vm2447_vm1, %v2383_v10, 0.0  ;;  %1673 = vst.msk [vmem:[#allocation2 + $0x1c0] sm:$0xff] %vm1512_vm4, %v1639_v31 }
 0x30b   : > { %v8759_v58 = vadd.f32 %v2909_v8, %v2813_v24  ;;  %v2479_v40 = vadd.f32 %v2463_v5, %v2367_v56  ;;  %v2001_v56 = vld [vmem:[#allocation2 + $0x57] sm:$0xff]  ;;  %v10319_v5 = vld [vmem:[#allocation45_spill] sm:$0xff] }
 0x30c   : > { %v8761_v7 = vpop.permute.xlu0 %2419  ;;  %3404 = vrot.lane.b32.xlu0 %v6609_v27, %s7036_s12  ;;  %v2129_v31 = vsel %vm2113_vm8, %v2001_v56, 0.0  ;;  %vm2225_vm10 = vcmp.eq.s32.totalorder %v10319_v5, 1  ;;  %v10320_v27 = vld [vmem:[#allocation43_spill] sm:$0xff]  ;;  %v10325_v5 = vld [vmem:[#allocation46_spill] sm:$0xff] }
 0x30d   : > { %10315 = vst [vmem:[#allocation30_spill] sm:$0xff] %v8759_v58  ;;  %6612 = vtanh.f32 %v8759_v58  ;;  %v2591_v13 = vadd.f32 %v2575_v42, %v2479_v40  ;;  %v1783_v30 = vpop.permute.xlu1 %1782  ;;  %v1985_v54 = vadd.f32 %v8690_v22, %v10320_v27  ;;  %v2241_v32 = vsel %vm2225_vm10, %v2161_v46, 0.0  ;;  %v2152_v56 = vld [vmem:[#allocation2 + $0xb0] sm:$0xff]  ;;  %v10339_v58 = vld [vmem:[#allocation24_spill] sm:$0xff] }
 0x30e   : > { %1818 = vst.msk [vmem:[#allocation2 + $0x398] sm:$0xff] %vm1512_vm4, %v1783_v30  ;;  %v1996_v46 = vld [vmem:[#allocation2 + $0x2f] sm:$0xff]  ;;  %vm2216_vm5 = vcmp.eq.s32.totalorder %v10325_v5, 1 }
 0x30f   : > { %v6611_v57 = vpop.eup %6610  ;;  %v2703_v18 = vadd.f32 %v2687_v19, %v2591_v13  ;;  %v2145_v42 = vadd.f32 %v2129_v31, %v1985_v54  ;;  %v2353_v13 = vsel %vm2337_vm11, %v2273_v29, 0.0  ;;  %v10323_v31 = vld [vmem:[#allocation58_spill] sm:$0xff] }
 0x310   : > { %v2423_v59 = vpop.permute.xlu0 %2422  ;;  %3408 = vrot.lane.b32.xlu0 %v6611_v57, %s7036_s12  ;;  %v2385_v57 = vld [vmem:[#allocation2 + $0x23f] sm:$0xff]  ;;  %vm2108_vm1 = vcmp.eq.s32.totalorder %v10323_v31, 1  ;;  %v10326_v27 = vld [vmem:[#allocation50_spill] sm:$0xff] }
 0x311   : > { %v2815_v47 = vadd.f32 %v2799_v0, %v2703_v18  ;;  %v8770_v2 = vpop.permute.xlu1 %2322  ;;  %vm2449_vm12 = vcmp.eq.s32.totalorder %v2423_v59, 1  ;;  %v2257_v19 = vadd.f32 %v2241_v32, %v2145_v42  ;;  %v1992_v0 = vld [vmem:[#allocation2 + $0xf] sm:$0xff]  ;;  %vm2218_vm6 = vcmp.eq.s32.totalorder %v10326_v27, 1  ;;  %v2609_v54 = vld [vmem:[#allocation2 + $0x427] sm:$0xff] }
 0x312   : > { %v2465_v38 = vsel %vm2449_vm12, %v2385_v57, 0.0  ;;  %v10327_v42 = vld [vmem:[#allocation19_spill] sm:$0xff]  ;;  %v2689_v57 = vsel %vm2673_vm15, %v2609_v54, 0.0  ;;  %v10330_v5 = vld [vmem:[#allocation22_spill] sm:$0xff]  ;;  %v10332_v54 = vld [vmem:[#allocation25_spill] sm:$0xff] }
 0x313   : > { %v8772_v52 = vadd.f32 %v2911_v1, %v2815_v47  ;;  %v2369_v60 = vadd.f32 %v2353_v13, %v2257_v19  ;;  %v10321_v47 = vld [vmem:[#allocation56_spill] sm:$0xff]  ;;  %vm2330_vm10 = vcmp.eq.s32.totalorder %v10327_v42, 1  ;;  %v2232_v13 = vsel %vm2216_vm5, %v2152_v56, 0.0  ;;  %v2833_v27 = vld [vmem:[#allocation2 + $0x569] sm:$0xff] }
 0x314   : > { %v8774_v63 = vpop.permute.xlu0 %2425  ;;  %vm2104_vm14 = vcmp.eq.s32.totalorder %v10321_v47, 1  ;;  %v2497_v1 = vld [vmem:[#allocation2 + $0x381] sm:$0xff]  ;;  %v2264_v47 = vld [vmem:[#allocation2 + $0x151] sm:$0xff]  ;;  %vm2110_vm12 = vcmp.eq.s32.totalorder %v10330_v5, 1  ;;  %vm2442_vm5 = vcmp.eq.s32.totalorder %v8697_v37, 1 }
 0x315   : > { %10317 = vst [vmem:[#allocation38_spill] sm:$0xff] %v8772_v52  ;;  %6614 = vtanh.f32 %v8772_v52  ;;  %v2481_v35 = vadd.f32 %v2465_v38, %v2369_v60  ;;  %v2120_v16 = vsel %vm2104_vm14, %v1992_v0, 0.0  ;;  %v1998_v19 = vld [vmem:[#allocation2 + $0x3f] sm:$0xff]  ;;  %v2124_v0 = vsel %vm2108_vm1, %v1996_v46, 0.0 }
 0x316   : > { %v8777_v6 = vpop.permute.xlu1 %2758  ;;  %v2154_v38 = vld [vmem:[#allocation2 + $0xc0] sm:$0xff]  ;;  %v2344_v36 = vsel %vm2328_vm7, %v2264_v47, 0.0  ;;  %vm2222_vm14 = vcmp.eq.s32.totalorder %v10332_v54, 1  ;;  %vm2554_vm1 = vcmp.eq.s32.totalorder %v10336_v34, 1  ;;  %v2140_v47 = vadd.f32 %v2124_v0, %v10337_v39  ;;  %v10356_v34 = vld [vmem:[#allocation55_spill] sm:$0xff] }
 0x317   : > { %v6613_v33 = vpop.eup %6612  ;;  %vm2785_vm8 = vcmp.eq.s32.totalorder %v8777_v6, 1  ;;  %v10328_v60 = vld [vmem:[#allocation20_spill] sm:$0xff]  ;;  %v10335_v5 = vld [vmem:[#allocation21_spill] sm:$0xff]  ;;  %v2126_v6 = vsel %vm2110_vm12, %v1998_v19, 0.0 }
 0x318   : > { %v8779_v11 = vpop.permute.xlu0 %2428  ;;  %3412 = vrot.lane.b32.xlu0 %v6613_v33, %s7036_s12  ;;  %v2577_v33 = vsel %vm2561_vm13, %v2497_v1, 0.0  ;;  %vm2220_vm11 = vcmp.eq.s32.totalorder %v10328_v60, 1  ;;  %v2266_v1 = vld [vmem:[#allocation2 + $0x161] sm:$0xff] }
 0x319   : > { %v10334_v46 = vld [vmem:[#allocation40_spill] sm:$0xff] }
 0x31a   : > { %v1641_v21 = vpop.permute.xlu1 %1640  ;;  %vm2114_vm15 = vcmp.eq.s32.totalorder %v10334_v46, 1  ;;  %v10338_v52 = vld [vmem:[#allocation32_spill] sm:$0xff]  ;;  %v10347_v46 = vld [vmem:[#allocation62_spill] sm:$0xff] }
 0x31b   : > { %1674 = vst.msk [vmem:[#allocation2 + $0x1c8] sm:$0xff] %vm1512_vm4, %v1641_v21  ;;  %v2002_v42 = vld [vmem:[#allocation2 + $0x5f] sm:$0xff] }
 0x31c   : > { %v8783_v9 = vpop.permute.xlu0 %2431 }
 0x31e   : > { %v1911_v24 = vpop.permute.xlu1 %1910 }
 0x31f   : > { %v6615_v10 = vpop.eup %6614  ;;  %1947 = vst.msk [vmem:[#allocation2 + $0x4d0] sm:$0xff] %vm1512_vm4, %v1911_v24  ;;  %v2593_v24 = vadd.f32 %v2577_v33, %v2481_v35  ;;  %v2721_v33 = vld [vmem:[#allocation2 + $0x4c8] sm:$0xff] }
 0x320   : > { %v1704_v8 = vpop.permute.xlu0 %1703  ;;  %3416 = vrot.lane.b32.xlu0 %v6615_v10, %s7036_s12  ;;  %v10322_v10 = vld [vmem:[#allocation17_spill] sm:$0xff]  ;;  %v2801_v56 = vsel %vm2785_vm8, %v2721_v33, 0.0  ;;  %v2346_v33 = vsel %vm2330_vm10, %v2266_v1, 0.0  ;;  %vm2224_vm8 = vcmp.eq.s32.totalorder %v10338_v52, 1  ;;  %vm2776_vm10 = vcmp.eq.s32.totalorder %v10339_v58, 1 }
 0x321   : > { %1738 = vst.msk [vmem:[#allocation2 + $0x260] sm:$0xff] %vm1512_vm4, %v1704_v8  ;;  %vm2106_vm0 = vcmp.eq.s32.totalorder %v10322_v10, 1  ;;  %v10324_v8 = vld [vmem:[#allocation18_spill] sm:$0xff] }
 0x322   : > { %v8793_v40 = vpop.permute.xlu1 %2543  ;;  %vm2440_vm2 = vcmp.eq.s32.totalorder %v10324_v8, 1  ;;  %v2122_v29 = vsel %vm2106_vm0, %v1994_v44, 0.0  ;;  %v10331_v44 = vld [vmem:[#allocation28_spill] sm:$0xff]  ;;  %vm2664_vm0 = vcmp.eq.s32.totalorder %v10335_v5, 1  ;;  %v2378_v1 = vld [vmem:[#allocation2 + $0x207] sm:$0xff] }
 0x323   : > { %vm2112_vm13 = vcmp.eq.s32.totalorder %v10331_v44, 1  ;;  %v10342_v44 = vld [vmem:[#allocation26_spill] sm:$0xff] }
 0x324   : > { %v8795_v30 = vpop.permute.xlu0 %2434 }
 0x327   : > { %v8797_v18 = vpop.permute.xlu1 %2761 }
 0x328   : > { %v1706_v22 = vpop.permute.xlu0 %1705 }
 0x329   : > { %1739 = vst.msk [vmem:[#allocation2 + $0x268] sm:$0xff] %vm1512_vm4, %v1706_v22  ;;  %v10329_v22 = vld [vmem:[#allocation33_spill] sm:$0xff] }
 0x32a   : > { %v2136_v35 = vadd.f32 %v2120_v16, %v10329_v22  ;;  %v10333_v16 = vld [vmem:[#allocation35_spill] sm:$0xff] }
 0x32b   : > { %v1848_v59 = vpop.permute.xlu1 %1847  ;;  %v2138_v31 = vadd.f32 %v2122_v29, %v10333_v16 }
 0x32c   : > { %1883 = vst.msk [vmem:[#allocation2 + $0x438] sm:$0xff] %vm1512_vm4, %v1848_v59  ;;  %v8803_v21 = vpop.permute.xlu0 %2437  ;;  %v2705_v59 = vadd.f32 %v2689_v57, %v2593_v24  ;;  %v2248_v22 = vadd.f32 %v2232_v13, %v2136_v35  ;;  %v2000_v24 = vld [vmem:[#allocation2 + $0x4f] sm:$0xff]  ;;  %v2234_v57 = vsel %vm2218_vm6, %v2154_v38, 0.0  ;;  %v2376_v35 = vld [vmem:[#allocation2 + $0x1f7] sm:$0xff] }
 0x32d   : > { %v2128_v19 = vsel %vm2112_vm13, %v2000_v24, 0.0  ;;  %v2250_v0 = vadd.f32 %v2234_v57, %v2138_v31  ;;  %vm2666_vm13 = vcmp.eq.s32.totalorder %v10342_v44, 1  ;;  %v10343_v24 = vld [vmem:[#allocation29_spill] sm:$0xff]  ;;  %v2268_v31 = vld [vmem:[#allocation2 + $0x171] sm:$0xff] }
 0x32e   : > { %v2360_v16 = vadd.f32 %v2344_v36, %v2248_v22  ;;  %v2817_v13 = vadd.f32 %v2801_v56, %v2705_v59  ;;  %v2003_v59 = vld [vmem:[#allocation2 + $0x67] sm:$0xff]  ;;  %v2236_v56 = vsel %vm2220_vm11, %v2156_v50, 0.0  ;;  %v2458_v22 = vsel %vm2442_vm5, %v2378_v1, 0.0 }
 0x32f   : > { %v8813_v32 = vpop.permute.xlu1 %2652  ;;  %v10340_v36 = vld [vmem:[#allocation57_spill] sm:$0xff]  ;;  %vm2556_vm3 = vcmp.eq.s32.totalorder %v10343_v24, 1  ;;  %v2362_v57 = vadd.f32 %v2346_v33, %v2250_v0  ;;  %v2348_v37 = vsel %vm2332_vm9, %v2268_v31, 0.0  ;;  %v2380_v31 = vld [vmem:[#allocation2 + $0x217] sm:$0xff]  ;;  %vm2668_vm9 = vcmp.eq.s32.totalorder %v10346_v55, 1  ;;  %v10359_v24 = vld [vmem:[#allocation66_spill] sm:$0xff] }
 0x330   : > { %vm2115_vm12 = vcmp.eq.s32.totalorder %v10340_v36, 1  ;;  %v2158_v1 = vld [vmem:[#allocation2 + $0xe0] sm:$0xff]  ;;  %vm2334_vm11 = vcmp.eq.s32.totalorder %v8586_v53, 1  ;;  %v10357_v53 = vld [vmem:[#allocation63_spill] sm:$0xff]  ;;  %v2163_v55 = vld [vmem:[#allocation2 + $0x108] sm:$0xff] }
 0x331   : > { %v2508_v10 = vpop.permute.xlu0 %2507  ;;  %v2131_v8 = vsel %vm2115_vm12, %v2003_v59, 0.0  ;;  %v2474_v23 = vadd.f32 %v2458_v22, %v2362_v57  ;;  %v10349_v59 = vld [vmem:[#allocation42_spill] sm:$0xff]  ;;  %v2238_v57 = vsel %vm2222_vm14, %v2158_v1, 0.0  ;;  %v2712_v1 = vld [vmem:[#allocation2 + $0x480] sm:$0xff]  ;;  %vm2336_vm14 = vcmp.eq.s32.totalorder %v8600_v48, 1 }
 0x332   : > { %vm2552_vm7 = vcmp.eq.s32.totalorder %v2508_v10, 1  ;;  %v2252_v10 = vadd.f32 %v2236_v56, %v2140_v47  ;;  %v10350_v47 = vld [vmem:[#allocation54_spill] sm:$0xff]  ;;  %v10352_v56 = vld [vmem:[#allocation64_spill] sm:$0xff] }
 0x333   : > { %vm2226_vm5 = vcmp.eq.s32.totalorder %v10350_v47, 1  ;;  %vm2780_vm12 = vcmp.eq.s32.totalorder %v10352_v56, 1 }
 0x334   : > { %v2871_v29 = vpop.permute.xlu1 %2870  ;;  %v2364_v22 = vadd.f32 %v2348_v37, %v2252_v10  ;;  %v2680_v37 = vsel %vm2664_vm0, %v2600_v4, 0.0  ;;  %v2004_v10 = vld [vmem:[#allocation2 + $0x6f] sm:$0xff]  ;;  %vm2560_vm0 = vcmp.eq.s32.totalorder %v10357_v53, 1  ;;  %v10361_v53 = vld [vmem:[#allocation49_spill] sm:$0xff] }
 0x335   : > { %vm2897_vm6 = vcmp.eq.s32.totalorder %v2871_v29, 1  ;;  %v8839_v38 = vpop.permute.xlu0 %2540  ;;  %v2488_v29 = vld [vmem:[#allocation2 + $0x339] sm:$0xff] }
 0x336   : > { %v2913_v39 = vsel %vm2897_vm6, %v2833_v27, 0.0  ;;  %vm2444_vm6 = vcmp.eq.s32.totalorder %v8723_v62, 1  ;;  %v2456_v27 = vsel %vm2440_vm2, %v2376_v35, 0.0  ;;  %v2568_v60 = vsel %vm2552_vm7, %v2488_v29, 0.0  ;;  %v10345_v35 = vld [vmem:[#allocation39_spill] sm:$0xff]  ;;  %v2490_v29 = vld [vmem:[#allocation2 + $0x349] sm:$0xff] }
 0x337   : > { %v8851_v14 = vadd.f32 %v2913_v39, %v2817_v13  ;;  %v2130_v13 = vsel %vm2114_vm15, %v2002_v42, 0.0  ;;  %v2472_v39 = vadd.f32 %v2456_v27, %v2360_v16  ;;  %v2142_v0 = vadd.f32 %v2126_v6, %v10345_v35  ;;  %v10348_v16 = vld [vmem:[#allocation41_spill] sm:$0xff]  ;;  %v10353_v35 = vld [vmem:[#allocation44_spill] sm:$0xff] }
 0x338   : > { %v1850_v50 = vpop.permute.xlu1 %1849  ;;  %vm2778_vm2 = vcmp.eq.s32.totalorder %v10347_v46, 1  ;;  %v2144_v42 = vadd.f32 %v2128_v19, %v10348_v16  ;;  %v2460_v27 = vsel %vm2444_vm6, %v2380_v31, 0.0  ;;  %vm2558_vm15 = vcmp.eq.s32.totalorder %v10349_v59, 1  ;;  %v10351_v6 = vld [vmem:[#allocation61_spill] sm:$0xff]  ;;  %v2826_v59 = vld [vmem:[#allocation2 + $0x531] sm:$0xff] }
 0x339   : > { %10341 = vst [vmem:[#allocation48_spill] sm:$0xff] %v8851_v14  ;;  %6616 = vtanh.f32 %v8851_v14  ;;  %1884 = vst.msk [vmem:[#allocation2 + $0x440] sm:$0xff] %vm1512_vm4, %v1850_v50  ;;  %v8865_v33 = vpop.permute.xlu0 %2546  ;;  %v2584_v36 = vadd.f32 %v2568_v60, %v2472_v39  ;;  %vm2116_vm7 = vcmp.eq.s32.totalorder %v10351_v6, 1  ;;  %v2160_v50 = vld [vmem:[#allocation2 + $0xf0] sm:$0xff]  ;;  %v8883_v14 = vadd.f32 %v2130_v13, %v10353_v35  ;;  %v2270_v62 = vld [vmem:[#allocation2 + $0x181] sm:$0xff] }
 0x33a   : > { %10344 = vst [vmem:[#allocation60_spill] sm:$0xff] %v8865_v33  ;;  %v10354_v60 = vld [vmem:[#allocation47_spill] sm:$0xff]  ;;  %v2570_v31 = vsel %vm2554_vm1, %v2490_v29, 0.0  ;;  %vm2446_vm6 = vcmp.eq.s32.totalorder %v8748_v43, 1  ;;  %v2350_v13 = vsel %vm2334_vm11, %v2270_v62, 0.0  ;;  %v2476_v35 = vadd.f32 %v2460_v27, %v2364_v22  ;;  %v10358_v62 = vld [vmem:[#allocation65_spill] sm:$0xff] }
 0x33b   : > { %v8888_v39 = vadd.f32 %v2131_v8, %v10354_v60  ;;  %v2586_v16 = vadd.f32 %v2570_v31, %v2474_v23  ;;  %v2492_v8 = vld [vmem:[#allocation2 + $0x359] sm:$0xff]  ;;  %v2602_v60 = vld [vmem:[#allocation2 + $0x3ef] sm:$0xff]  ;;  %v8903_v29 = vsel %vm2116_vm7, %v2004_v10, 0.0  ;;  %v2254_v4 = vadd.f32 %v2238_v57, %v2142_v0 }
 0x33c   : > { %v8885_v19 = vpop.permute.xlu1 %2655  ;;  %v2240_v5 = vsel %vm2224_vm8, %v2160_v50, 0.0  ;;  %v2696_v33 = vadd.f32 %v2680_v37, %v2584_v36  ;;  %vm2227_vm11 = vcmp.eq.s32.totalorder %v10358_v62, 1  ;;  %v2272_v23 = vld [vmem:[#allocation2 + $0x191] sm:$0xff]  ;;  %vm2448_vm1 = vcmp.eq.s32.totalorder %v8761_v7, 1  ;;  %v2604_v50 = vld [vmem:[#allocation2 + $0x3ff] sm:$0xff] }
 0x33d   : > { %v8895_v54 = vpop.permute.xlu0 %2549  ;;  %v2792_v6 = vsel %vm2776_vm10, %v2712_v1, 0.0  ;;  %v2366_v0 = vadd.f32 %v2350_v13, %v2254_v4  ;;  %v2352_v52 = vsel %vm2336_vm14, %v2272_v23, 0.0  ;;  %v2572_v36 = vsel %vm2556_vm3, %v2492_v8, 0.0  ;;  %v2714_v43 = vld [vmem:[#allocation2 + $0x490] sm:$0xff]  ;;  %v2716_v31 = vld [vmem:[#allocation2 + $0x4a0] sm:$0xff] }
 0x33e   : > { %10355 = vst [vmem:[#allocation59_spill] sm:$0xff] %v8895_v54  ;;  %v2382_v54 = vld [vmem:[#allocation2 + $0x227] sm:$0xff]  ;;  %v2682_v57 = vsel %vm2666_vm13, %v2602_v60, 0.0  ;;  %v2256_v37 = vadd.f32 %v2240_v5, %v2144_v42  ;;  %vm2338_vm8 = vcmp.eq.s32.totalorder %v8612_v49, 1  ;;  %v2588_v58 = vadd.f32 %v2572_v36, %v2476_v35  ;;  %v2384_v10 = vld [vmem:[#allocation2 + $0x237] sm:$0xff] }
 0x33f   : > { %v2462_v27 = vsel %vm2446_vm6, %v2382_v54, 0.0  ;;  %v2162_v54 = vld [vmem:[#allocation2 + $0x100] sm:$0xff]  ;;  %v2494_v1 = vld [vmem:[#allocation2 + $0x369] sm:$0xff]  ;;  %v2698_v13 = vadd.f32 %v2682_v57, %v2586_v16  ;;  %vm2782_vm3 = vcmp.eq.s32.totalorder %v10359_v24, 1  ;;  %v2464_v44 = vsel %vm2448_vm1, %v2384_v10, 0.0 }
 0x340   : > { %v1787_v22 = vpop.permute.xlu1 %1786  ;;  %v2478_v8 = vadd.f32 %v2462_v27, %v2366_v0  ;;  %v2808_v60 = vadd.f32 %v2792_v6, %v2696_v33  ;;  %v2824_v23 = vld [vmem:[#allocation2 + $0x521] sm:$0xff]  ;;  %v2794_v35 = vsel %vm2778_vm2, %v2714_v43, 0.0  ;;  %v2684_v16 = vsel %vm2668_vm9, %v2604_v50, 0.0  ;;  %v2496_v36 = vld [vmem:[#allocation2 + $0x379] sm:$0xff] }
 0x341   : > { %1820 = vst.msk [vmem:[#allocation2 + $0x3a8] sm:$0xff] %vm1512_vm4, %v1787_v22  ;;  %v2368_v22 = vadd.f32 %v2352_v52, %v2256_v37  ;;  %v2242_v27 = vsel %vm2226_vm5, %v2162_v54, 0.0  ;;  %v2274_v0 = vld [vmem:[#allocation2 + $0x1a1] sm:$0xff]  ;;  %v2574_v7 = vsel %vm2558_vm15, %v2494_v1, 0.0  ;;  %v2796_v6 = vsel %vm2780_vm12, %v2716_v31, 0.0  ;;  %v2606_v52 = vld [vmem:[#allocation2 + $0x40f] sm:$0xff] }
 0x342   : > { %v2844_v48 = vpop.permute.xlu0 %2843  ;;  %v2354_v46 = vsel %vm2338_vm8, %v2274_v0, 0.0  ;;  %v2810_v47 = vadd.f32 %v2794_v35, %v2698_v13  ;;  %v2700_v50 = vadd.f32 %v2684_v16, %v2588_v58  ;;  %v2590_v37 = vadd.f32 %v2574_v7, %v2478_v8  ;;  %v2386_v10 = vld [vmem:[#allocation2 + $0x247] sm:$0xff]  ;;  %v2718_v13 = vld [vmem:[#allocation2 + $0x4b0] sm:$0xff] }
 0x343   : > { %v6617_v4 = vpop.eup %6616  ;;  %vm2888_vm10 = vcmp.eq.s32.totalorder %v2844_v48, 1  ;;  %v2480_v57 = vadd.f32 %v2464_v44, %v2368_v22  ;;  %vm2450_vm13 = vcmp.eq.s32.totalorder %v8774_v63, 1  ;;  %vm2784_vm2 = vcmp.eq.s32.totalorder %v8553_v45, 1  ;;  %v2828_v62 = vld [vmem:[#allocation2 + $0x541] sm:$0xff] }
 0x344   : > { %v2904_v42 = vsel %vm2888_vm10, %v2824_v23, 0.0  ;;  %3420 = vrot.lane.b32.xlu0 %v6617_v4, %s7036_s12  ;;  %v1913_v5 = vpop.permute.xlu1 %1912  ;;  %v2258_v56 = vadd.f32 %v2242_v27, %v8883_v14  ;;  %vm10360_vm15 = vcmp.eq.s32.totalorder %v10356_v34, 1  ;;  %vm2228_vm5 = vcmp.eq.s32.totalorder %v8590_v17, 1  ;;  %v2608_v22 = vld [vmem:[#allocation2 + $0x41f] sm:$0xff]  ;;  %v2164_v27 = vld [vmem:[#allocation2 + $0x110] sm:$0xff] }
 0x345   : > { %v8934_v33 = vadd.f32 %v2904_v42, %v2808_v60  ;;  %1948 = vst.msk [vmem:[#allocation2 + $0x4d8] sm:$0xff] %vm1512_vm4, %v1913_v5  ;;  %v2686_v54 = vsel %vm10360_vm15, %v2606_v52, 0.0  ;;  %v2243_v58 = vsel %vm2227_vm11, %v2163_v55, 0.0  ;;  %v2576_v1 = vsel %vm2560_vm0, %v2496_v36, 0.0  ;;  %v2275_v42 = vld [vmem:[#allocation2 + $0x1a9] sm:$0xff]  ;;  %v2720_v16 = vld [vmem:[#allocation2 + $0x4c0] sm:$0xff] }
 0x346   : > { %v2850_v43 = vpop.permute.xlu0 %2849  ;;  %vm2672_vm7 = vcmp.eq.s32.totalorder %v8598_v15, 1  ;;  %v2370_v14 = vadd.f32 %v2354_v46, %v2258_v56  ;;  %v2592_v4 = vadd.f32 %v2576_v1, %v2480_v57  ;;  %v2466_v34 = vsel %vm2450_vm13, %v2386_v10, 0.0  ;;  %v2498_v36 = vld [vmem:[#allocation2 + $0x389] sm:$0xff]  ;;  %v2276_v57 = vld [vmem:[#allocation2 + $0x1b1] sm:$0xff]  ;;  %v2832_v10 = vld [vmem:[#allocation2 + $0x561] sm:$0xff] }
 0x347   : > { %6618 = vtanh.f32 %v8934_v33  ;;  %vm2890_vm9 = vcmp.eq.s32.totalorder %v2850_v43, 1  ;;  %v2812_v44 = vadd.f32 %v2796_v6, %v2700_v50  ;;  %v2702_v60 = vadd.f32 %v2686_v54, %v2590_v37  ;;  %v2830_v43 = vld [vmem:[#allocation2 + $0x551] sm:$0xff] }
 0x348   : > { %v2906_v31 = vsel %vm2890_vm9, %v2826_v59, 0.0  ;;  %v8945_v49 = vpop.permute.xlu1 %2764  ;;  %v2148_v23 = vadd.f32 %v8903_v29, %v10361_v53  ;;  %vm2339_vm6 = vcmp.eq.s32.totalorder %v8619_v12, 1  ;;  %v2798_v63 = vsel %vm2782_vm3, %v2718_v13, 0.0  ;;  %v2387_v56 = vld [vmem:[#allocation2 + $0x24f] sm:$0xff] }
 0x349   : > { %v8954_v48 = vadd.f32 %v2906_v31, %v2810_v47  ;;  %v2688_v0 = vsel %vm2672_vm7, %v2608_v22, 0.0  ;;  %vm2562_vm14 = vcmp.eq.s32.totalorder %v8649_v20, 1  ;;  %v2482_v7 = vadd.f32 %v2466_v34, %v2370_v14  ;;  %v2610_v54 = vld [vmem:[#allocation2 + $0x42f] sm:$0xff] }
 0x34a   : > { %v2856_v8 = vpop.permute.xlu0 %2855  ;;  %v2800_v29 = vsel %vm2784_vm2, %v2720_v16, 0.0  ;;  %v2244_v52 = vsel %vm2228_vm5, %v2164_v27, 0.0  ;;  %v2259_v24 = vadd.f32 %v2243_v58, %v8888_v39  ;;  %v2704_v55 = vadd.f32 %v2688_v0, %v2592_v4  ;;  %v2722_v1 = vld [vmem:[#allocation2 + $0x4d0] sm:$0xff] }
 0x34b   : > { %6620 = vtanh.f32 %v8954_v48  ;;  %vm2892_vm12 = vcmp.eq.s32.totalorder %v2856_v8, 1  ;;  %v2355_v15 = vsel %vm2339_vm6, %v2275_v42, 0.0  ;;  %v2814_v47 = vadd.f32 %v2798_v63, %v2702_v60  ;;  %v2388_v4 = vld [vmem:[#allocation2 + $0x257] sm:$0xff] }
 0x34c   : > { %v2908_v5 = vsel %vm2892_vm12, %v2828_v62, 0.0  ;;  %v1915_v35 = vpop.permute.xlu1 %1914  ;;  %vm2340_vm0 = vcmp.eq.s32.totalorder %v8624_v25, 1  ;;  %v2578_v45 = vsel %vm2562_vm14, %v2498_v36, 0.0  ;;  %vm2451_vm11 = vcmp.eq.s32.totalorder %v8779_v11, 1  ;;  %v2499_v60 = vld [vmem:[#allocation2 + $0x391] sm:$0xff] }
 0x34d   : > { %v8968_v6 = vadd.f32 %v2908_v5, %v2812_v44  ;;  %1949 = vst.msk [vmem:[#allocation2 + $0x4e0] sm:$0xff] %vm1512_vm4, %v1915_v35  ;;  %vm2674_vm8 = vcmp.eq.s32.totalorder %v8752_v61, 1  ;;  %v2594_v12 = vadd.f32 %v2578_v45, %v2482_v7  ;;  %vm2786_vm3 = vcmp.eq.s32.totalorder %v8797_v18, 1  ;;  %v2612_v35 = vld [vmem:[#allocation2 + $0x43f] sm:$0xff]  ;;  %v2834_v63 = vld [vmem:[#allocation2 + $0x571] sm:$0xff] }
 0x34e   : > { %v2862_v46 = vpop.permute.xlu0 %2861  ;;  %v2260_v59 = vadd.f32 %v2244_v52, %v2148_v23  ;;  %v2356_v31 = vsel %vm2340_vm0, %v2276_v57, 0.0  ;;  %vm2452_vm10 = vcmp.eq.s32.totalorder %v8783_v9, 1  ;;  %v2816_v25 = vadd.f32 %v2800_v29, %v2704_v55  ;;  %v2500_v9 = vld [vmem:[#allocation2 + $0x399] sm:$0xff] }
 0x34f   : > { %6622 = vtanh.f32 %v8968_v6  ;;  %vm2894_vm1 = vcmp.eq.s32.totalorder %v2862_v46, 1  ;;  %v2467_v58 = vsel %vm2451_vm11, %v2387_v56, 0.0  ;;  %vm2563_vm13 = vcmp.eq.s32.totalorder %v8839_v38, 1  ;;  %v2005_v16 = vld [vmem:[#allocation2 + $0x77] sm:$0xff] }
 0x350   : > { %v2910_v17 = vsel %vm2894_vm1, %v2830_v43, 0.0  ;;  %v8983_v39 = vpop.permute.xlu1 %2767  ;;  %v2371_v13 = vadd.f32 %v2355_v15, %v2259_v24  ;;  %v2690_v14 = vsel %vm2674_vm8, %v2610_v54, 0.0  ;;  %v2802_v34 = vsel %vm2786_vm3, %v2722_v1, 0.0  ;;  %v2611_v29 = vld [vmem:[#allocation2 + $0x437] sm:$0xff] }
 0x351   : > { %v6619_v50 = vpop.eup %6618  ;;  %v8987_v37 = vadd.f32 %v2910_v17, %v2814_v47  ;;  %v2468_v11 = vsel %vm2452_vm10, %v2388_v4, 0.0  ;;  %vm2564_vm2 = vcmp.eq.s32.totalorder %v8793_v40, 1  ;;  %v2706_v62 = vadd.f32 %v2690_v14, %v2594_v12  ;;  %v2723_v24 = vld [vmem:[#allocation2 + $0x4d8] sm:$0xff]  ;;  %v2166_v12 = vld [vmem:[#allocation2 + $0x120] sm:$0xff] }
 0x352   : > { %v2868_v20 = vpop.permute.xlu0 %2867  ;;  %3402 = vrot.lane.b32.xlu1 %v6619_v50, %s7036_s12  ;;  %vm2117_vm15 = vcmp.eq.s32.totalorder %v8617_v28, 1  ;;  %v2483_v61 = vadd.f32 %v2467_v58, %v2371_v13  ;;  %v2372_v22 = vadd.f32 %v2356_v31, %v2260_v59  ;;  %v2579_v18 = vsel %vm2563_vm13, %v2499_v60, 0.0  ;;  %v2165_v47 = vld [vmem:[#allocation2 + $0x118] sm:$0xff]  ;;  %v2278_v58 = vld [vmem:[#allocation2 + $0x1c1] sm:$0xff] }
 0x353   : > { %6624 = vtanh.f32 %v8987_v37  ;;  %vm2896_vm9 = vcmp.eq.s32.totalorder %v2868_v20, 1  ;;  %v2818_v5 = vadd.f32 %v2802_v34, %v2706_v62  ;;  %vm2676_vm5 = vcmp.eq.s32.totalorder %v8885_v19, 1  ;;  %v2006_v28 = vld [vmem:[#allocation2 + $0x7f] sm:$0xff]  ;;  %v2390_v60 = vld [vmem:[#allocation2 + $0x267] sm:$0xff] }
 0x354   : > { %v2912_v8 = vsel %vm2896_vm9, %v2832_v10, 0.0  ;;  %v2484_v27 = vadd.f32 %v2468_v11, %v2372_v22  ;;  %v2580_v0 = vsel %vm2564_vm2, %v2500_v9, 0.0  ;;  %vm2675_vm12 = vcmp.eq.s32.totalorder %v8813_v32, 1  ;;  %v2724_v46 = vld [vmem:[#allocation2 + $0x4e0] sm:$0xff] }
 0x355   : > { %v6621_v44 = vpop.eup %6620  ;;  %v9002_v53 = vadd.f32 %v2912_v8, %v2816_v25  ;;  %v9004_v23 = vpop.permute.xlu1 %2658  ;;  %v2595_v52 = vadd.f32 %v2579_v18, %v2483_v61  ;;  %vm2787_vm6 = vcmp.eq.s32.totalorder %v8945_v49, 1  ;;  %vm2788_vm14 = vcmp.eq.s32.totalorder %v8983_v39, 1  ;;  %v2277_v59 = vld [vmem:[#allocation2 + $0x1b9] sm:$0xff]  ;;  %v2836_v14 = vld [vmem:[#allocation2 + $0x581] sm:$0xff] }
 0x356   : > { %v2874_v42 = vpop.permute.xlu0 %2873  ;;  %3406 = vrot.lane.b32.xlu1 %v6621_v44, %s7036_s12  ;;  %v2133_v40 = vsel %vm2117_vm15, %v2005_v16, 0.0  ;;  %vm2118_vm1 = vcmp.eq.s32.totalorder %v8643_v3, 1  ;;  %v2692_v36 = vsel %vm2676_vm5, %v2612_v35, 0.0  ;;  %vm2229_vm0 = vcmp.eq.s32.totalorder %v8681_v41, 1  ;;  %v10362_v25 = vld [vmem:[#allocation51_spill] sm:$0xff]  ;;  %v10363_v4 = vld [vmem:[#allocation53_spill] sm:$0xff] }
 0x357   : > { %6626 = vtanh.f32 %v9002_v53  ;;  %vm2898_vm7 = vcmp.eq.s32.totalorder %v2874_v42, 1  ;;  %vm2230_vm11 = vcmp.eq.s32.totalorder %v8735_v26, 1  ;;  %v2596_v43 = vadd.f32 %v2580_v0, %v2484_v27  ;;  %v2835_v13 = vld [vmem:[#allocation2 + $0x579] sm:$0xff] }
 0x358   : > { %v2914_v38 = vsel %vm2898_vm7, %v2834_v63, 0.0  ;;  %v2691_v3 = vsel %vm2675_vm12, %v2611_v29, 0.0  ;;  %v2803_v19 = vsel %vm2787_vm6, %v2723_v24, 0.0  ;;  %v2804_v45 = vsel %vm2788_vm14, %v2724_v46, 0.0  ;;  %v2389_v8 = vld [vmem:[#allocation2 + $0x25f] sm:$0xff]  ;;  %v2502_v63 = vld [vmem:[#allocation2 + $0x3a9] sm:$0xff] }
 0x359   : > { %v6623_v7 = vpop.eup %6622  ;;  %v9017_v55 = vadd.f32 %v2914_v38, %v2818_v5  ;;  %v9019_v15 = vpop.permute.xlu1 %2661  ;;  %v2134_v50 = vsel %vm2118_vm1, %v2006_v28, 0.0  ;;  %vm2341_vm8 = vcmp.eq.s32.totalorder %v8770_v2, 1  ;;  %v2708_v56 = vadd.f32 %v2692_v36, %v2596_v43  ;;  %v2501_v2 = vld [vmem:[#allocation2 + $0x3a1] sm:$0xff] }
 0x35a   : > { %v1852_v57 = vpop.permute.xlu0 %1851  ;;  %3410 = vrot.lane.b32.xlu1 %v6623_v7, %s7036_s12  ;;  %v2707_v31 = vadd.f32 %v2691_v3, %v2595_v52  ;;  %v2149_v20 = vadd.f32 %v2133_v40, %v10362_v25  ;;  %v2245_v32 = vsel %vm2229_vm0, %v2165_v47, 0.0  ;;  %v2246_v49 = vsel %vm2230_vm11, %v2166_v12, 0.0  ;;  %v10364_v27 = vld [vmem:[#allocation60_spill] sm:$0xff]  ;;  %v10365_v7 = vld [vmem:[#allocation59_spill] sm:$0xff] }
 0x35b   : > { %6628 = vtanh.f32 %v9017_v55  ;;  %1885 = vst.msk [vmem:[#allocation2 + $0x448] sm:$0xff] %vm1512_vm4, %v1852_v57  ;;  %v2820_v10 = vadd.f32 %v2804_v45, %v2708_v56  ;;  %v2150_v34 = vadd.f32 %v2134_v50, %v10363_v4  ;;  %v2357_v41 = vsel %vm2341_vm8, %v2277_v59, 0.0  ;;  %v2726_v57 = vld [vmem:[#allocation2 + $0x4f0] sm:$0xff] }
 0x35c   : > { %v2819_v1 = vadd.f32 %v2803_v19, %v2707_v31  ;;  %vm2342_vm13 = vcmp.eq.s32.totalorder %v8674_v51, 1  ;;  %v2261_v62 = vadd.f32 %v2245_v32, %v2149_v20  ;;  %vm2453_vm9 = vcmp.eq.s32.totalorder %v8795_v30, 1  ;;  %v2838_v50 = vld [vmem:[#allocation2 + $0x591] sm:$0xff]  ;;  %v2837_v59 = vld [vmem:[#allocation2 + $0x589] sm:$0xff] }
 0x35d   : > { %v6625_v17 = vpop.eup %6624  ;;  %v2262_v18 = vadd.f32 %v2246_v49, %v2150_v34  ;;  %v2358_v42 = vsel %vm2342_vm13, %v2278_v58, 0.0  ;;  %v2469_v35 = vsel %vm2453_vm9, %v2389_v8, 0.0  ;;  %vm2454_vm2 = vcmp.eq.s32.totalorder %v8803_v21, 1  ;;  %v9071_v58 = vld [vmem:[#allocation4] sm:$0xff]  ;;  %v9085_v8 = vld [vmem:[#allocation4 + $0x8] sm:$0xff] }
 0x35e   : > { %v2877_v54 = vpop.permute.xlu0 %2876  ;;  %3414 = vrot.lane.b32.xlu1 %v6625_v17, %s7036_s12  ;;  %v2880_v39 = vpop.permute.xlu1 %2879  ;;  %v2373_v5 = vadd.f32 %v2357_v41, %v2261_v62  ;;  %v2470_v16 = vsel %vm2454_vm2, %v2390_v60, 0.0  ;;  %vm2565_vm15 = vcmp.eq.s32.totalorder %v10364_v27, 1  ;;  %vm2677_vm5 = vcmp.eq.s32.totalorder %v9004_v23, 1  ;;  %v5670_v60 = vld [vmem:[%s10153_s5 + $0x98] sm:$0xff]  ;;  %v9114_v27 = vld [vmem:[#allocation4 + $0x20] sm:$0xff] }
 0x35f   : > { %vm2899_vm3 = vcmp.eq.s32.totalorder %v2877_v54, 1  ;;  %vm2900_vm10 = vcmp.eq.s32.totalorder %v2880_v39, 1  ;;  %v2374_v38 = vadd.f32 %v2358_v42, %v2262_v18  ;;  %vm2566_vm7 = vcmp.eq.s32.totalorder %v10365_v7, 1  ;;  %v9096_v18 = vld [vmem:[#allocation4 + $0x10] sm:$0xff] }
 0x360   : > { %v2915_v44 = vsel %vm2899_vm3, %v2835_v13, 0.0  ;;  %v2916_v26 = vsel %vm2900_vm10, %v2836_v14, 0.0  ;;  %vm2678_vm12 = vcmp.eq.s32.totalorder %v9019_v15, 1  ;;  %v2581_v21 = vsel %vm2565_vm15, %v2501_v2, 0.0  ;;  %v5668_v14 = vld [vmem:[%s10153_s5 + $0x88] sm:$0xff]  ;;  %v2937_v42 = vld [vmem:[%s10153_s5 + $0x10] sm:$0xff] }
 0x361   : > { %v6627_v11 = vpop.eup %6626  ;;  %v9048_v61 = vadd.f32 %v2915_v44, %v2819_v1  ;;  %v9050_v22 = vadd.f32 %v2916_v26, %v2820_v10  ;;  %v2485_v52 = vadd.f32 %v2469_v35, %v2373_v5  ;;  %v2582_v24 = vsel %vm2566_vm7, %v2502_v63, 0.0  ;;  %v2935_v1 = vld [vmem:[%s10153_s5] sm:$0xff]  ;;  %v5669_v26 = vld [vmem:[%s10153_s5 + $0x90] sm:$0xff]  ;;  %v9103_v2 = vld [vmem:[#allocation4 + $0x18] sm:$0xff] }
 0x362   : > { %v1917_v9 = vpop.permute.xlu0 %1916  ;;  %3418 = vrot.lane.b32.xlu1 %v6627_v11, %s7036_s12  ;;  %v2613_v30 = vld [vmem:[#allocation2 + $0x447] sm:$0xff]  ;;  %v2614_v29 = vld [vmem:[#allocation2 + $0x44f] sm:$0xff]  ;;  %v2486_v40 = vadd.f32 %v2470_v16, %v2374_v38  ;;  %v2951_v13 = vmul.f32 %v2935_v1, %v9071_v58  ;;  %v3097_v44 = vmul.f32 %v5668_v14, %v9085_v8  ;;  %v10366_v11 = vld [vmem:[#allocation68_spill] sm:$0xff]  ;;  %v3099_v5 = vmul.f32 %v5670_v60, %v9103_v2 }
 0x363   : > { %6630 = vtanh.f32 %v9048_v61  ;;  %1950 = vst.msk [vmem:[#allocation2 + $0x4e8] sm:$0xff] %vm1512_vm4, %v1917_v9  ;;  %v2771_v51 = vpop.permute.xlu1 %2770  ;;  %v2693_v36 = vsel %vm2677_vm5, %v2613_v30, 0.0  ;;  %v2694_v23 = vsel %vm2678_vm12, %v2614_v29, 0.0  ;;  %v2597_v47 = vadd.f32 %v2581_v21, %v2485_v52  ;;  %v5667_v10 = vld [vmem:[%s10153_s5 + $0x80] sm:$0xff]  ;;  %v5672_v16 = vld [vmem:[%s10153_s5 + $0xa8] sm:$0xff]  ;;  %v5673_v7 = vld [vmem:[%s10153_s5 + $0xb0] sm:$0xff] }
 0x364   : > { %6632 = vtanh.f32 %v9050_v22  ;;  %vm2789_vm6 = vcmp.eq.s32.totalorder %v2771_v51, 1  ;;  %v2598_v28 = vadd.f32 %v2582_v24, %v2486_v40  ;;  %v3096_v41 = vmul.f32 %v5667_v10, %v9071_v58  ;;  %v5671_v35 = vld [vmem:[%s10153_s5 + $0xa0] sm:$0xff]  ;;  %v5674_v52 = vld [vmem:[%s10153_s5 + $0xb8] sm:$0xff]  ;;  %v5680_v14 = vld [vmem:[%s10153_s5 + $0xe8] sm:$0xff] }
 0x365   : > { %v6629_v0 = vpop.eup %6628  ;;  %v2709_v3 = vadd.f32 %v2693_v36, %v2597_v47  ;;  %v2967_v62 = vadd.f32 %v2951_v13, %v10366_v11  ;;  %v3098_v9 = vmul.f32 %v5669_v26, %v9096_v18  ;;  %v2953_v51 = vmul.f32 %v2937_v42, %v9096_v18  ;;  %v10367_v29 = vld [vmem:[#allocation69_spill] sm:$0xff]  ;;  %v9136_v36 = vld [vmem:[#allocation4 + $0x38] sm:$0xff]  ;;  %v10369_v60 = vld [vmem:[#allocation30_spill] sm:$0xff] }
 0x366   : > { %v2774_v46 = vpop.permute.xlu0 %2773  ;;  %3422 = vrot.lane.b32.xlu1 %v6629_v0, %s7036_s12  ;;  %v2710_v15 = vadd.f32 %v2694_v23, %v2598_v28  ;;  %v3100_v30 = vmul.f32 %v5671_v35, %v9114_v27  ;;  %v9118_v0 = vld [vmem:[#allocation4 + $0x28] sm:$0xff]  ;;  %v2939_v24 = vld [vmem:[%s10153_s5 + $0x20] sm:$0xff]  ;;  %vm10372_vm0 = vcmask 64512  }
 0x367   : > { %vm2790_vm4 = vcmp.eq.s32.totalorder %v2774_v46, 1  ;;  %v5651_v63 = vmul.f32 -1.442695, %v2967_v62  ;;  %v3101_v38 = vmul.f32 %v5672_v16, %v9118_v0  ;;  %v2969_v21 = vadd.f32 %v2953_v51, %v10367_v29  ;;  %v9132_v46 = vld [vmem:[#allocation4 + $0x30] sm:$0xff]  ;;  %v5675_v23 = vld [vmem:[%s10153_s5 + $0xc0] sm:$0xff]  ;;  %v5676_v28 = vld [vmem:[%s10153_s5 + $0xc8] sm:$0xff] }
 0x368   : > { %v2883_v43 = vpop.permute.xlu1 %2882  ;;  %v2806_v45 = vsel %vm2790_vm4, %v2726_v57, 0.0  ;;  %v3102_v40 = vmul.f32 %v5673_v7, %v9132_v46  ;;  %v3103_v57 = vmul.f32 %v5674_v52, %v9136_v36  ;;  %v5679_v1 = vld [vmem:[%s10153_s5 + $0xe0] sm:$0xff]  ;;  %v5681_v62 = vld [vmem:[%s10153_s5 + $0xf0] sm:$0xff]  ;;  %v5682_v51 = vld [vmem:[%s10153_s5 + $0xf8] sm:$0xff] }
 0x369   : > { %vm2901_vm14 = vcmp.eq.s32.totalorder %v2883_v43, 1  ;;  %v2822_v25 = vadd.f32 %v2806_v45, %v2710_v15  ;;  %v5653_v47 = vmul.f32 -1.442695, %v2969_v21  ;;  %v2955_v43 = vmul.f32 %v2939_v24, %v9114_v27  ;;  %v9151_v45 = vld [vmem:[#allocation4 + $0x48] sm:$0xff]  ;;  %v9207_v21 = vld [vmem:[#allocation4 + $0x78] sm:$0xff]  ;;  %vm10373_vm11 = vmmov %vm10372_vm0 }
 0x36a   : > { %v2725_v19 = vld [vmem:[#allocation2 + $0x4e8] sm:$0xff]  ;;  %v2917_v20 = vsel %vm2901_vm14, %v2837_v59, 0.0  ;;  %v3105_v15 = vmul.f32 %v5676_v28, %v9151_v45  ;;  %v5678_v59 = vld [vmem:[%s10153_s5 + $0xd8] sm:$0xff]  ;;  %v3111_v52 = vmul.f32 %v5682_v51, %v9207_v21  ;;  %vm10374_vm8 = vmmov %vm10372_vm0 }
 0x36b   : > { %v2805_v17 = vsel %vm2789_vm6, %v2725_v19, 0.0  ;;  %v2936_v7 = vld [vmem:[%s10153_s5 + $0x8] sm:$0xff]  ;;  %v2942_v51 = vld [vmem:[%s10153_s5 + $0x38] sm:$0xff]  ;;  %vm10375_vm3 = vmmov %vm10372_vm0 }
 0x36c   : > { %v2821_v12 = vadd.f32 %v2805_v17, %v2709_v3  ;;  %v2886_v56 = vpop.permute.xlu1 %2885  ;;  %v9147_v3 = vld [vmem:[#allocation4 + $0x40] sm:$0xff]  ;;  %v5677_v17 = vld [vmem:[%s10153_s5 + $0xd0] sm:$0xff]  ;;  %v2952_v24 = vmul.f32 %v2936_v7, %v9085_v8  ;;  %v2958_v7 = vmul.f32 %v2942_v51, %v9136_v36  ;;  %vm10376_vm10 = vmmov %vm10372_vm0 }
 0x36d   : > { %v6631_v31 = vpop.eup %6630  ;;  %vm2902_vm1 = vcmp.eq.s32.totalorder %v2886_v56, 1  ;;  %v3104_v19 = vmul.f32 %v5675_v23, %v9147_v3  ;;  %v2941_v56 = vld [vmem:[%s10153_s5 + $0x30] sm:$0xff]  ;;  %vm10377_vm13 = vmmov %vm10372_vm0 }
 0x36e   : > { %v6633_v32 = vpop.eup %6632  ;;  %v9063_v49 = vadd.f32 %v2917_v20, %v2821_v12  ;;  %v2918_v54 = vsel %vm2902_vm1, %v2838_v50, 0.0  ;;  %3424 = vrot.lane.b32.xlu0 %v6631_v31, %s7036_s12  ;;  %v10368_v50 = vld [vmem:[#allocation27_spill] sm:$0xff]  ;;  %v2957_v13 = vmul.f32 %v2941_v56, %v9132_v46  ;;  %vm10378_vm9 = vmmov %vm10372_vm0 }
 0x36f   : > { %v9066_v39 = vadd.f32 %v2918_v54, %v2822_v25  ;;  %3426 = vrot.lane.b32.xlu1 %v6633_v32, %s7036_s12  ;;  %v2971_v12 = vadd.f32 %v2955_v43, %v10368_v50  ;;  %v9165_v31 = vld [vmem:[#allocation4 + $0x50] sm:$0xff]  ;;  %v9169_v32 = vld [vmem:[#allocation4 + $0x58] sm:$0xff]  ;;  %vm10379_vm2 = vmmov %vm10372_vm0 }
 0x370   : > { %6634 = vtanh.f32 %v9063_v49  ;;  %v3106_v20 = vmul.f32 %v5677_v17, %v9165_v31  ;;  %v3107_v54 = vmul.f32 %v5678_v59, %v9169_v32  ;;  %v2973_v42 = vadd.f32 %v2957_v13, %v10369_v60  ;;  %v2938_v59 = vld [vmem:[%s10153_s5 + $0x18] sm:$0xff]  ;;  %vm10380_vm15 = vmmov %vm10372_vm0 }
 0x371   : > { %6636 = vtanh.f32 %v9066_v39  ;;  %v5655_v10 = vmul.f32 -1.442695, %v2971_v12  ;;  %v2968_v17 = vadd.f32 %v2952_v24, %v8934_v33  ;;  %v2954_v56 = vmul.f32 %v2938_v59, %v9103_v2  ;;  %vm10381_vm5 = vmmov %vm10372_vm0 }
 0x372   : > { %6638 = vpow2.f32 %v5651_v63  ;;  %v5657_v16 = vmul.f32 -1.442695, %v2973_v42  ;;  %vm10382_vm7 = vmmov %vm10372_vm0 }
 0x373   : > { %6640 = vpow2.f32 %v5653_v47  ;;  %v2945_v47 = vld [vmem:[%s10153_s5 + $0x50] sm:$0xff]  ;;  %vm10383_vm12 = vmmov %vm10372_vm0 }
 0x374   : > { %6642 = vpow2.f32 %v5655_v10  ;;  %vm10384_vm4 = vmmov %vm10372_vm0 }
 0x375   : > { %vm10385_vm6 = vmmov %vm10372_vm0 }
 0x376   : > { %vm10386_vm14 = vmmov %vm10372_vm0 }
 0x377   : > { %vm10387_vm1 = vmmov %vm10372_vm0 }
 0x37a   : > { %v6635_v4 = vpop.eup %6634  ;;  %v3401_v23 = vpop.permute.xlu0 %3400 }
 0x37b   : > { %v6637_v34 = vpop.eup %6636  ;;  %3428 = vrot.lane.b32.xlu0 %v6635_v4, %s7036_s12 }
 0x37c   : > { %3430 = vrot.lane.b32.xlu1 %v6637_v34, %s7036_s12  ;;  %v6639_v25 = vpop.eup %6638  ;;  %v9180_v34 = vld [vmem:[#allocation4 + $0x60] sm:$0xff] }
 0x37d   : > { %v3031_v4 = vadd.f32 1.0, %v6639_v25  ;;  %v6641_v35 = vpop.eup %6640  ;;  %v10371_v25 = vld [vmem:[#allocation48_spill] sm:$0xff] }
 0x37e   : > { %v6643_v43 = vpop.eup %6642 }
 0x37f   : > { %3128 = vrot.lane.b32.xlu0 %v3096_v41, %s7037_s23  ;;  %v3108_v41 = vmul.f32 %v5679_v1, %v9180_v34  ;;  %6644 = vrcp.f32 %v3031_v4  ;;  %v3035_v12 = vadd.f32 1.0, %v6643_v43  ;;  %v2970_v4 = vadd.f32 %v2954_v56, %v8954_v48 }
 0x380   : > { %3130 = vrot.lane.b32.xlu1 %v3097_v44, %s7037_s23  ;;  %v9184_v44 = vld [vmem:[#allocation4 + $0x68] sm:$0xff]  ;;  %6646 = vpow2.f32 %v5657_v16  ;;  %v2974_v43 = vadd.f32 %v2958_v7, %v8987_v37 }
 0x381   : > { %v3109_v26 = vmul.f32 %v5680_v14, %v9184_v44  ;;  %v5654_v42 = vmul.f32 -1.442695, %v2970_v4  ;;  %v2949_v4 = vld [vmem:[%s10153_s5 + $0x70] sm:$0xff] }
 0x383   : > { %3132 = vrot.lane.b32.xlu0 %v3098_v9, %s7037_s23  ;;  %v2943_v9 = vld [vmem:[%s10153_s5 + $0x40] sm:$0xff] }
 0x384   : > { %3134 = vrot.lane.b32.xlu1 %v3099_v5, %s7037_s23  ;;  %v9195_v5 = vld [vmem:[#allocation4 + $0x70] sm:$0xff] }
 0x385   : > { %v3110_v63 = vmul.f32 %v5681_v62, %v9195_v5 }
 0x387   : > { %3136 = vrot.lane.b32.xlu0 %v3100_v30, %s7037_s23  ;;  %v2959_v30 = vmul.f32 %v2943_v9, %v9147_v3 }
 0x388   : > { %3138 = vrot.lane.b32.xlu1 %v3101_v38, %s7037_s23  ;;  %v3033_v38 = vadd.f32 1.0, %v6641_v35 }
 0x389   : > { %v6645_v28 = vpop.eup %6644 }
 0x38a   : > { %6648 = vrcp.f32 %v3033_v38  ;;  %v6647_v1 = vpop.eup %6646 }
 0x38b   : > { %3140 = vrot.lane.b32.xlu0 %v3102_v40, %s7037_s23  ;;  %v10370_v40 = vld [vmem:[#allocation38_spill] sm:$0xff] }
 0x38c   : > { %3142 = vrot.lane.b32.xlu1 %v3103_v57, %s7037_s23  ;;  %v2975_v57 = vadd.f32 %v2959_v30, %v10370_v40 }
 0x38f   : > { %3144 = vrot.lane.b32.xlu0 %v3104_v19, %s7037_s23  ;;  %v3448_v19 = vmul.f32 %v6645_v28, %v3401_v23 }
 0x390   : > { %3146 = vrot.lane.b32.xlu1 %v3105_v15, %s7037_s23  ;;  %v2961_v15 = vmul.f32 %v2945_v47, %v9165_v31 }
 0x393   : > { %3148 = vrot.lane.b32.xlu0 %v3106_v20, %s7037_s23  ;;  %v2977_v20 = vadd.f32 %v2961_v15, %v10371_v25 }
 0x394   : > { %3150 = vrot.lane.b32.xlu1 %v3107_v54, %s7037_s23  ;;  %v5652_v54 = vmul.f32 -1.442695, %v2968_v17  ;;  %v6649_v10 = vpop.eup %6648 }
 0x395   : > { %v5661_v14 = vmul.f32 -1.442695, %v2977_v20 }
 0x397   : > { %3152 = vrot.lane.b32.xlu0 %v3108_v41, %s7037_s23  ;;  %v2940_v41 = vld [vmem:[%s10153_s5 + $0x28] sm:$0xff] }
 0x398   : > { %3154 = vrot.lane.b32.xlu1 %v3109_v26, %s7037_s23  ;;  %v3037_v26 = vadd.f32 1.0, %v6647_v1  ;;  %v2956_v62 = vmul.f32 %v2940_v41, %v9118_v0  ;;  %v2946_v1 = vld [vmem:[%s10153_s5 + $0x58] sm:$0xff] }
 0x39a   : > { %v2972_v16 = vadd.f32 %v2956_v62, %v8968_v6 }
 0x39b   : > { %3156 = vrot.lane.b32.xlu0 %v3110_v63, %s7037_s23 }
 0x39c   : > { %3304 = vrot.lane.b32.xlu1 %v9071_v58, %s7037_s23  ;;  %v5659_v58 = vmul.f32 -1.442695, %v2975_v57 }
 0x39e   : > { %6650 = vpow2.f32 %v5659_v58  ;;  %v2944_v58 = vld [vmem:[%s10153_s5 + $0x48] sm:$0xff] }
 0x39f   : > { %3158 = vrot.lane.b32.xlu0 %v3111_v52, %s7037_s23  ;;  %6652 = vrcp.f32 %v3035_v12  ;;  %v5656_v52 = vmul.f32 -1.442695, %v2972_v16  ;;  %v5658_v12 = vmul.f32 -1.442695, %v2974_v43  ;;  %v2960_v59 = vmul.f32 %v2944_v58, %v9151_v45 }
 0x3a0   : > { %3306 = vrot.lane.b32.xlu1 %v9085_v8, %s7037_s23  ;;  %v3405_v8 = vpop.permute.xlu0 %3404  ;;  %6654 = vpow2.f32 %v5652_v54 }
 0x3a1   : > { %v3450_v13 = vmul.f32 %v6649_v10, %v3405_v8  ;;  %6656 = vpow2.f32 %v5661_v14  ;;  %v2976_v10 = vadd.f32 %v2960_v59, %v9002_v53 }
 0x3a2   : > { %6658 = vrcp.f32 %v3037_v26 }
 0x3a3   : > { %3480 = vrot.lane.b32.xlu0 %v3448_v19, %s7037_s23  ;;  %6660 = vpow2.f32 %v5654_v42  ;;  %v5660_v42 = vmul.f32 -1.442695, %v2976_v10 }
 0x3a4   : > { %v3409_v9 = vpop.permute.xlu0 %3408 }
 0x3a7   : > { %3308 = vrot.lane.b32.xlu0 %v9096_v18, %s7037_s23 }
 0x3a8   : > { %v6651_v18 = vpop.eup %6650  ;;  %v3413_v24 = vpop.permute.xlu0 %3412 }
 0x3a9   : > { %v6653_v35 = vpop.eup %6652  ;;  %v3039_v30 = vadd.f32 1.0, %v6651_v18 }
 0x3aa   : > { %v3452_v63 = vmul.f32 %v6653_v35, %v3409_v9  ;;  %v6655_v38 = vpop.eup %6654  ;;  %v2965_v9 = vmul.f32 %v2949_v4, %v9195_v5 }
 0x3ab   : > { %3484 = vrot.lane.b32.xlu0 %v3450_v13, %s7037_s23  ;;  %6662 = vrcp.f32 %v3039_v30  ;;  %v3032_v57 = vadd.f32 1.0, %v6655_v38  ;;  %v6657_v23 = vpop.eup %6656  ;;  %v2948_v38 = vld [vmem:[%s10153_s5 + $0x68] sm:$0xff] }
 0x3ac   : > { %v6659_v47 = vpop.eup %6658  ;;  %6664 = vpow2.f32 %v5656_v52  ;;  %v3041_v15 = vadd.f32 1.0, %v6657_v23  ;;  %v3417_v56 = vpop.permute.xlu0 %3416  ;;  %v2981_v52 = vadd.f32 %v2965_v9, %v9063_v49 }
 0x3ad   : > { %v3454_v28 = vmul.f32 %v6659_v47, %v3413_v24  ;;  %6666 = vrcp.f32 %v3032_v57  ;;  %v6661_v17 = vpop.eup %6660 }
 0x3ae   : > { %6668 = vrcp.f32 %v3041_v15  ;;  %v3034_v20 = vadd.f32 1.0, %v6661_v17  ;;  %v5665_v47 = vmul.f32 -1.442695, %v2981_v52 }
 0x3af   : > { %3312 = vrot.lane.b32.xlu0 %v9114_v27, %s7037_s23  ;;  %v2947_v27 = vld [vmem:[%s10153_s5 + $0x60] sm:$0xff]  ;;  %6670 = vpow2.f32 %v5658_v12 }
 0x3b0   : > { %v2963_v19 = vmul.f32 %v2947_v27, %v9180_v34  ;;  %6672 = vrcp.f32 %v3034_v20  ;;  %v2964_v27 = vmul.f32 %v2948_v38, %v9184_v44 }
 0x3b3   : > { %3488 = vrot.lane.b32.xlu0 %v3452_v63, %s7037_s23 }
 0x3b5   : > { %v6663_v54 = vpop.eup %6662 }
 0x3b6   : > { %v3456_v8 = vmul.f32 %v6663_v54, %v3417_v56  ;;  %v6665_v14 = vpop.eup %6664  ;;  %v3421_v18 = vpop.permute.xlu0 %3420 }
 0x3b7   : > { %3316 = vrot.lane.b32.xlu0 %v9132_v46, %s7037_s23  ;;  %v2979_v46 = vadd.f32 %v2963_v19, %v9048_v61  ;;  %v6667_v41 = vpop.eup %6666  ;;  %v3036_v35 = vadd.f32 1.0, %v6665_v14 }
 0x3b8   : > { %v6669_v63 = vpop.eup %6668 }
 0x3b9   : > { %v5663_v13 = vmul.f32 -1.442695, %v2979_v46  ;;  %v3458_v16 = vmul.f32 %v6669_v63, %v3421_v18  ;;  %v6671_v30 = vpop.eup %6670 }
 0x3ba   : > { %v3038_v23 = vadd.f32 1.0, %v6671_v30 }
 0x3bb   : > { %3492 = vrot.lane.b32.xlu0 %v3454_v28, %s7037_s23  ;;  %6674 = vpow2.f32 %v5663_v13  ;;  %v2980_v28 = vadd.f32 %v2964_v27, %v9050_v22 }
 0x3bc   : > { %6676 = vpow2.f32 %v5660_v42 }
 0x3bd   : > { %6678 = vrcp.f32 %v3036_v35  ;;  %v5664_v59 = vmul.f32 -1.442695, %v2980_v28 }
 0x3bf   : > { %3320 = vrot.lane.b32.xlu0 %v9147_v3, %s7037_s23  ;;  %v2962_v3 = vmul.f32 %v2946_v1, %v9169_v32 }
 0x3c1   : > { %v2978_v51 = vadd.f32 %v2962_v3, %v9017_v55 }
 0x3c3   : > { %3496 = vrot.lane.b32.xlu0 %v3456_v8, %s7037_s23  ;;  %v5662_v24 = vmul.f32 -1.442695, %v2978_v51 }
 0x3c4   : > { %v3403_v26 = vpop.permute.xlu1 %3402 }
 0x3c5   : > { %v3449_v62 = vmul.f32 %v6667_v41, %v3403_v26  ;;  %6680 = vpow2.f32 %v5662_v24 }
 0x3c6   : > { %6682 = vrcp.f32 %v3038_v23 }
 0x3c7   : > { %3324 = vrot.lane.b32.xlu0 %v9165_v31, %s7037_s23  ;;  %3482 = vrot.lane.b32.xlu1 %v3449_v62, %s7037_s23  ;;  %v6673_v31 = vpop.eup %6672  ;;  %6684 = vpow2.f32 %v5665_v47 }
 0x3c8   : > { %v3407_v7 = vpop.permute.xlu1 %3406  ;;  %v6675_v43 = vpop.eup %6674 }
 0x3c9   : > { %v3451_v57 = vmul.f32 %v6673_v31, %v3407_v7  ;;  %v3043_v58 = vadd.f32 1.0, %v6675_v43  ;;  %v6677_v15 = vpop.eup %6676 }
 0x3ca   : > { %v6679_v17 = vpop.eup %6678  ;;  %v3040_v46 = vadd.f32 1.0, %v6677_v15 }
 0x3cb   : > { %3500 = vrot.lane.b32.xlu0 %v3458_v16, %s7037_s23  ;;  %3310 = vrot.lane.b32.xlu1 %v9103_v2, %s7037_s23  ;;  %v2950_v2 = vld [vmem:[%s10153_s5 + $0x78] sm:$0xff]  ;;  %6686 = vrcp.f32 %v3043_v58 }
 0x3cc   : > { %v3411_v19 = vpop.permute.xlu1 %3410  ;;  %6688 = vpow2.f32 %v5664_v59 }
 0x3cd   : > { %v3453_v12 = vmul.f32 %v6679_v17, %v3411_v19  ;;  %6690 = vrcp.f32 %v3040_v46 }
 0x3cf   : > { %3328 = vrot.lane.b32.xlu0 %v9180_v34, %s7037_s23  ;;  %3486 = vrot.lane.b32.xlu1 %v3451_v57, %s7037_s23  ;;  %v2966_v34 = vmul.f32 %v2950_v2, %v9207_v21  ;;  %v6681_v20 = vpop.eup %6680 }
 0x3d0   : > { %v3415_v54 = vpop.permute.xlu1 %3414  ;;  %v6683_v8 = vpop.eup %6682  ;;  %v3042_v13 = vadd.f32 1.0, %v6681_v20 }
 0x3d1   : > { %v2982_v56 = vadd.f32 %v2966_v34, %v9066_v39  ;;  %v3455_v1 = vmul.f32 %v6683_v8, %v3415_v54 }
 0x3d3   : > { %3314 = vrot.lane.b32.xlu1 %v9118_v0, %s7037_s23  ;;  %v6685_v0 = vpop.eup %6684  ;;  %v5666_v10 = vmul.f32 -1.442695, %v2982_v56 }
 0x3d4   : > { %v3045_v14 = vadd.f32 1.0, %v6685_v0  ;;  %v3419_v41 = vpop.permute.xlu1 %3418 }
 0x3d5   : > { %v6687_v4 = vpop.eup %6686  ;;  %6692 = vpow2.f32 %v5666_v10 }
 0x3d6   : > { %6694 = vrcp.f32 %v3042_v13  ;;  %v6689_v62 = vpop.eup %6688 }
 0x3d7   : > { %3490 = vrot.lane.b32.xlu1 %v3453_v12, %s7037_s23  ;;  %6696 = vrcp.f32 %v3045_v14  ;;  %v3044_v18 = vadd.f32 1.0, %v6689_v62 }
 0x3d8   : > { %v3423_v9 = vpop.permute.xlu1 %3422 }
 0x3d9   : > { %6698 = vrcp.f32 %v3044_v18 }
 0x3db   : > { %3318 = vrot.lane.b32.xlu1 %v9136_v36, %s7037_s23  ;;  %v6691_v36 = vpop.eup %6690 }
 0x3dc   : > { %v3457_v42 = vmul.f32 %v6691_v36, %v3419_v41 }
 0x3df   : > { %3494 = vrot.lane.b32.xlu1 %v3455_v1, %s7037_s23  ;;  %v6693_v63 = vpop.eup %6692 }
 0x3e0   : > { %v3425_v3 = vpop.permute.xlu0 %3424  ;;  %v6695_v51 = vpop.eup %6694  ;;  %v3046_v52 = vadd.f32 1.0, %v6693_v63 }
 0x3e1   : > { %v3460_v26 = vmul.f32 %v6687_v4, %v3425_v3  ;;  %v3427_v35 = vpop.permute.xlu1 %3426  ;;  %v6697_v16 = vpop.eup %6696  ;;  %v3459_v30 = vmul.f32 %v6695_v51, %v3423_v9 }
 0x3e2   : > { %6700 = vrcp.f32 %v3046_v52 }
 0x3e3   : > { %3504 = vrot.lane.b32.xlu0 %v3460_v26, %s7037_s23  ;;  %3322 = vrot.lane.b32.xlu1 %v9151_v45, %s7037_s23 }
 0x3e7   : > { %3332 = vrot.lane.b32.xlu0 %v9195_v5, %s7037_s23  ;;  %3498 = vrot.lane.b32.xlu1 %v3457_v42, %s7037_s23 }
 0x3eb   : > { %3326 = vrot.lane.b32.xlu1 %v9169_v32, %s7037_s23  ;;  %v6699_v32 = vpop.eup %6698 }
 0x3ec   : > { %v3461_v57 = vmul.f32 %v6699_v32, %v3427_v35  ;;  %v6701_v19 = vpop.eup %6700 }
 0x3ed   : > { %v3429_v45 = vpop.permute.xlu0 %3428 }
 0x3ee   : > { %v3462_v38 = vmul.f32 %v6697_v16, %v3429_v45  ;;  %v3431_v7 = vpop.permute.xlu1 %3430 }
 0x3ef   : > { %3502 = vrot.lane.b32.xlu1 %v3459_v30, %s7037_s23  ;;  %v3463_v15 = vmul.f32 %v6701_v19, %v3431_v7 }
 0x3f0   : > { %3508 = vrot.lane.b32.xlu0 %v3462_v38, %s7037_s23 }
 0x3f1   : > { %v3129_v5 = vpop.permute.xlu0 %3128 }
 0x3f2   : > { %v3176_v31 = vadd.f32 %v3129_v5, %v10366_v11  ;;  %v3131_v24 = vpop.permute.xlu1 %3130 }
 0x3f3   : > { %3330 = vrot.lane.b32.xlu1 %v9184_v44, %s7037_s23  ;;  %v3177_v42 = vadd.f32 %v3131_v24, %v8934_v33 }
 0x3f4   : > { %v5683_v27 = vmul.f32 -1.442695, %v3176_v31 }
 0x3f5   : > { %v3133_v23 = vpop.permute.xlu0 %3132  ;;  %v5684_v16 = vmul.f32 -1.442695, %v3177_v42 }
 0x3f6   : > { %6702 = vpow2.f32 %v5683_v27  ;;  %v3135_v47 = vpop.permute.xlu1 %3134  ;;  %v3178_v43 = vadd.f32 %v3133_v23, %v10367_v29 }
 0x3f7   : > { %3506 = vrot.lane.b32.xlu1 %v3461_v57, %s7037_s23  ;;  %v3179_v52 = vadd.f32 %v3135_v47, %v8954_v48 }
 0x3f8   : > { %v5685_v58 = vmul.f32 -1.442695, %v3178_v43 }
 0x3f9   : > { %v3137_v28 = vpop.permute.xlu0 %3136  ;;  %v5686_v57 = vmul.f32 -1.442695, %v3179_v52 }
 0x3fa   : > { %v9312_v2 = vpop.permute.xlu1 %3138  ;;  %6704 = vpow2.f32 %v5685_v58  ;;  %v3180_v12 = vadd.f32 %v3137_v28, %v10368_v50 }
 0x3fb   : > { %3334 = vrot.lane.b32.xlu1 %v9207_v21, %s7037_s23  ;;  %v3181_v19 = vadd.f32 %v9312_v2, %v8968_v6 }
 0x3fc   : > { %v5687_v20 = vmul.f32 -1.442695, %v3180_v12 }
 0x3fd   : > { %v3141_v44 = vpop.permute.xlu0 %3140  ;;  %v5688_v12 = vmul.f32 -1.442695, %v3181_v19 }
 0x3fe   : > { %v9316_v17 = vpop.permute.xlu1 %3142  ;;  %v3182_v21 = vadd.f32 %v3141_v44, %v10369_v60 }
 0x3ff   : > { %3510 = vrot.lane.b32.xlu1 %v3463_v15, %s7037_s23  ;;  %s7038_s23 = smov 120  }
 0x400   : > { %v6703_v34 = vpop.eup %6702  ;;  %v5689_v13 = vmul.f32 -1.442695, %v3182_v21  ;;  %v3183_v21 = vadd.f32 %v9316_v17, %v8987_v37 }
 0x401   : > { %v3145_v59 = vpop.permute.xlu0 %3144  ;;  %v3240_v56 = vadd.f32 1.0, %v6703_v34 }
 0x402   : > { %v9320_v46 = vpop.permute.xlu1 %3146  ;;  %v3184_v41 = vadd.f32 %v3145_v59, %v10370_v40 }
 0x403   : > { %6706 = vrcp.f32 %v3240_v56  ;;  %v3185_v17 = vadd.f32 %v9320_v46, %v9002_v53 }
 0x404   : > { %6708 = vpow2.f32 %v5687_v20  ;;  %v6705_v1 = vpop.eup %6704  ;;  %v5691_v9 = vmul.f32 -1.442695, %v3184_v41 }
 0x405   : > { %v3149_v54 = vpop.permute.xlu0 %3148  ;;  %v3242_v14 = vadd.f32 1.0, %v6705_v1  ;;  %6710 = vpow2.f32 %v5689_v13 }
 0x406   : > { %v9322_v8 = vpop.permute.xlu1 %3150  ;;  %v3186_v30 = vadd.f32 %v3149_v54, %v10371_v25 }
 0x407   : > { %6712 = vrcp.f32 %v3242_v14 }
 0x408   : > { %6714 = vpow2.f32 %v5691_v9  ;;  %v5693_v5 = vmul.f32 -1.442695, %v3186_v30 }
 0x409   : > { %v9325_v0 = vpop.permute.xlu0 %3152 }
 0x40a   : > { %v9327_v10 = vpop.permute.xlu1 %3154 }
 0x40d   : > { %v9329_v4 = vpop.permute.xlu0 %3156  ;;  %v6707_v3 = vpop.eup %6706 }
 0x40e   : > { %v3305_v26 = vpop.permute.xlu1 %3304  ;;  %v6709_v36 = vpop.eup %6708 }
 0x40f   : > { %v3352_v18 = vmul.f32 %v6707_v3, %v3305_v26  ;;  %v3244_v35 = vadd.f32 1.0, %v6709_v36  ;;  %v6711_v38 = vpop.eup %6710  ;;  %v5690_v3 = vmul.f32 -1.442695, %v3183_v21  ;;  %v3188_v26 = vadd.f32 %v9325_v0, %v9048_v61 }
 0x410   : > { %v3246_v24 = vadd.f32 1.0, %v6711_v38  ;;  %v5692_v38 = vmul.f32 -1.442695, %v3185_v17 }
 0x411   : > { %v9332_v62 = vpop.permute.xlu0 %3158  ;;  %6716 = vrcp.f32 %v3244_v35  ;;  %v6713_v7 = vpop.eup %6712 }
 0x412   : > { %6718 = vpow2.f32 %v5684_v16  ;;  %v6715_v43 = vpop.eup %6714 }
 0x413   : > { %6720 = vpow2.f32 %v5693_v5  ;;  %v3248_v58 = vadd.f32 1.0, %v6715_v43  ;;  %v3190_v43 = vadd.f32 %v9329_v4, %v9063_v49  ;;  %v3189_v4 = vadd.f32 %v9327_v10, %v9050_v22 }
 0x414   : > { %6722 = vrcp.f32 %v3246_v24 }
 0x415   : > { %v3481_v63 = vpop.permute.xlu0 %3480  ;;  %6724 = vpow2.f32 %v5686_v57 }
 0x416   : > { %v9335_v51 = vadd.f32 %v3481_v63, %v3352_v18  ;;  %6726 = vrcp.f32 %v3248_v58  ;;  %v5695_v18 = vmul.f32 -1.442695, %v3188_v26  ;;  %v3307_v63 = vpop.permute.xlu1 %3306 }
 0x417   : > { %6728 = vpow2.f32 %v5688_v12 }
 0x418   : > { %3577 = vrot.lane.b32.xlu0 %v9335_v51, %s7038_s23 }
 0x419   : > { %v3309_v45 = vpop.permute.xlu0 %3308 }
 0x41a   : > { %v3354_v31 = vmul.f32 %v6713_v7, %v3309_v45 }
 0x41b   : > { %v6717_v28 = vpop.eup %6716 }
 0x41c   : > { %v6719_v44 = vpop.eup %6718 }
 0x41d   : > { %v3485_v32 = vpop.permute.xlu0 %3484  ;;  %v3241_v59 = vadd.f32 1.0, %v6719_v44  ;;  %v6721_v20 = vpop.eup %6720 }
 0x41e   : > { %v9341_v27 = vadd.f32 %v3485_v32, %v3354_v31  ;;  %v6723_v54 = vpop.eup %6722  ;;  %v3250_v1 = vadd.f32 1.0, %v6721_v20  ;;  %v3187_v32 = vadd.f32 %v9322_v8, %v9017_v55  ;;  %v5697_v8 = vmul.f32 -1.442695, %v3190_v43 }
 0x41f   : > { %6730 = vrcp.f32 %v3241_v59  ;;  %v6725_v14 = vpop.eup %6724 }
 0x420   : > { %3581 = vrot.lane.b32.xlu0 %v9341_v27, %s7038_s23  ;;  %v3243_v36 = vadd.f32 1.0, %v6725_v14  ;;  %6732 = vrcp.f32 %v3250_v1  ;;  %v6727_v9 = vpop.eup %6726 }
 0x421   : > { %v3313_v23 = vpop.permute.xlu0 %3312  ;;  %6734 = vpow2.f32 %v5690_v3  ;;  %v6729_v30 = vpop.eup %6728 }
 0x422   : > { %v3356_v47 = vmul.f32 %v6717_v28, %v3313_v23  ;;  %6736 = vrcp.f32 %v3243_v36  ;;  %v3245_v52 = vadd.f32 1.0, %v6729_v30 }
 0x423   : > { %6738 = vpow2.f32 %v5695_v18 }
 0x424   : > { %6740 = vpow2.f32 %v5692_v38 }
 0x425   : > { %v3489_v15 = vpop.permute.xlu0 %3488  ;;  %6742 = vrcp.f32 %v3245_v52 }
 0x426   : > { %v9347_v34 = vadd.f32 %v3489_v15, %v3356_v47  ;;  %v5694_v15 = vmul.f32 -1.442695, %v3187_v32 }
 0x428   : > { %3585 = vrot.lane.b32.xlu0 %v9347_v34, %s7038_s23  ;;  %6744 = vpow2.f32 %v5694_v15 }
 0x429   : > { %v3317_v56 = vpop.permute.xlu0 %3316  ;;  %v6731_v0 = vpop.eup %6730 }
 0x42a   : > { %v3358_v2 = vmul.f32 %v6723_v54, %v3317_v56  ;;  %v3353_v7 = vmul.f32 %v6731_v0, %v3307_v63  ;;  %v6733_v46 = vpop.eup %6732 }
 0x42b   : > { %v6735_v23 = vpop.eup %6734 }
 0x42c   : > { %v6737_v58 = vpop.eup %6736  ;;  %v3247_v44 = vadd.f32 1.0, %v6735_v23 }
 0x42d   : > { %v3493_v13 = vpop.permute.xlu0 %3492  ;;  %v6739_v56 = vpop.eup %6738 }
 0x42e   : > { %v9353_v41 = vadd.f32 %v3493_v13, %v3358_v2  ;;  %6746 = vrcp.f32 %v3247_v44  ;;  %v3252_v54 = vadd.f32 1.0, %v6739_v56  ;;  %v6741_v2 = vpop.eup %6740  ;;  %v5696_v13 = vmul.f32 -1.442695, %v3189_v4 }
 0x42f   : > { %6748 = vpow2.f32 %v5697_v8  ;;  %v6743_v1 = vpop.eup %6742  ;;  %v3249_v3 = vadd.f32 1.0, %v6741_v2 }
 0x430   : > { %3589 = vrot.lane.b32.xlu0 %v9353_v41, %s7038_s23  ;;  %6750 = vrcp.f32 %v3252_v54 }
 0x431   : > { %v3321_v42 = vpop.permute.xlu0 %3320  ;;  %6752 = vpow2.f32 %v5696_v13 }
 0x432   : > { %v3360_v35 = vmul.f32 %v6727_v9, %v3321_v42  ;;  %v3191_v42 = vadd.f32 %v9332_v62, %v9066_v39  ;;  %v6745_v10 = vpop.eup %6744  ;;  %6754 = vrcp.f32 %v3249_v3 }
 0x435   : > { %v3497_v16 = vpop.permute.xlu0 %3496 }
 0x436   : > { %v9361_v45 = vadd.f32 %v3497_v16, %v3360_v35  ;;  %v5698_v35 = vmul.f32 -1.442695, %v3191_v42  ;;  %v3251_v16 = vadd.f32 1.0, %v6745_v10 }
 0x438   : > { %3593 = vrot.lane.b32.xlu0 %v9361_v45, %s7038_s23  ;;  %v6747_v17 = vpop.eup %6746  ;;  %6756 = vpow2.f32 %v5698_v35 }
 0x439   : > { %v3325_v5 = vpop.permute.xlu0 %3324  ;;  %v3483_v31 = vpop.permute.xlu1 %3482  ;;  %6758 = vrcp.f32 %v3251_v16  ;;  %v5699_v16 = vld [vmem:[%s10153_s5 + $0x100] sm:$0xff] }
 0x43a   : > { %v9365_v24 = vadd.f32 %v3483_v31, %v3353_v7  ;;  %v3362_v57 = vmul.f32 %v6733_v46, %v3325_v5  ;;  %v6749_v18 = vpop.eup %6748 }
 0x43b   : > { %v3254_v38 = vadd.f32 1.0, %v6749_v18  ;;  %v6751_v52 = vpop.eup %6750 }
 0x43c   : > { %3579 = vrot.lane.b32.xlu1 %v9365_v24, %s7038_s23  ;;  %v6753_v46 = vpop.eup %6752 }
 0x43d   : > { %v3501_v28 = vpop.permute.xlu0 %3500  ;;  %v3311_v19 = vpop.permute.xlu1 %3310  ;;  %6760 = vrcp.f32 %v3254_v38  ;;  %v3253_v43 = vadd.f32 1.0, %v6753_v46  ;;  %v5705_v46 = vld [vmem:[%s10153_s5 + $0x130] sm:$0xff] }
 0x43e   : > { %v9373_v47 = vadd.f32 %v3501_v28, %v3362_v57  ;;  %v3355_v12 = vmul.f32 %v6737_v58, %v3311_v19  ;;  %v6755_v57 = vpop.eup %6754 }
 0x43f   : > { %6762 = vrcp.f32 %v3253_v43  ;;  %v5707_v43 = vld [vmem:[%s10153_s5 + $0x140] sm:$0xff] }
 0x440   : > { %3597 = vrot.lane.b32.xlu0 %v9373_v47, %s7038_s23 }
 0x441   : > { %v3487_v59 = vpop.permute.xlu1 %3486  ;;  %v3329_v30 = vpop.permute.xlu0 %3328 }
 0x442   : > { %v9377_v20 = vadd.f32 %v3487_v59, %v3355_v12  ;;  %v3364_v5 = vmul.f32 %v6751_v52, %v3329_v30  ;;  %v6757_v15 = vpop.eup %6756 }
 0x443   : > { %v6759_v12 = vpop.eup %6758  ;;  %v3255_v56 = vadd.f32 1.0, %v6757_v15  ;;  %v5700_v15 = vld [vmem:[%s10153_s5 + $0x108] sm:$0xff] }
 0x444   : > { %3583 = vrot.lane.b32.xlu1 %v9377_v20, %s7038_s23 }
 0x445   : > { %v3315_v21 = vpop.permute.xlu1 %3314  ;;  %6764 = vrcp.f32 %v3255_v56 }
 0x446   : > { %v3357_v14 = vmul.f32 %v6743_v1, %v3315_v21  ;;  %6766 = vtanh.f32 %v9335_v51  ;;  %v5701_v51 = vld [vmem:[%s10153_s5 + $0x110] sm:$0xff] }
 0x447   : > { %v6761_v8 = vpop.eup %6760  ;;  %6768 = vtanh.f32 %v9365_v24  ;;  %v5714_v24 = vld [vmem:[%s10153_s5 + $0x178] sm:$0xff] }
 0x448   : > { %6770 = vtanh.f32 %v9377_v20 }
 0x449   : > { %v3491_v26 = vpop.permute.xlu1 %3490  ;;  %6772 = vtanh.f32 %v9341_v27 }
 0x44a   : > { %v9383_v36 = vadd.f32 %v3491_v26, %v3357_v14  ;;  %v6763_v14 = vpop.eup %6762 }
 0x44c   : > { %3587 = vrot.lane.b32.xlu1 %v9383_v36, %s7038_s23  ;;  %6774 = vtanh.f32 %v9383_v36 }
 0x44d   : > { %v3319_v9 = vpop.permute.xlu1 %3318  ;;  %6776 = vtanh.f32 %v9347_v34 }
 0x44e   : > { %v3359_v63 = vmul.f32 %v6747_v17, %v3319_v9 }
 0x44f   : > { %v6765_v9 = vpop.eup %6764 }
 0x451   : > { %v3495_v0 = vpop.permute.xlu1 %3494 }
 0x452   : > { %v9389_v7 = vadd.f32 %v3495_v0, %v3359_v63  ;;  %v6767_v63 = vpop.eup %6766 }
 0x454   : > { %3591 = vrot.lane.b32.xlu1 %v9389_v7, %s7038_s23  ;;  %6778 = vtanh.f32 %v9389_v7 }
 0x455   : > { %v3505_v62 = vpop.permute.xlu0 %3504  ;;  %v3323_v31 = vpop.permute.xlu1 %3322  ;;  %6780 = vtanh.f32 %v9353_v41 }
 0x456   : > { %v9393_v32 = vadd.f32 %v3505_v62, %v3364_v5  ;;  %v3361_v23 = vmul.f32 %v6755_v57, %v3323_v31  ;;  %v5703_v5 = vld [vmem:[%s10153_s5 + $0x120] sm:$0xff] }
 0x458   : > { %3601 = vrot.lane.b32.xlu0 %v9393_v32, %s7038_s23 }
 0x459   : > { %v3499_v28 = vpop.permute.xlu1 %3498  ;;  %v3333_v44 = vpop.permute.xlu0 %3332 }
 0x45a   : > { %v9397_v19 = vadd.f32 %v3499_v28, %v3361_v23  ;;  %v3366_v4 = vmul.f32 %v6761_v8, %v3333_v44  ;;  %v5709_v8 = vld [vmem:[%s10153_s5 + $0x150] sm:$0xff] }
 0x45c   : > { %3595 = vrot.lane.b32.xlu1 %v9397_v19, %s7038_s23  ;;  %6782 = vtanh.f32 %v9397_v19 }
 0x45d   : > { %v3327_v58 = vpop.permute.xlu1 %3326  ;;  %6784 = vtanh.f32 %v9361_v45 }
 0x45e   : > { %v3363_v59 = vmul.f32 %v6759_v12, %v3327_v58 }
 0x461   : > { %v3503_v54 = vpop.permute.xlu1 %3502 }
 0x462   : > { %v9401_v21 = vadd.f32 %v3503_v54, %v3363_v59  ;;  %v3509_v2 = vpop.permute.xlu0 %3508 }
 0x463   : > { %v9403_v1 = vadd.f32 %v3509_v2, %v3366_v4  ;;  %v5702_v4 = vld [vmem:[%s10153_s5 + $0x118] sm:$0xff] }
 0x464   : > { %3599 = vrot.lane.b32.xlu1 %v9401_v21, %s7038_s23  ;;  %6786 = vtanh.f32 %v9401_v21 }
 0x465   : > { %3605 = vrot.lane.b32.xlu0 %v9403_v1, %s7038_s23  ;;  %v3331_v13 = vpop.permute.xlu1 %3330  ;;  %6788 = vtanh.f32 %v9373_v47 }
 0x466   : > { %v3365_v3 = vmul.f32 %v6763_v14, %v3331_v13  ;;  %v5704_v13 = vld [vmem:[%s10153_s5 + $0x128] sm:$0xff] }
 0x469   : > { %v3507_v26 = vpop.permute.xlu1 %3506 }
 0x46a   : > { %v9409_v42 = vadd.f32 %v3507_v26, %v3365_v3  ;;  %v5706_v26 = vld [vmem:[%s10153_s5 + $0x138] sm:$0xff] }
 0x46c   : > { %3603 = vrot.lane.b32.xlu1 %v9409_v42, %s7038_s23  ;;  %6790 = vtanh.f32 %v9409_v42 }
 0x46d   : > { %v3335_v10 = vpop.permute.xlu1 %3334  ;;  %6792 = vtanh.f32 %v9393_v32 }
 0x46e   : > { %v3367_v17 = vmul.f32 %v6765_v9, %v3335_v10 }
 0x471   : > { %v3511_v18 = vpop.permute.xlu1 %3510 }
 0x472   : > { %v9414_v35 = vadd.f32 %v3511_v18, %v3367_v17  ;;  %v5711_v17 = vld [vmem:[%s10153_s5 + $0x160] sm:$0xff] }
 0x474   : > { %3607 = vrot.lane.b32.xlu1 %v9414_v35, %s7038_s23  ;;  %6794 = vtanh.f32 %v9414_v35  ;;  %s5847_s23 = sshll.u32 %s7009_s17, 1 }
 0x475   : > { %6796 = vtanh.f32 %v9403_v1 }
 0x478   : > { %3849 = vrot.lane.b32.xlu1 %v6767_v63, %s10231_s21 }
 0x48a   : > { %v3578_v30 = vpop.permute.xlu0 %3577 }
 0x48b   : > { %v3625_v0 = vmul.f32 %v5699_v16, %v3578_v30  ;;  %5387 = vst.msk [vmem:[#allocation4] sm:$0xff] %vm10372_vm0, %v3578_v30  ;;  %v5708_v16 = vld [vmem:[%s10153_s5 + $0x148] sm:$0xff] }
 0x48d   : > { %3657 = vrot.lane.b32.xlu0 %v3625_v0, %s7040_s18 }
 0x492   : > { %v3582_v38 = vpop.permute.xlu0 %3581 }
 0x493   : > { %v3627_v52 = vmul.f32 %v5701_v51, %v3582_v38  ;;  %5389 = vst.msk [vmem:[#allocation4 + $0x10] sm:$0xff] %vm10373_vm11, %v3582_v38  ;;  %v5710_v51 = vld [vmem:[%s10153_s5 + $0x158] sm:$0xff]  ;;  %v5713_v38 = vld [vmem:[%s10153_s5 + $0x170] sm:$0xff]  ;;  %vm10388_vm11 = vmmov %vm10372_vm0 }
 0x495   : > { %3661 = vrot.lane.b32.xlu0 %v3627_v52, %s7040_s18 }
 0x49a   : > { %v3586_v62 = vpop.permute.xlu0 %3585 }
 0x49b   : > { %v3629_v31 = vmul.f32 %v5703_v5, %v3586_v62  ;;  %5391 = vst.msk [vmem:[#allocation4 + $0x20] sm:$0xff] %vm10374_vm8, %v3586_v62  ;;  %vm10389_vm8 = vmmov %vm10372_vm0 }
 0x49d   : > { %3665 = vrot.lane.b32.xlu0 %v3629_v31, %s7040_s18 }
 0x4a2   : > { %v3590_v57 = vpop.permute.xlu0 %3589 }
 0x4a3   : > { %v3631_v23 = vmul.f32 %v5705_v46, %v3590_v57  ;;  %5393 = vst.msk [vmem:[#allocation4 + $0x30] sm:$0xff] %vm10375_vm3, %v3590_v57  ;;  %v5712_v46 = vld [vmem:[%s10153_s5 + $0x168] sm:$0xff]  ;;  %vm10390_vm3 = vmmov %vm10372_vm0 }
 0x4a5   : > { %3669 = vrot.lane.b32.xlu0 %v3631_v23, %s7040_s18 }
 0x4aa   : > { %v3594_v28 = vpop.permute.xlu0 %3593 }
 0x4ab   : > { %v3633_v58 = vmul.f32 %v5707_v43, %v3594_v28  ;;  %5395 = vst.msk [vmem:[#allocation4 + $0x40] sm:$0xff] %vm10376_vm10, %v3594_v28  ;;  %v6769_v43 = vpop.eup %6768  ;;  %vm10391_vm10 = vmmov %vm10372_vm0 }
 0x4ac   : > { %v6771_v27 = vpop.eup %6770 }
 0x4ad   : > { %3673 = vrot.lane.b32.xlu0 %v3633_v58, %s7040_s18  ;;  %v6773_v36 = vpop.eup %6772 }
 0x4ae   : > { %v3580_v44 = vpop.permute.xlu1 %3579  ;;  %v6775_v58 = vpop.eup %6774 }
 0x4af   : > { %v3626_v12 = vmul.f32 %v5700_v15, %v3580_v44  ;;  %5388 = vst.msk [vmem:[#allocation4 + $0x8] sm:$0xff] %vm10377_vm13, %v3580_v44  ;;  %v6777_v34 = vpop.eup %6776  ;;  %vm10392_vm13 = vmmov %vm10372_vm0 }
 0x4b0   : > { %v6779_v7 = vpop.eup %6778 }
 0x4b1   : > { %3659 = vrot.lane.b32.xlu1 %v3626_v12, %s7040_s18  ;;  %v6781_v41 = vpop.eup %6780 }
 0x4b2   : > { %v3598_v59 = vpop.permute.xlu0 %3597  ;;  %v6783_v19 = vpop.eup %6782 }
 0x4b3   : > { %v3635_v56 = vmul.f32 %v5709_v8, %v3598_v59  ;;  %5397 = vst.msk [vmem:[#allocation4 + $0x50] sm:$0xff] %vm10378_vm9, %v3598_v59  ;;  %v6785_v45 = vpop.eup %6784  ;;  %vm10393_vm9 = vmmov %vm10372_vm0 }
 0x4b4   : > { %v6787_v21 = vpop.eup %6786 }
 0x4b5   : > { %3677 = vrot.lane.b32.xlu0 %v3635_v56, %s7040_s18  ;;  %v6789_v47 = vpop.eup %6788  ;;  %v3913_v56 = vld [vmem:[%s10154_s6] sm:$0xff] }
 0x4b6   : > { %v3584_v54 = vpop.permute.xlu1 %3583  ;;  %v6791_v42 = vpop.eup %6790  ;;  %6070 = vmatprep.subr.mxu1 %v3913_v56 }
 0x4b7   : > { %v3628_v2 = vmul.f32 %v5702_v4, %v3584_v54  ;;  %5390 = vst.msk [vmem:[#allocation4 + $0x18] sm:$0xff] %vm10379_vm2, %v3584_v54  ;;  %v6793_v32 = vpop.eup %6792  ;;  %6071 = vmatpush3.msra.mxu1 %v3913_v56  ;;  %vm10394_vm2 = vmmov %vm10372_vm0 }
 0x4b8   : > { %v6795_v44 = vpop.eup %6794 }
 0x4b9   : > { %3663 = vrot.lane.b32.xlu1 %v3628_v2, %s7040_s18  ;;  %v6797_v8 = vpop.eup %6796 }
 0x4be   : > { %v3588_v14 = vpop.permute.xlu1 %3587 }
 0x4bf   : > { %v3630_v3 = vmul.f32 %v5704_v13, %v3588_v14  ;;  %5392 = vst.msk [vmem:[#allocation4 + $0x28] sm:$0xff] %vm10380_vm15, %v3588_v14  ;;  %vm10395_vm15 = vmmov %vm10372_vm0 }
 0x4c1   : > { %3667 = vrot.lane.b32.xlu1 %v3630_v3, %s7040_s18 }
 0x4c6   : > { %v3592_v10 = vpop.permute.xlu1 %3591 }
 0x4c7   : > { %v3632_v9 = vmul.f32 %v5706_v26, %v3592_v10  ;;  %5394 = vst.msk [vmem:[#allocation4 + $0x38] sm:$0xff] %vm10381_vm5, %v3592_v10  ;;  %vm10396_vm5 = vmmov %vm10372_vm0 }
 0x4c9   : > { %3671 = vrot.lane.b32.xlu1 %v3632_v9, %s7040_s18 }
 0x4ca   : > { %v3602_v18 = vpop.permute.xlu0 %3601 }
 0x4cb   : > { %v3637_v63 = vmul.f32 %v5711_v17, %v3602_v18  ;;  %5399 = vst.msk [vmem:[#allocation4 + $0x60] sm:$0xff] %vm10382_vm7, %v3602_v18  ;;  %vm10397_vm7 = vmmov %vm10372_vm0 }
 0x4cd   : > { %3681 = vrot.lane.b32.xlu0 %v3637_v63, %s7040_s18 }
 0x4ce   : > { %v3596_v30 = vpop.permute.xlu1 %3595 }
 0x4cf   : > { %v3634_v0 = vmul.f32 %v5708_v16, %v3596_v30  ;;  %5396 = vst.msk [vmem:[#allocation4 + $0x48] sm:$0xff] %vm10383_vm12, %v3596_v30  ;;  %vm10398_vm12 = vmmov %vm10372_vm0 }
 0x4d1   : > { %3675 = vrot.lane.b32.xlu1 %v3634_v0, %s7040_s18 }
 0x4d6   : > { %v3600_v52 = vpop.permute.xlu1 %3599 }
 0x4d7   : > { %v3636_v5 = vmul.f32 %v5710_v51, %v3600_v52  ;;  %5398 = vst.msk [vmem:[#allocation4 + $0x58] sm:$0xff] %vm10384_vm4, %v3600_v52  ;;  %v3606_v62 = vpop.permute.xlu0 %3605  ;;  %vm10399_vm4 = vmmov %vm10372_vm0 }
 0x4d8   : > { %v3639_v31 = vmul.f32 %v5713_v38, %v3606_v62  ;;  %5401 = vst.msk [vmem:[#allocation4 + $0x70] sm:$0xff] %vm10385_vm6, %v3606_v62  ;;  %vm10400_vm6 = vmmov %vm10372_vm0 }
 0x4d9   : > { %3679 = vrot.lane.b32.xlu1 %v3636_v5, %s7040_s18 }
 0x4da   : > { %3685 = vrot.lane.b32.xlu0 %v3639_v31, %s7040_s18 }
 0x4de   : > { %v3604_v57 = vpop.permute.xlu1 %3603 }
 0x4df   : > { %v3638_v23 = vmul.f32 %v5712_v46, %v3604_v57  ;;  %5400 = vst.msk [vmem:[#allocation4 + $0x68] sm:$0xff] %vm10386_vm14, %v3604_v57  ;;  %vm10401_vm14 = vmmov %vm10372_vm0 }
 0x4e1   : > { %3683 = vrot.lane.b32.xlu1 %v3638_v23, %s7040_s18 }
 0x4e5   : > { %3851 = vrot.lane.b32.xlu1 %v6769_v43, %s10231_s21 }
 0x4e6   : > { %v3608_v20 = vpop.permute.xlu1 %3607 }
 0x4e7   : > { %v3640_v28 = vmul.f32 %v5714_v24, %v3608_v20  ;;  %5402 = vst.msk [vmem:[#allocation4 + $0x78] sm:$0xff] %vm10387_vm1, %v3608_v20  ;;  %vm10402_vm1 = vmmov %vm10372_vm0 }
 0x4e9   : > { %3855 = vrot.lane.b32.xlu1 %v6771_v27, %s10231_s21  ;;  %3687 = vrot.lane.b32.xlu0 %v3640_v28, %s7040_s18 }
 0x4ea   : > { %v3850_v54 = vpop.permute.xlu1 %3849 }
 0x4ed   : > { %3859 = vrot.lane.b32.xlu1 %v6775_v58, %s10231_s21  ;;  %3853 = vrot.lane.b32.xlu0 %v6773_v36, %s10231_s21 }
 0x4f1   : > { %3863 = vrot.lane.b32.xlu1 %v6779_v7, %s10231_s21  ;;  %3857 = vrot.lane.b32.xlu0 %v6777_v34, %s10231_s21 }
 0x4f5   : > { %3867 = vrot.lane.b32.xlu1 %v6783_v19, %s10231_s21  ;;  %3861 = vrot.lane.b32.xlu0 %v6781_v41, %s10231_s21 }
 0x4f9   : > { %3871 = vrot.lane.b32.xlu1 %v6787_v21, %s10231_s21  ;;  %3865 = vrot.lane.b32.xlu0 %v6785_v45, %s10231_s21 }
 0x4fd   : > { %3875 = vrot.lane.b32.xlu1 %v6791_v42, %s10231_s21  ;;  %3869 = vrot.lane.b32.xlu0 %v6789_v47, %s10231_s21 }
 0x4ff   : > { %v3658_v15 = vpop.permute.xlu0 %3657 }
 0x500   : > { %v3705_v12 = vadd.f32 %v3658_v15, %v10366_v11  ;;  %v4299_v11 = vld [vmem:[%s10158_s10] sm:$0xff] }
 0x501   : > { %3879 = vrot.lane.b32.xlu1 %v6795_v44, %s10231_s21  ;;  %3873 = vrot.lane.b32.xlu0 %v6793_v32, %s10231_s21 }
 0x502   : > { %v5715_v35 = vmul.f32 -1.442695, %v3705_v12  ;;  %6122 = vmatprep.subr.mxu0 %v4299_v11 }
 0x503   : > { %6123 = vmatpush3.msra.mxu0 %v4299_v11 }
 0x504   : > { %6798 = vpow2.f32 %v5715_v35 }
 0x505   : > { %3877 = vrot.lane.b32.xlu0 %v6797_v8, %s10231_s21  ;;  %s10043_s21 = scalar_lea.sflag [#allocation6], %s497_s22 }
 0x507   : > { %v3662_v26 = vpop.permute.xlu0 %3661 }
 0x508   : > { %v3707_v63 = vadd.f32 %v3662_v26, %v10367_v29 }
 0x50a   : > { %v5717_v38 = vmul.f32 -1.442695, %v3707_v63 }
 0x50e   : > { %v6799_v1 = vpop.eup %6798 }
 0x50f   : > { %v3769_v59 = vadd.f32 1.0, %v6799_v1  ;;  %v3666_v18 = vpop.permute.xlu0 %3665 }
 0x510   : > { %v3709_v0 = vadd.f32 %v3666_v18, %v10368_v50 }
 0x511   : > { %6800 = vrcp.f32 %v3769_v59 }
 0x512   : > { %v5719_v62 = vmul.f32 -1.442695, %v3709_v0 }
 0x517   : > { %v3670_v52 = vpop.permute.xlu0 %3669 }
 0x51b   : > { %v6801_v4 = vpop.eup %6800 }
 0x51c   : > { %v3897_v2 = vmul.f32 %v6801_v4, %v3850_v54 }
 0x51e   : > { %3937 = vrot.lane.b32.xlu0 %v3897_v2, %s7041_s29 }
 0x51f   : > { %v3674_v31 = vpop.permute.xlu0 %3673 }
 0x520   : > { %v3713_v50 = vadd.f32 %v3674_v31, %v10370_v40 }
 0x522   : > { %v5723_v28 = vmul.f32 -1.442695, %v3713_v50 }
 0x523   : > { %v3660_v13 = vpop.permute.xlu1 %3659 }
 0x524   : > { %v3706_v14 = vadd.f32 %v3660_v13, %v8934_v33 }
 0x526   : > { %v5716_v10 = vmul.f32 -1.442695, %v3706_v14 }
 0x527   : > { %v3678_v43 = vpop.permute.xlu0 %3677 }
 0x528   : > { %6802 = vpow2.f32 %v5716_v10 }
 0x52b   : > { %v3664_v3 = vpop.permute.xlu1 %3663 }
 0x52c   : > { %v3708_v9 = vadd.f32 %v3664_v3, %v8954_v48  ;;  %v3711_v48 = vadd.f32 %v3670_v52, %v10369_v60  ;;  %v3715_v60 = vadd.f32 %v3678_v43, %v10371_v25  ;;  %v9552_v25 = vld [vmem:[%s10156_s8] sm:$0xff] }
 0x52d   : > { %6096 = vmatprep.subr.mxu1 %v9552_v25 }
 0x52e   : > { %v5718_v16 = vmul.f32 -1.442695, %v3708_v9  ;;  %v5721_v23 = vmul.f32 -1.442695, %v3711_v48  ;;  %v5725_v19 = vmul.f32 -1.442695, %v3715_v60 }
 0x530   : > { %6804 = vpow2.f32 %v5718_v16 }
 0x531   : > { %6806 = vpow2.f32 %v5717_v38 }
 0x533   : > { %v3668_v17 = vpop.permute.xlu1 %3667 }
 0x534   : > { %v3710_v30 = vadd.f32 %v3668_v17, %v8968_v6  ;;  %v6803_v6 = vpop.eup %6802 }
 0x535   : > { %v3770_v20 = vadd.f32 1.0, %v6803_v6 }
 0x536   : > { %v5720_v33 = vmul.f32 -1.442695, %v3710_v30 }
 0x538   : > { %6808 = vpow2.f32 %v5720_v33 }
 0x539   : > { %6810 = vpow2.f32 %v5719_v62 }
 0x53b   : > { %v3672_v51 = vpop.permute.xlu1 %3671 }
 0x53c   : > { %v3712_v5 = vadd.f32 %v3672_v51, %v8987_v37  ;;  %v6805_v37 = vpop.eup %6804 }
 0x53d   : > { %v3772_v34 = vadd.f32 1.0, %v6805_v37 }
 0x53e   : > { %v5722_v29 = vmul.f32 -1.442695, %v3712_v5 }
 0x53f   : > { %v3682_v36 = vpop.permute.xlu0 %3681 }
 0x540   : > { %6812 = vpow2.f32 %v5722_v29  ;;  %v3717_v45 = vadd.f32 %v3682_v36, %v9048_v61 }
 0x541   : > { %6814 = vpow2.f32 %v5721_v23 }
 0x542   : > { %v5727_v15 = vmul.f32 -1.442695, %v3717_v45 }
 0x543   : > { %v3676_v46 = vpop.permute.xlu1 %3675 }
 0x544   : > { %v3714_v57 = vadd.f32 %v3676_v46, %v9002_v53  ;;  %v6807_v53 = vpop.eup %6806 }
 0x545   : > { %v6809_v7 = vpop.eup %6808  ;;  %v3771_v21 = vadd.f32 1.0, %v6807_v53 }
 0x546   : > { %v5724_v24 = vmul.f32 -1.442695, %v3714_v57  ;;  %v6811_v41 = vpop.eup %6810 }
 0x547   : > { %v3773_v32 = vadd.f32 1.0, %v6811_v41 }
 0x548   : > { %6816 = vpow2.f32 %v5724_v24 }
 0x549   : > { %6818 = vrcp.f32 %v3770_v20 }
 0x54a   : > { %6820 = vpow2.f32 %v5723_v28  ;;  %v6813_v42 = vpop.eup %6812 }
 0x54b   : > { %v3680_v27 = vpop.permute.xlu1 %3679  ;;  %v6815_v35 = vpop.eup %6814  ;;  %v3776_v8 = vadd.f32 1.0, %v6813_v42 }
 0x54c   : > { %v3716_v58 = vadd.f32 %v3680_v27, %v9017_v55  ;;  %v3686_v47 = vpop.permute.xlu0 %3685  ;;  %v3774_v55 = vadd.f32 1.0, %v6809_v7  ;;  %v3775_v2 = vadd.f32 1.0, %v6815_v35 }
 0x54d   : > { %v3719_v44 = vadd.f32 %v3686_v47, %v9063_v49 }
 0x54e   : > { %v5726_v40 = vmul.f32 -1.442695, %v3716_v58 }
 0x54f   : > { %v5729_v11 = vmul.f32 -1.442695, %v3719_v44 }
 0x550   : > { %6822 = vpow2.f32 %v5726_v40 }
 0x551   : > { %6824 = vrcp.f32 %v3772_v34 }
 0x552   : > { %6826 = vpow2.f32 %v5725_v19  ;;  %v6817_v1 = vpop.eup %6816 }
 0x553   : > { %v3684_v12 = vpop.permute.xlu1 %3683  ;;  %6828 = vrcp.f32 %v3771_v21  ;;  %v6819_v56 = vpop.eup %6818  ;;  %v3778_v49 = vadd.f32 1.0, %v6817_v1 }
 0x554   : > { %v3718_v61 = vadd.f32 %v3684_v12, %v9050_v22  ;;  %6830 = vrcp.f32 %v3774_v55  ;;  %v6821_v54 = vpop.eup %6820 }
 0x555   : > { %6832 = vrcp.f32 %v3773_v32  ;;  %v3777_v3 = vadd.f32 1.0, %v6821_v54 }
 0x556   : > { %v5728_v59 = vmul.f32 -1.442695, %v3718_v61  ;;  %6834 = vpow2.f32 %v5727_v15 }
 0x557   : > { %v3852_v4 = vpop.permute.xlu1 %3851 }
 0x558   : > { %6836 = vpow2.f32 %v5728_v59  ;;  %v3898_v13 = vmul.f32 %v6819_v56, %v3852_v4 }
 0x559   : > { %6838 = vrcp.f32 %v3776_v8 }
 0x55a   : > { %v6823_v14 = vpop.eup %6822  ;;  %3939 = vrot.lane.b32.xlu1 %v3898_v13, %s7041_s29  ;;  %6840 = vpow2.f32 %v5729_v11 }
 0x55b   : > { %v6825_v22 = vpop.eup %6824  ;;  %v3688_v26 = vpop.permute.xlu0 %3687  ;;  %6842 = vrcp.f32 %v3775_v2  ;;  %v3780_v63 = vadd.f32 1.0, %v6823_v14 }
 0x55c   : > { %v3856_v10 = vpop.permute.xlu1 %3855  ;;  %v3720_v9 = vadd.f32 %v3688_v26, %v9066_v39  ;;  %v6827_v18 = vpop.eup %6826  ;;  %6844 = vrcp.f32 %v3778_v49 }
 0x55d   : > { %v3900_v17 = vmul.f32 %v6825_v22, %v3856_v10  ;;  %v6829_v16 = vpop.eup %6828  ;;  %6846 = vrcp.f32 %v3777_v3  ;;  %v3779_v33 = vadd.f32 1.0, %v6827_v18 }
 0x55e   : > { %v5730_v30 = vmul.f32 -1.442695, %v3720_v9  ;;  %v6831_v0 = vpop.eup %6830 }
 0x55f   : > { %3943 = vrot.lane.b32.xlu1 %v3900_v17, %s7041_s29  ;;  %v3854_v51 = vpop.permute.xlu0 %3853  ;;  %v6833_v52 = vpop.eup %6832 }
 0x560   : > { %v3860_v38 = vpop.permute.xlu1 %3859  ;;  %6848 = vpow2.f32 %v5730_v30  ;;  %v3899_v5 = vmul.f32 %v6829_v16, %v3854_v51  ;;  %v6835_v48 = vpop.eup %6834  ;;  %v5731_v30 = vld [vmem:[%s10155_s7] ss:$0 sm:$0xff] }
 0x561   : > { %v3902_v62 = vmul.f32 %v6831_v0, %v3860_v38  ;;  %6850 = vrcp.f32 %v3780_v63  ;;  %v3781_v43 = vadd.f32 1.0, %v6835_v48 }
 0x562   : > { %v6837_v39 = vpop.eup %6836  ;;  %3941 = vrot.lane.b32.xlu0 %v3899_v5, %s7041_s29  ;;  %6852 = vrcp.f32 %v3779_v33 }
 0x563   : > { %3947 = vrot.lane.b32.xlu1 %v3902_v62, %s7041_s29  ;;  %v6839_v31 = vpop.eup %6838  ;;  %v3782_v46 = vadd.f32 1.0, %v6837_v39  ;;  %v3858_v29 = vpop.permute.xlu0 %3857 }
 0x564   : > { %v3864_v57 = vpop.permute.xlu1 %3863  ;;  %v3901_v6 = vmul.f32 %v6833_v52, %v3858_v29  ;;  %v6841_v23 = vpop.eup %6840 }
 0x565   : > { %v3904_v50 = vmul.f32 %v6839_v31, %v3864_v57  ;;  %6854 = vrcp.f32 %v3782_v46  ;;  %v6843_v24 = vpop.eup %6842  ;;  %v3783_v60 = vadd.f32 1.0, %v6841_v23 }
 0x566   : > { %3945 = vrot.lane.b32.xlu0 %v3901_v6, %s7041_s29  ;;  %v6845_v20 = vpop.eup %6844  ;;  %6856 = vrcp.f32 %v3781_v43 }
 0x567   : > { %3951 = vrot.lane.b32.xlu1 %v3904_v50, %s7041_s29  ;;  %v3862_v37 = vpop.permute.xlu0 %3861  ;;  %v6847_v58 = vpop.eup %6846  ;;  %6858 = vrcp.f32 %v3783_v60 }
 0x568   : > { %v3868_v28 = vpop.permute.xlu1 %3867  ;;  %v3903_v27 = vmul.f32 %v6843_v24, %v3862_v37 }
 0x569   : > { %v3906_v36 = vmul.f32 %v6845_v20, %v3868_v28 }
 0x56a   : > { %v6849_v53 = vpop.eup %6848  ;;  %3949 = vrot.lane.b32.xlu0 %v3903_v27, %s7041_s29 }
 0x56b   : > { %3955 = vrot.lane.b32.xlu1 %v3906_v36, %s7041_s29  ;;  %v6851_v34 = vpop.eup %6850  ;;  %v3784_v7 = vadd.f32 1.0, %v6849_v53  ;;  %v3866_v40 = vpop.permute.xlu0 %3865 }
 0x56c   : > { %v3872_v41 = vpop.permute.xlu1 %3871  ;;  %v3905_v19 = vmul.f32 %v6847_v58, %v3866_v40  ;;  %v6853_v21 = vpop.eup %6852 }
 0x56d   : > { %v3908_v45 = vmul.f32 %v6851_v34, %v3872_v41  ;;  %6860 = vrcp.f32 %v3784_v7 }
 0x56e   : > { %3953 = vrot.lane.b32.xlu0 %v3905_v19, %s7041_s29 }
 0x56f   : > { %3959 = vrot.lane.b32.xlu1 %v3908_v45, %s7041_s29  ;;  %v6855_v47 = vpop.eup %6854  ;;  %v3870_v55 = vpop.permute.xlu0 %3869 }
 0x570   : > { %v3876_v42 = vpop.permute.xlu1 %3875  ;;  %v3907_v32 = vmul.f32 %v6853_v21, %v3870_v55  ;;  %v6857_v44 = vpop.eup %6856 }
 0x571   : > { %v3910_v15 = vmul.f32 %v6855_v47, %v3876_v42  ;;  %v6859_v35 = vpop.eup %6858 }
 0x572   : > { %3957 = vrot.lane.b32.xlu0 %v3907_v32, %s7041_s29 }
 0x573   : > { %3963 = vrot.lane.b32.xlu1 %v3910_v15, %s7041_s29  ;;  %v3874_v12 = vpop.permute.xlu0 %3873 }
 0x574   : > { %v3909_v61 = vmul.f32 %v6857_v44, %v3874_v12  ;;  %v3880_v1 = vpop.permute.xlu1 %3879 }
 0x576   : > { %3961 = vrot.lane.b32.xlu0 %v3909_v61, %s7041_s29 }
 0x577   : > { %v6861_v8 = vpop.eup %6860  ;;  %v3878_v59 = vpop.permute.xlu0 %3877 }
 0x578   : > { %v3912_v56 = vmul.f32 %v6861_v8, %v3880_v1  ;;  %v3911_v11 = vmul.f32 %v6859_v35, %v3878_v59 }
 0x57a   : > { %3965 = vrot.lane.b32.xlu0 %v3911_v11, %s7041_s29  ;;  %3967 = vrot.lane.b32.xlu1 %v3912_v56, %s7041_s29  ;;  %s5848_s29 = sshll.u32 %s7005_s16, 2 }
 0x57b   : > { %s5448_s12 = sadd.s32 %s5848_s29, %s5847_s23 }
 0x57c   : > { %s5849_s24 = sshll.u32 %s5448_s12, 4 }
 0x590   : > { %v9573_v4 = vpop.permute.xlu0 %3937 }
 0x591   : > { %6072 = vmatprep.mubr.msk.f32.mxu1 %vm10372_vm0, %v9573_v4  ;;  %6124 = vmatprep.mubr.msk.f32.mxu0 %vm10388_vm11, %v9573_v4  ;;  %vm10403_vm11 = vmmov %vm10372_vm0 }
 0x5cc   : > { %v9579_v54 = vpop.permute.xlu1 %3939 }
 0x5cd   : > { %6073 = vmatmul.mubr.msk.f32.vlgmr.msra.gmra.mrb[16].mxu1 %vm10389_vm8, %v9579_v54  ;;  %6125 = vmatmul.mubr.msk.f32.vlgmr.msra.gmra.mrb[40].mxu0 %vm10390_vm3, %v9579_v54  ;;  %vm10404_vm8 = vmmov %vm10372_vm0 }
 0x5ce   : > { %6097 = vmatpush3.msra.mxu1 %v9552_v25  ;;  %vm10405_vm3 = vmmov %vm10372_vm0 }
 0x5d1   : > { %v9586_v2 = vpop.permute.xlu1 %3943 }
 0x5d4   : > { %v9588_v13 = vpop.permute.xlu0 %3941 }
 0x5d5   : > { %v9590_v49 = vpop.permute.xlu1 %3947  ;;  %6075 = vmatprep.mubr.msk.f32.mxu1 %vm10391_vm10, %v9588_v13  ;;  %6127 = vmatprep.mubr.msk.f32.mxu0 %vm10392_vm13, %v9588_v13  ;;  %vm10406_vm10 = vmmov %vm10372_vm0 }
 0x5d6   : > { %6076 = vmatmul.mubr.msk.f32.gmra.mrb[18].mxu1 %vm10393_vm9, %v9586_v2  ;;  %6128 = vmatmul.mubr.msk.f32.gmra.mrb[42].mxu0 %vm10394_vm2, %v9586_v2  ;;  %vm10407_vm13 = vmmov %vm10372_vm0 }
 0x5d7   : > { %vm10408_vm9 = vmmov %vm10372_vm0 }
 0x5d8   : > { %v9600_v14 = vpop.permute.xlu0 %3945  ;;  %vm10409_vm2 = vmmov %vm10372_vm0 }
 0x5d9   : > { %v9602_v25 = vpop.permute.xlu1 %3951  ;;  %6078 = vmatprep.mubr.msk.f32.mxu1 %vm10395_vm15, %v9600_v14  ;;  %6130 = vmatprep.mubr.msk.f32.mxu0 %vm10396_vm5, %v9600_v14  ;;  %vm10410_vm15 = vmmov %vm10372_vm0 }
 0x5da   : > { %6079 = vmatmul.mubr.msk.f32.gmra.mrb[20].mxu1 %vm10397_vm7, %v9590_v49  ;;  %6131 = vmatmul.mubr.msk.f32.gmra.mrb[44].mxu0 %vm10398_vm12, %v9590_v49  ;;  %vm10411_vm5 = vmmov %vm10372_vm0 }
 0x5db   : > { %vm10412_vm7 = vmmov %vm10372_vm0 }
 0x5dc   : > { %v9612_v22 = vpop.permute.xlu0 %3949  ;;  %vm10413_vm12 = vmmov %vm10372_vm0 }
 0x5dd   : > { %v9614_v3 = vpop.permute.xlu1 %3955  ;;  %6081 = vmatprep.mubr.msk.f32.mxu1 %vm10399_vm4, %v9612_v22  ;;  %6133 = vmatprep.mubr.msk.f32.mxu0 %vm10400_vm6, %v9612_v22  ;;  %vm10414_vm4 = vmmov %vm10372_vm0 }
 0x5de   : > { %6082 = vmatmul.mubr.msk.f32.gmra.mrb[22].mxu1 %vm10401_vm14, %v9602_v25  ;;  %6134 = vmatmul.mubr.msk.f32.gmra.mrb[46].mxu0 %vm10402_vm1, %v9602_v25  ;;  %vm10415_vm6 = vmmov %vm10372_vm0 }
 0x5df   : > { %vm10416_vm14 = vmmov %vm10372_vm0 }
 0x5e0   : > { %v9624_v26 = vpop.permute.xlu0 %3953  ;;  %vm10417_vm1 = vmmov %vm10372_vm0 }
 0x5e1   : > { %6084 = vmatprep.mubr.msk.f32.mxu1 %vm10372_vm0, %v9624_v26  ;;  %6136 = vmatprep.mubr.msk.f32.mxu0 %vm10403_vm11, %v9624_v26  ;;  %v9630_v10 = vpop.permute.xlu1 %3959  ;;  %vm10418_vm11 = vmmov %vm10372_vm0 }
 0x5e2   : > { %6085 = vmatmul.mubr.msk.f32.gmra.mrb[24].mxu1 %vm10404_vm8, %v9614_v3  ;;  %6137 = vmatmul.mubr.msk.f32.gmra.mrb[48].mxu0 %vm10405_vm3, %v9614_v3  ;;  %vm10419_vm8 = vmmov %vm10372_vm0 }
 0x5e3   : > { %vm10420_vm3 = vmmov %vm10372_vm0 }
 0x5e4   : > { %v9636_v9 = vpop.permute.xlu0 %3957 }
 0x5e5   : > { %6087 = vmatprep.mubr.msk.f32.mxu1 %vm10406_vm10, %v9636_v9  ;;  %6139 = vmatprep.mubr.msk.f32.mxu0 %vm10407_vm13, %v9636_v9  ;;  %v9646_v17 = vpop.permute.xlu1 %3963  ;;  %vm10421_vm10 = vmmov %vm10372_vm0 }
 0x5e6   : > { %6088 = vmatmul.mubr.msk.f32.gmra.mrb[26].mxu1 %vm10408_vm9, %v9630_v10  ;;  %6140 = vmatmul.mubr.msk.f32.gmra.mrb[50].mxu0 %vm10409_vm2, %v9630_v10  ;;  %vm10422_vm13 = vmmov %vm10372_vm0 }
 0x5e7   : > { %vm10423_vm9 = vmmov %vm10372_vm0 }
 0x5e8   : > { %v9648_v18 = vpop.permute.xlu0 %3961  ;;  %vm10424_vm2 = vmmov %vm10372_vm0 }
 0x5e9   : > { %6090 = vmatprep.mubr.msk.f32.mxu1 %vm10410_vm15, %v9648_v18  ;;  %6142 = vmatprep.mubr.msk.f32.mxu0 %vm10411_vm5, %v9648_v18  ;;  %vm10425_vm15 = vmmov %vm10372_vm0 }
 0x5ea   : > { %6091 = vmatmul.mubr.msk.f32.gmra.mrb[28].mxu1 %vm10412_vm7, %v9646_v17  ;;  %6143 = vmatmul.mubr.msk.f32.gmra.mrb[52].mxu0 %vm10413_vm12, %v9646_v17  ;;  %vm10426_vm5 = vmmov %vm10372_vm0 }
 0x5eb   : > { %vm10427_vm7 = vmmov %vm10372_vm0 }
 0x5ec   : > { %v9658_v63 = vpop.permute.xlu0 %3965  ;;  %v9660_v16 = vpop.permute.xlu1 %3967  ;;  %vm10428_vm12 = vmmov %vm10372_vm0 }
 0x5ed   : > { %6093 = vmatprep.mubr.msk.f32.mxu1 %vm10414_vm4, %v9658_v63  ;;  %6145 = vmatprep.mubr.msk.f32.mxu0 %vm10415_vm6, %v9658_v63  ;;  %vm10429_vm4 = vmmov %vm10372_vm0 }
 0x5ee   : > { %6094 = vmatmul.mubr.msk.f32.gmra.mrb[30].mxu1 %vm10416_vm14, %v9660_v16  ;;  %6146 = vmatmul.mubr.msk.f32.gmra.mrb[54].mxu0 %vm10417_vm1, %v9660_v16  ;;  %vm10430_vm6 = vmmov %vm10372_vm0 }
 0x5ef   : > { %6098 = vmatprep.mubr.msk.f32.mxu1 %vm10372_vm0, %v9573_v4  ;;  %vm10431_vm14 = vmmov %vm10372_vm0 }
 0x5f0   : > { %vm10432_vm1 = vmmov %vm10372_vm0  ;;  %vm10433_vm0 = vcmask 31744  }
 0x5f2   : > { %6099 = vmatmul.mubr.msk.f32.vlgmr.msra.gmra.mrb[32].mxu1 %vm10418_vm11, %v9579_v54  ;;  %vm10434_vm11 = vmmov %vm10433_vm0 }
 0x5f3   : > { %6101 = vmatprep.mubr.msk.f32.mxu1 %vm10419_vm8, %v9588_v13  ;;  %vm10435_vm8 = vmmov %vm10433_vm0 }
 0x5f6   : > { %6102 = vmatmul.mubr.msk.f32.gmra.mrb[34].mxu1 %vm10420_vm3, %v9586_v2  ;;  %vm9756_vm3 = vmpackc.low %vm10435_vm8, %vm10435_vm8  ;;  %vm4751_vm8 = vcmask 523264  }
 0x5f7   : > { %6104 = vmatprep.mubr.msk.f32.mxu1 %vm10421_vm10, %v9600_v14  ;;  %vm10438_vm10 = vmmov %vm10433_vm0 }
 0x5fa   : > { %6105 = vmatmul.mubr.msk.f32.gmra.mrb[36].mxu1 %vm10422_vm13, %v9590_v49  ;;  %vm10439_vm13 = vmmov %vm10433_vm0 }
 0x5fb   : > { %6107 = vmatprep.mubr.msk.f32.mxu1 %vm10423_vm9, %v9612_v22  ;;  %vm10440_vm9 = vmmov %vm10433_vm0 }
 0x5fe   : > { %6108 = vmatmul.mubr.msk.f32.gmra.mrb[38].mxu1 %vm10424_vm2, %v9602_v25  ;;  %vm10441_vm2 = vmmov %vm10433_vm0 }
 0x5ff   : > { %6110 = vmatprep.mubr.msk.f32.mxu1 %vm10425_vm15, %v9624_v26  ;;  %vm10442_vm15 = vmmov %vm10433_vm0 }
 0x602   : > { %6111 = vmatmul.mubr.msk.f32.gmra.mrb[40].mxu1 %vm10426_vm5, %v9614_v3  ;;  %vm10443_vm5 = vmmov %vm10433_vm0 }
 0x603   : > { %6113 = vmatprep.mubr.msk.f32.mxu1 %vm10427_vm7, %v9636_v9  ;;  %vm10444_vm7 = vmmov %vm10433_vm0 }
 0x606   : > { %6114 = vmatmul.mubr.msk.f32.gmra.mrb[42].mxu1 %vm10428_vm12, %v9630_v10  ;;  %vm10445_vm12 = vmmov %vm10433_vm0 }
 0x607   : > { %6116 = vmatprep.mubr.msk.f32.mxu1 %vm10429_vm4, %v9648_v18  ;;  %vm10446_vm4 = vmmov %vm10433_vm0 }
 0x60a   : > { %6117 = vmatmul.mubr.msk.f32.gmra.mrb[44].mxu1 %vm10430_vm6, %v9646_v17  ;;  %vm10447_vm6 = vmmov %vm10433_vm0 }
 0x60b   : > { %6119 = vmatprep.mubr.msk.f32.mxu1 %vm10431_vm14, %v9658_v63  ;;  %vm10448_vm14 = vmmov %vm10433_vm0 }
 0x60e   : > { %6120 = vmatmul.mubr.msk.f32.gmra.mrb[46].mxu1 %vm10432_vm1, %v9660_v16  ;;  %vm10449_vm1 = vmmov %vm10433_vm0 }
 0x6a0   : > { %v6074_v0 = vpop.f32.mrb[16].mxu1  ;;  %v6126_v51 = vpop.f32.mrb[40].mxu0 }
 0x6a1   : > { %v9705_v38 = vadd.f32 %v6074_v0, %v5731_v30  ;;  %v4067_v52 = vpop.f32.mrb[17].mxu1  ;;  %v4366_v33 = vpop.f32.mrb[41].mxu0 }
 0x6a2   : > { %v4068_v5 = vadd.f32 %v5731_v30, %v4067_v52  ;;  %v9707_v62 = vpack.c.bf16 %v6126_v51, %v4366_v33 }
 0x6a4   : > { %6164 = vmatprep.mubr.msk.f32.mxu1 %vm10433_vm0, %v4068_v5 }
 0x6a9   : > { %v6077_v48 = vpop.f32.mrb[18].mxu1  ;;  %v6129_v39 = vpop.f32.mrb[42].mxu0 }
 0x6aa   : > { %v9710_v31 = vadd.f32 %v6077_v48, %v5731_v30  ;;  %v4077_v46 = vpop.f32.mrb[19].mxu1  ;;  %v4376_v29 = vpop.f32.mrb[43].mxu0 }
 0x6ab   : > { %v9712_v57 = vadd.f32 %v5731_v30, %v4077_v46  ;;  %v9714_v6 = vpack.c.bf16 %v6129_v39, %v4376_v29 }
 0x6ad   : > { %v6080_v50 = vpop.f32.mrb[20].mxu1  ;;  %v6132_v23 = vpop.f32.mrb[44].mxu0 }
 0x6ae   : > { %v9716_v43 = vadd.f32 %v6080_v50, %v5731_v30  ;;  %v4087_v24 = vpop.f32.mrb[21].mxu1  ;;  %v4386_v20 = vpop.f32.mrb[45].mxu0  ;;  %v5748_v50 = vld [vmem:[%s10157_s9] ss:$0 sm:$0xff] }
 0x6af   : > { %v9718_v37 = vadd.f32 %v5731_v30, %v4087_v24  ;;  %v9720_v28 = vpack.c.bf16 %v6132_v23, %v4386_v20 }
 0x6b1   : > { %v6083_v60 = vpop.f32.mrb[22].mxu1  ;;  %v6135_v27 = vpop.f32.mrb[46].mxu0 }
 0x6b2   : > { %v9722_v36 = vadd.f32 %v6083_v60, %v5731_v30  ;;  %v4097_v58 = vpop.f32.mrb[23].mxu1  ;;  %v4396_v53 = vpop.f32.mrb[47].mxu0 }
 0x6b3   : > { %v9724_v34 = vadd.f32 %v5731_v30, %v4097_v58  ;;  %v9726_v7 = vpack.c.bf16 %v6135_v27, %v4396_v53 }
 0x6b5   : > { %v6086_v40 = vpop.f32.mrb[24].mxu1  ;;  %v6138_v41 = vpop.f32.mrb[48].mxu0 }
 0x6b6   : > { %v9728_v19 = vadd.f32 %v6086_v40, %v5731_v30  ;;  %v4107_v45 = vpop.f32.mrb[25].mxu1  ;;  %v4406_v21 = vpop.f32.mrb[49].mxu0 }
 0x6b7   : > { %v4108_v47 = vadd.f32 %v5731_v30, %v4107_v45  ;;  %v9730_v55 = vpack.c.bf16 %v6138_v41, %v4406_v21 }
 0x6b9   : > { %v6089_v42 = vpop.f32.mrb[26].mxu1  ;;  %v6141_v32 = vpop.f32.mrb[50].mxu0  ;;  %6192 = vmatprep.mubr.msk.f32.mxu0 %vm10434_vm11, %v4108_v47  ;;  %vm10450_vm11 = vmmov %vm10433_vm0 }
 0x6ba   : > { %v9733_v15 = vadd.f32 %v6089_v42, %v5731_v30  ;;  %v4117_v44 = vpop.f32.mrb[27].mxu1  ;;  %v4416_v12 = vpop.f32.mrb[51].mxu0 }
 0x6bb   : > { %v9735_v61 = vadd.f32 %v5731_v30, %v4117_v44  ;;  %v9737_v35 = vpack.c.bf16 %v6141_v32, %v4416_v12 }
 0x6bd   : > { %v6092_v8 = vpop.f32.mrb[28].mxu1  ;;  %v6144_v1 = vpop.f32.mrb[52].mxu0 }
 0x6be   : > { %v9739_v59 = vadd.f32 %v6092_v8, %v5731_v30  ;;  %v4127_v56 = vpop.f32.mrb[29].mxu1  ;;  %v4426_v11 = vpop.f32.mrb[53].mxu0 }
 0x6bf   : > { %v9741_v0 = vadd.f32 %v5731_v30, %v4127_v56  ;;  %v9743_v51 = vpack.c.bf16 %v6144_v1, %v4426_v11 }
 0x6c1   : > { %v6095_v52 = vpop.f32.mrb[30].mxu1  ;;  %v6147_v33 = vpop.f32.mrb[54].mxu0 }
 0x6c2   : > { %v9745_v5 = vadd.f32 %v6095_v52, %v5731_v30  ;;  %v4137_v48 = vpop.f32.mrb[31].mxu1  ;;  %v4436_v39 = vpop.f32.mrb[55].mxu0 }
 0x6c3   : > { %v9747_v46 = vadd.f32 %v5731_v30, %v4137_v48  ;;  %v9749_v29 = vpack.c.bf16 %v6147_v33, %v4436_v39 }
 0x6c5   : > { %v6100_v23 = vpop.f32.mrb[32].mxu1 }
 0x6c6   : > { %v4226_v24 = vadd.f32 %v6100_v23, %v5748_v50  ;;  %v4220_v20 = vpop.f32.mrb[33].mxu1 }
 0x6c7   : > { %v4221_v60 = vadd.f32 %v5748_v50, %v4220_v20 }
 0x6c9   : > { %v6286_v58 = vpack.c.bf16 %v4226_v24, %v4221_v60  ;;  %v6103_v53 = vpop.f32.mrb[34].mxu1 }
 0x6ca   : > { %v4236_v30 = vadd.f32 %v6103_v53, %v5748_v50  ;;  %v4230_v40 = vpop.f32.mrb[35].mxu1 }
 0x6cb   : > { %v4231_v41 = vadd.f32 %v5748_v50, %v4230_v40  ;;  %6288 = vmatprep.subr.msk.bf16.mxu1 %vm9756_vm3, %v6286_v58 }
 0x6cc   : > { %6291 = vmatpush3.bf16.xpose.msk.msra.mxu1 %vm9756_vm3, %v6286_v58 }
 0x6cd   : > { %v6292_v45 = vpack.c.bf16 %v4236_v30, %v4231_v41  ;;  %v6106_v21 = vpop.f32.mrb[36].mxu1 }
 0x6ce   : > { %v4246_v47 = vadd.f32 %v6106_v21, %v5748_v50  ;;  %v4240_v42 = vpop.f32.mrb[37].mxu1 }
 0x6cf   : > { %v4241_v32 = vadd.f32 %v5748_v50, %v4240_v42  ;;  %6294 = vmatprep.subr.msk.bf16.mxu1 %vm9756_vm3, %v6292_v45 }
 0x6d1   : > { %v6298_v44 = vpack.c.bf16 %v4246_v47, %v4241_v32  ;;  %v6109_v12 = vpop.f32.mrb[38].mxu1 }
 0x6d2   : > { %v4256_v8 = vadd.f32 %v6109_v12, %v5748_v50  ;;  %v4250_v1 = vpop.f32.mrb[39].mxu1 }
 0x6d3   : > { %v4251_v56 = vadd.f32 %v5748_v50, %v4250_v1 }
 0x6d4   : > { %6297 = vmatpush3.bf16.xpose.msk.msra.mxu1 %vm9756_vm3, %v6292_v45 }
 0x6d5   : > { %v6304_v11 = vpack.c.bf16 %v4256_v8, %v4251_v56  ;;  %v6112_v52 = vpop.f32.mrb[40].mxu1  ;;  %6300 = vmatprep.subr.msk.bf16.mxu1 %vm9756_vm3, %v6298_v44 }
 0x6d6   : > { %v4266_v33 = vadd.f32 %v6112_v52, %v5748_v50  ;;  %v4260_v48 = vpop.f32.mrb[41].mxu1 }
 0x6d7   : > { %v4261_v39 = vadd.f32 %v5748_v50, %v4260_v48 }
 0x6d9   : > { %v6310_v23 = vpack.c.bf16 %v4266_v33, %v4261_v39  ;;  %v6115_v24 = vpop.f32.mrb[42].mxu1 }
 0x6da   : > { %v4276_v20 = vadd.f32 %v6115_v24, %v5748_v50  ;;  %v4270_v60 = vpop.f32.mrb[43].mxu1 }
 0x6db   : > { %v4271_v58 = vadd.f32 %v5748_v50, %v4270_v60  ;;  %6312 = vmatprep.subr.msk.bf16.mxu0 %vm9756_vm3, %v6310_v23 }
 0x6dc   : > { %6303 = vmatpush3.bf16.xpose.msk.msra.mxu1 %vm9756_vm3, %v6298_v44  ;;  %6315 = vmatpush3.bf16.xpose.msk.msra.mxu0 %vm9756_vm3, %v6310_v23 }
 0x6dd   : > { %v6316_v53 = vpack.c.bf16 %v4276_v20, %v4271_v58  ;;  %v6118_v30 = vpop.f32.mrb[44].mxu1  ;;  %6306 = vmatprep.subr.msk.bf16.mxu1 %vm9756_vm3, %v6304_v11 }
 0x6de   : > { %v4286_v40 = vadd.f32 %v6118_v30, %v5748_v50  ;;  %v4280_v41 = vpop.f32.mrb[45].mxu1 }
 0x6df   : > { %v4281_v45 = vadd.f32 %v5748_v50, %v4280_v41  ;;  %6318 = vmatprep.subr.msk.bf16.mxu0 %vm9756_vm3, %v6316_v53 }
 0x6e1   : > { %v6322_v21 = vpack.c.bf16 %v4286_v40, %v4281_v45  ;;  %v6121_v47 = vpop.f32.mrb[46].mxu1 }
 0x6e2   : > { %v4296_v42 = vadd.f32 %v6121_v47, %v5748_v50  ;;  %v4290_v32 = vpop.f32.mrb[47].mxu1 }
 0x6e3   : > { %v4291_v12 = vadd.f32 %v5748_v50, %v4290_v32 }
 0x6e4   : > { %6309 = vmatpush3.bf16.xpose.msk.msra.mxu1 %vm9756_vm3, %v6304_v11  ;;  %6321 = vmatpush3.bf16.xpose.msk.msra.mxu0 %vm9756_vm3, %v6316_v53 }
 0x6e5   : > { %v6328_v44 = vpack.c.bf16 %v4296_v42, %v4291_v12  ;;  %6324 = vmatprep.subr.msk.bf16.mxu0 %vm9756_vm3, %v6322_v21  ;;  %6335 = vmatprep.subr.bf16.mxu1 %v9707_v62 }
 0x6eb   : > { %6165 = vmatmul.mubr.msk.f32.vlgmr.msra.gmra.mrb[48].mxu1 %vm10438_vm10, %v9705_v38  ;;  %vm10453_vm10 = vcmask 64512  }
 0x6ec   : > { %6167 = vmatprep.mubr.msk.f32.mxu1 %vm10439_vm13, %v9712_v57  ;;  %6327 = vmatpush3.bf16.xpose.msk.msra.mxu0 %vm9756_vm3, %v6322_v21  ;;  %vm10454_vm13 = vmmov %vm10453_vm10 }
 0x6ed   : > { %6337 = vmatpush3.bf16.msra.mxu1 %v9707_v62  ;;  %6330 = vmatprep.subr.msk.bf16.mxu0 %vm9756_vm3, %v6328_v44 }
 0x6ee   : > { %6339 = vmatprep.subr.bf16.mxu1 %v9714_v6 }
 0x6ef   : > { %6168 = vmatmul.mubr.msk.f32.gmra.mrb[50].mxu1 %vm10440_vm9, %v9710_v31  ;;  %vm10455_vm9 = vmmov %vm10453_vm10 }
 0x6f0   : > { %6170 = vmatprep.mubr.msk.f32.mxu1 %vm10441_vm2, %v9718_v37  ;;  %vm10456_vm2 = vmmov %vm10455_vm9 }
 0x6f1   : > { %6341 = vmatpush3.bf16.msra.mxu1 %v9714_v6 }
 0x6f2   : > { %6343 = vmatprep.subr.bf16.mxu1 %v9720_v28 }
 0x6f3   : > { %6171 = vmatmul.mubr.msk.f32.gmra.mrb[52].mxu1 %vm10442_vm15, %v9716_v43  ;;  %vm10457_vm15 = vmmov %vm10456_vm2 }
 0x6f4   : > { %6173 = vmatprep.mubr.msk.f32.mxu1 %vm10443_vm5, %v9724_v34  ;;  %6333 = vmatpush3.bf16.xpose.msk.msra.mxu0 %vm9756_vm3, %v6328_v44  ;;  %vm5419_vm3 = vcmask 518146   ;;  %vm10458_vm5 = vmmov %vm10456_vm2 }
 0x6f5   : > { %6345 = vmatpush3.bf16.msra.mxu1 %v9720_v28 }
 0x6f6   : > { %6347 = vmatprep.subr.bf16.mxu1 %v9726_v7 }
 0x6f7   : > { %6174 = vmatmul.mubr.msk.f32.gmra.mrb[54].mxu1 %vm10444_vm7, %v9722_v36  ;;  %vm10459_vm7 = vmmov %vm10456_vm2 }
 0x6f9   : > { %6349 = vmatpush3.bf16.msra.mxu1 %v9726_v7 }
 0x6fa   : > { %6351 = vmatprep.subr.bf16.mxu1 %v9730_v55 }
 0x6fb   : > { %6193 = vmatmul.mubr.msk.f32.vlgmr.msra.gmra.mrb[56].mxu0 %vm10445_vm12, %v9728_v19  ;;  %vm10460_vm12 = vmmov %vm10456_vm2 }
 0x6fc   : > { %6195 = vmatprep.mubr.msk.f32.mxu0 %vm10446_vm4, %v9735_v61  ;;  %vm10461_vm4 = vmmov %vm10456_vm2 }
 0x6ff   : > { %6196 = vmatmul.mubr.msk.f32.gmra.mrb[58].mxu0 %vm10447_vm6, %v9733_v15  ;;  %vm10462_vm6 = vmmov %vm10456_vm2 }
 0x700   : > { %6198 = vmatprep.mubr.msk.f32.mxu0 %vm10448_vm14, %v9741_v0  ;;  %vm10463_vm14 = vmmov %vm10456_vm2 }
 0x703   : > { %6199 = vmatmul.mubr.msk.f32.gmra.mrb[60].mxu0 %vm10449_vm1, %v9739_v59  ;;  %vm10464_vm1 = vmmov %vm10456_vm2 }
 0x704   : > { %6201 = vmatprep.mubr.msk.f32.mxu0 %vm10433_vm0, %v9747_v46  ;;  %vm10465_vm0 = vmmov %vm10464_vm1 }
 0x707   : > { %6202 = vmatmul.mubr.msk.f32.gmra.mrb[62].mxu0 %vm10450_vm11, %v9745_v5  ;;  %vm10466_vm11 = vmmov %vm10465_vm0 }
 0x7be   : > { %v6166_v38 = vpop.f32.mrb[48].mxu1 }
 0x7bf   : > { %v4559_v62 = vpop.f32.mrb[49].mxu1  ;;  %v4755_v31 = vsel %vm4751_vm8, %v6166_v38, -inf }
 0x7c0   : > { %4756 = vmax.xlane.f32.xlu1 %v4755_v31  ;;  %v4752_v57 = vsel %vm4751_vm8, %v4559_v62, -inf }
 0x7c1   : > { %4753 = vmax.xlane.f32.xlu0 %v4752_v57 }
 0x7c2   : > { %v6169_v6 = vpop.f32.mrb[50].mxu1 }
 0x7c3   : > { %v4569_v43 = vpop.f32.mrb[51].mxu1  ;;  %v4761_v34 = vsel %vm4751_vm8, %v6169_v6, -inf }
 0x7c4   : > { %v4758_v37 = vsel %vm4751_vm8, %v4569_v43, -inf }
 0x7c5   : > { %4759 = vmax.xlane.f32.xlu0 %v4758_v37 }
 0x7c6   : > { %v9832_v28 = vpop.f32.mrb[52].mxu1 }
 0x7c7   : > { %v4579_v36 = vpop.f32.mrb[53].mxu1  ;;  %v4767_v61 = vsel %vm4751_vm8, %v9832_v28, -inf }
 0x7c8   : > { %v4764_v7 = vsel %vm4751_vm8, %v4579_v36, -inf }
 0x7c9   : > { %4762 = vmax.xlane.f32.xlu0 %v4761_v34  ;;  %4765 = vmax.xlane.f32.xlu1 %v4764_v7 }
 0x7ca   : > { %v9836_v19 = vpop.f32.mrb[54].mxu1 }
 0x7cb   : > { %v4589_v15 = vpop.f32.mrb[55].mxu1  ;;  %v4773_v46 = vsel %vm4751_vm8, %v9836_v19, -inf }
 0x7cc   : > { %v4770_v59 = vsel %vm4751_vm8, %v4589_v15, -inf }
 0x7cd   : > { %4768 = vmax.xlane.f32.xlu0 %v4767_v61  ;;  %4771 = vmax.xlane.f32.xlu1 %v4770_v59 }
 0x7ce   : > { %v9841_v0 = vpop.f32.mrb[56].mxu0 }
 0x7cf   : > { %v9843_v5 = vpop.f32.mrb[57].mxu0  ;;  %v4779_v1 = vsel %vm4751_vm8, %v9841_v0, -inf }
 0x7d0   : > { %v4776_v50 = vsel %vm4751_vm8, %v9843_v5, -inf }
 0x7d1   : > { %4774 = vmax.xlane.f32.xlu0 %v4773_v46  ;;  %4777 = vmax.xlane.f32.xlu1 %v4776_v50 }
 0x7d2   : > { %v9849_v27 = vpop.f32.mrb[58].mxu0 }
 0x7d3   : > { %v9851_v8 = vpop.f32.mrb[59].mxu0  ;;  %v4785_v33 = vsel %vm4751_vm8, %v9849_v27, -inf }
 0x7d4   : > { %v4782_v56 = vsel %vm4751_vm8, %v9851_v8, -inf }
 0x7d5   : > { %4780 = vmax.xlane.f32.xlu0 %v4779_v1  ;;  %4783 = vmax.xlane.f32.xlu1 %v4782_v56 }
 0x7d6   : > { %v9857_v11 = vpop.f32.mrb[60].mxu0 }
 0x7d7   : > { %v9859_v52 = vpop.f32.mrb[61].mxu0  ;;  %v4791_v20 = vsel %vm4751_vm8, %v9857_v11, -inf }
 0x7d8   : > { %v4788_v48 = vsel %vm4751_vm8, %v9859_v52, -inf }
 0x7d9   : > { %4786 = vmax.xlane.f32.xlu0 %v4785_v33  ;;  %4789 = vmax.xlane.f32.xlu1 %v4788_v48 }
 0x7da   : > { %v9865_v39 = vpop.f32.mrb[62].mxu0 }
 0x7db   : > { %v9867_v23 = vpop.f32.mrb[63].mxu0  ;;  %v4797_v60 = vsel %vm4751_vm8, %v9865_v39, -inf }
 0x7dc   : > { %v4794_v24 = vsel %vm4751_vm8, %v9867_v23, -inf }
 0x7dd   : > { %4792 = vmax.xlane.f32.xlu0 %v4791_v20  ;;  %4795 = vmax.xlane.f32.xlu1 %v4794_v24 }
 0x7e1   : > { %4798 = vmax.xlane.f32.xlu0 %v4797_v60 }
 0x84d   : > { %v4757_v58 = vpop.xlane.xlu1 %4756 }
 0x84e   : > { %v4801_v53 = vsub.f32 %v6166_v38, %v4757_v58  ;;  %v4754_v30 = vpop.xlane.xlu0 %4753 }
 0x84f   : > { %v4800_v40 = vsub.f32 %v4559_v62, %v4754_v30 }
 0x850   : > { %v4818_v41 = vmul.f32 1.442695, %v4801_v53 }
 0x851   : > { %v4816_v45 = vmul.f32 1.442695, %v4800_v40 }
 0x852   : > { %6862 = vpow2.f32 %v4818_v41  ;;  %v4760_v21 = vpop.xlane.xlu0 %4759 }
 0x853   : > { %6864 = vpow2.f32 %v4816_v45  ;;  %v4802_v47 = vsub.f32 %v4569_v43, %v4760_v21 }
 0x855   : > { %v4820_v42 = vmul.f32 1.442695, %v4802_v47 }
 0x856   : > { %v4763_v32 = vpop.xlane.xlu0 %4762  ;;  %v4766_v12 = vpop.xlane.xlu1 %4765 }
 0x857   : > { %6866 = vpow2.f32 %v4820_v42  ;;  %v4803_v44 = vsub.f32 %v6169_v6, %v4763_v32  ;;  %v4804_v31 = vsub.f32 %v4579_v36, %v4766_v12 }
 0x859   : > { %v4822_v57 = vmul.f32 1.442695, %v4803_v44  ;;  %v4824_v37 = vmul.f32 1.442695, %v4804_v31 }
 0x85a   : > { %v4769_v34 = vpop.xlane.xlu0 %4768  ;;  %v4772_v7 = vpop.xlane.xlu1 %4771 }
 0x85b   : > { %6868 = vpow2.f32 %v4822_v57  ;;  %v4805_v38 = vsub.f32 %v9832_v28, %v4769_v34  ;;  %v4806_v62 = vsub.f32 %v4589_v15, %v4772_v7 }
 0x85c   : > { %v9876_v61 = vpop.eup %6862  ;;  %6870 = vpow2.f32 %v4824_v37 }
 0x85d   : > { %v9878_v59 = vpop.eup %6864  ;;  %v4826_v43 = vmul.f32 1.442695, %v4805_v38  ;;  %v4828_v46 = vmul.f32 1.442695, %v4806_v62  ;;  %v4851_v50 = vsel %vm4751_vm8, %v9876_v61, 0.0 }
 0x85e   : > { %v4775_v6 = vpop.xlane.xlu0 %4774  ;;  %v4778_v36 = vpop.xlane.xlu1 %4777  ;;  %4852 = vadd.xlane.f32.xlu0 %v4851_v50  ;;  %v4848_v1 = vsel %vm4751_vm8, %v9878_v59, 0.0 }
 0x85f   : > { %6872 = vpow2.f32 %v4826_v43  ;;  %v4807_v28 = vsub.f32 %v9836_v19, %v4775_v6  ;;  %v4808_v15 = vsub.f32 %v9843_v5, %v4778_v36  ;;  %4849 = vadd.xlane.f32.xlu1 %v4848_v1 }
 0x860   : > { %6874 = vpow2.f32 %v4828_v46 }
 0x861   : > { %v9886_v56 = vpop.eup %6866  ;;  %v4830_v33 = vmul.f32 1.442695, %v4807_v28  ;;  %v4832_v48 = vmul.f32 1.442695, %v4808_v15 }
 0x862   : > { %v4781_v24 = vpop.xlane.xlu0 %4780  ;;  %v4784_v20 = vpop.xlane.xlu1 %4783  ;;  %v4854_v60 = vsel %vm4751_vm8, %v9886_v56, 0.0 }
 0x863   : > { %6876 = vpow2.f32 %v4830_v33  ;;  %v4809_v58 = vsub.f32 %v9841_v0, %v4781_v24  ;;  %v4810_v53 = vsub.f32 %v9851_v8, %v4784_v20  ;;  %4855 = vadd.xlane.f32.xlu1 %v4854_v60 }
 0x864   : > { %6878 = vpow2.f32 %v4832_v48 }
 0x865   : > { %v9892_v19 = vpop.eup %6868  ;;  %v4834_v5 = vmul.f32 1.442695, %v4809_v58  ;;  %v4836_v30 = vmul.f32 1.442695, %v4810_v53 }
 0x866   : > { %v9894_v40 = vpop.eup %6870  ;;  %v4787_v41 = vpop.xlane.xlu0 %4786  ;;  %v4857_v21 = vsel %vm4751_vm8, %v9892_v19, 0.0 }
 0x867   : > { %v4790_v45 = vpop.xlane.xlu1 %4789  ;;  %6880 = vpow2.f32 %v4834_v5  ;;  %v4811_v47 = vsub.f32 %v9849_v27, %v4787_v41  ;;  %4858 = vadd.xlane.f32.xlu0 %v4857_v21  ;;  %v4860_v8 = vsel %vm4751_vm8, %v9894_v40, 0.0  ;;  %v10451_v41 = vld [vmem:[#allocation52_spill] sm:$0xff] }
 0x868   : > { %v4812_v0 = vsub.f32 %v9859_v52, %v4790_v45  ;;  %6882 = vpow2.f32 %v4836_v30  ;;  %4861 = vadd.xlane.f32.xlu1 %v4860_v8  ;;  %v10452_v45 = vld [vmem:[#allocation31_spill] sm:$0xff] }
 0x869   : > { %v9902_v42 = vpop.eup %6872  ;;  %v4838_v32 = vmul.f32 1.442695, %v4811_v47 }
 0x86a   : > { %v4840_v12 = vmul.f32 1.442695, %v4812_v0  ;;  %v9904_v44 = vpop.eup %6874  ;;  %v4793_v31 = vpop.xlane.xlu0 %4792  ;;  %v4863_v37 = vsel %vm4751_vm8, %v9902_v42, 0.0 }
 0x86b   : > { %v4796_v57 = vpop.xlane.xlu1 %4795  ;;  %6884 = vpow2.f32 %v4838_v32  ;;  %v4813_v27 = vsub.f32 %v9857_v11, %v4793_v31  ;;  %4864 = vadd.xlane.f32.xlu0 %v4863_v37  ;;  %v4866_v34 = vsel %vm4751_vm8, %v9904_v44, 0.0 }
 0x86c   : > { %v4814_v52 = vsub.f32 %v9867_v23, %v4796_v57  ;;  %6886 = vpow2.f32 %v4840_v12  ;;  %4867 = vadd.xlane.f32.xlu1 %v4866_v34 }
 0x86d   : > { %v9912_v7 = vpop.eup %6876  ;;  %v4842_v38 = vmul.f32 1.442695, %v4813_v27 }
 0x86e   : > { %v4844_v62 = vmul.f32 1.442695, %v4814_v52  ;;  %v9914_v43 = vpop.eup %6878  ;;  %v4799_v46 = vpop.xlane.xlu0 %4798  ;;  %v4869_v50 = vsel %vm4751_vm8, %v9912_v7, 0.0 }
 0x86f   : > { %6888 = vpow2.f32 %v4842_v38  ;;  %v4815_v11 = vsub.f32 %v9865_v39, %v4799_v46  ;;  %4870 = vadd.xlane.f32.xlu0 %v4869_v50  ;;  %v4872_v23 = vsel %vm4751_vm8, %v9914_v43, 0.0 }
 0x870   : > { %6890 = vpow2.f32 %v4844_v62  ;;  %4873 = vadd.xlane.f32.xlu1 %v4872_v23 }
 0x871   : > { %v9921_v6 = vpop.eup %6880  ;;  %v4846_v36 = vmul.f32 1.442695, %v4815_v11 }
 0x872   : > { %v9923_v1 = vpop.eup %6882  ;;  %v4875_v28 = vsel %vm4751_vm8, %v9921_v6, 0.0 }
 0x873   : > { %6892 = vpow2.f32 %v4846_v36  ;;  %4876 = vadd.xlane.f32.xlu0 %v4875_v28  ;;  %v4878_v15 = vsel %vm4751_vm8, %v9923_v1, 0.0 }
 0x874   : > { %4879 = vadd.xlane.f32.xlu1 %v4878_v15 }
 0x875   : > { %v9929_v39 = vpop.eup %6884 }
 0x876   : > { %v9931_v33 = vpop.eup %6886  ;;  %v4881_v48 = vsel %vm4751_vm8, %v9929_v39, 0.0 }
 0x877   : > { %4882 = vadd.xlane.f32.xlu0 %v4881_v48  ;;  %v4884_v24 = vsel %vm4751_vm8, %v9931_v33, 0.0 }
 0x878   : > { %4885 = vadd.xlane.f32.xlu1 %v4884_v24 }
 0x879   : > { %v9937_v20 = vpop.eup %6888 }
 0x87a   : > { %v9939_v60 = vpop.eup %6890  ;;  %v4887_v58 = vsel %vm4751_vm8, %v9937_v20, 0.0 }
 0x87b   : > { %4888 = vadd.xlane.f32.xlu0 %v4887_v58  ;;  %v4890_v53 = vsel %vm4751_vm8, %v9939_v60, 0.0 }
 0x87c   : > { %4891 = vadd.xlane.f32.xlu1 %v4890_v53 }
 0x87d   : > { %v9945_v5 = vpop.eup %6892 }
 0x87e   : > { %v4893_v30 = vsel %vm4751_vm8, %v9945_v5, 0.0 }
 0x87f   : > { %4894 = vadd.xlane.f32.xlu0 %v4893_v30 }
 0x88d   : > { %1575 = vrot.lane.b32.xlu1 %v10451_v41, %s7034_s28  ;;  %s10039_s28 = scalar_lea.hbm %s10469_s19, %s5849_s24 }
 0x895   : > { %1886 = vrot.lane.b32.xlu0 %v10452_v45, %s7033_s25  ;;  %s10470_s25 = smov %s10469_s19 }
 0x8eb   : > { %v4853_v21 = vpop.xlane.xlu0 %4852 }
 0x8ec   : > { %6894 = vrcp.f32 %v4853_v21  ;;  %v4850_v47 = vpop.xlane.xlu1 %4849 }
 0x8ed   : > { %6896 = vrcp.f32 %v4850_v47 }
 0x8f0   : > { %v4856_v0 = vpop.xlane.xlu1 %4855 }
 0x8f1   : > { %6898 = vrcp.f32 %v4856_v0 }
 0x8f4   : > { %v4859_v8 = vpop.xlane.xlu0 %4858 }
 0x8f5   : > { %6900 = vrcp.f32 %v4859_v8  ;;  %v4862_v32 = vpop.xlane.xlu1 %4861 }
 0x8f6   : > { %v6895_v12 = vpop.eup %6894  ;;  %6902 = vrcp.f32 %v4862_v32 }
 0x8f7   : > { %v6897_v31 = vpop.eup %6896  ;;  %v4899_v27 = vmul.f32 %v6895_v12, %v9876_v61 }
 0x8f8   : > { %v4865_v57 = vpop.xlane.xlu0 %4864  ;;  %v4897_v37 = vmul.f32 %v6897_v31, %v9878_v59 }
 0x8f9   : > { %6904 = vrcp.f32 %v4865_v57  ;;  %v4868_v52 = vpop.xlane.xlu1 %4867 }
 0x8fa   : > { %6906 = vrcp.f32 %v4868_v52  ;;  %6220 = vmatprep.mubr.msk.f32.mxu1 %vm4751_vm8, %v4897_v37  ;;  %5420 = vst.msk [vmem:[%s7206_s14 - $0x2] sm:$0x4] %vm5419_vm3, %v4897_v37 }
 0x8fb   : > { %v6899_v34 = vpop.eup %6898  ;;  %6221 = vmatmul.mubr.msk.f32.vlgmr.msra.gmra.mrb[56].mxu1 %vm4751_vm8, %v4899_v27 }
 0x8fc   : > { %6353 = vmatpush3.bf16.msra.mxu1 %v9730_v55  ;;  %v4871_v38 = vpop.xlane.xlu0 %4870  ;;  %v4901_v62 = vmul.f32 %v6899_v34, %v9886_v56 }
 0x8fd   : > { %6908 = vrcp.f32 %v4871_v38  ;;  %6355 = vmatprep.subr.bf16.mxu1 %v9737_v35  ;;  %v4874_v59 = vpop.xlane.xlu1 %4873 }
 0x8fe   : > { %6910 = vrcp.f32 %v4874_v59  ;;  %6223 = vmatprep.mubr.msk.f32.mxu1 %vm4751_vm8, %v4901_v62 }
 0x8ff   : > { %v6901_v61 = vpop.eup %6900 }
 0x900   : > { %v6903_v46 = vpop.eup %6902  ;;  %6357 = vmatpush3.bf16.msra.mxu1 %v9737_v35  ;;  %v4877_v50 = vpop.xlane.xlu0 %4876  ;;  %v4903_v11 = vmul.f32 %v6901_v61, %v9892_v19 }
 0x901   : > { %6912 = vrcp.f32 %v4877_v50  ;;  %6359 = vmatprep.subr.bf16.mxu1 %v9743_v51  ;;  %v4880_v55 = vpop.xlane.xlu1 %4879  ;;  %v4905_v56 = vmul.f32 %v6903_v46, %v9894_v40  ;;  %v5186_v40 = vld [vmem:[%s10159_s11] sm:$0xff] }
 0x902   : > { %6914 = vrcp.f32 %v4880_v55  ;;  %6224 = vmatmul.mubr.msk.f32.gmra.mrb[58].mxu1 %vm4751_vm8, %v4903_v11 }
 0x903   : > { %v6905_v23 = vpop.eup %6904  ;;  %6226 = vmatprep.mubr.msk.f32.mxu1 %vm4751_vm8, %v4905_v56 }
 0x904   : > { %v6907_v36 = vpop.eup %6906  ;;  %6361 = vmatpush3.bf16.msra.mxu1 %v9743_v51  ;;  %v4883_v28 = vpop.xlane.xlu0 %4882  ;;  %v4907_v35 = vmul.f32 %v6905_v23, %v9902_v42 }
 0x905   : > { %6916 = vrcp.f32 %v4883_v28  ;;  %6363 = vmatprep.subr.bf16.mxu1 %v9749_v29  ;;  %v4886_v19 = vpop.xlane.xlu1 %4885  ;;  %v4909_v15 = vmul.f32 %v6907_v36, %v9904_v44 }
 0x906   : > { %6918 = vrcp.f32 %v4886_v19  ;;  %6227 = vmatmul.mubr.msk.f32.gmra.mrb[60].mxu1 %vm4751_vm8, %v4907_v35 }
 0x907   : > { %v6909_v48 = vpop.eup %6908  ;;  %6229 = vmatprep.mubr.msk.f32.mxu1 %vm4751_vm8, %v4909_v15 }
 0x908   : > { %v6911_v51 = vpop.eup %6910  ;;  %6365 = vmatpush3.bf16.msra.mxu1 %v9749_v29  ;;  %v4889_v42 = vpop.xlane.xlu0 %4888  ;;  %v4911_v24 = vmul.f32 %v6909_v48, %v9912_v7 }
 0x909   : > { %6920 = vrcp.f32 %v4889_v42  ;;  %v4892_v58 = vpop.xlane.xlu1 %4891  ;;  %v4913_v44 = vmul.f32 %v6911_v51, %v9914_v43  ;;  %6260 = vmatprep.subr.mxu1 %v5186_v40 }
 0x90a   : > { %6922 = vrcp.f32 %v4892_v58  ;;  %6230 = vmatmul.mubr.msk.f32.gmra.mrb[62].mxu1 %vm4751_vm8, %v4911_v24 }
 0x90b   : > { %v6913_v53 = vpop.eup %6912  ;;  %6248 = vmatprep.mubr.msk.f32.mxu1 %vm4751_vm8, %v4913_v44  ;;  %5421 = vst.msk [vmem:[%s7206_s14 - $0x1] sm:$0x4] %vm5419_vm3, %v4913_v44  ;;  %vm10468_vm3 = vmmov %vm10465_vm0  ;;  %s7042_s14 = smov [#allocation5]  }
 0x90c   : > { %v6915_v30 = vpop.eup %6914  ;;  %v4915_v41 = vmul.f32 %v6913_v53, %v9921_v6  ;;  %v4895_v29 = vpop.xlane.xlu0 %4894  ;;  %s6931_s16 = sshll.u32 %s7042_s14, 4  ;;  %s6932_s16 = int_to_ptr.vmem [resolvable:$false] %s6931_s16 }
 0x90d   : > { %6924 = vrcp.f32 %v4895_v29  ;;  %v1576_v45 = vpop.permute.xlu1 %1575  ;;  %v4917_v7 = vmul.f32 %v6915_v30, %v9923_v1  ;;  %s6933_s17 = scalar_lea.vmem %s6932_s16, 64  ;;  %p6934_p5 = scmp.lt.s32.totalorder %s10034_s15, %s6932_s16 }
 0x90e   : > { %6249 = vmatmul.mubr.msk.f32.vlgmr.msra.gmra.mrb[64].mxu1 %vm4751_vm8, %v4915_v41  ;;  %p6935_p6 = scmp.lt.s32.totalorder %s6933_s17, %s6927_s0 }
 0x90f   : > { %v6917_v43 = vpop.eup %6916  ;;  %6251 = vmatprep.mubr.msk.f32.mxu1 %vm4751_vm8, %v4917_v7  ;;  %6261 = vmatpush3.msra.mxu1 %v5186_v40 }
 0x910   : > { %v6919_v21 = vpop.eup %6918  ;;  %v1887_v47 = vpop.permute.xlu0 %1886  ;;  %v4919_v0 = vmul.f32 %v6917_v43, %v9929_v39  ;;  %p6936_p7 = por %p6935_p6, %p6934_p5 }
 0x911   : > { %v4921_v8 = vmul.f32 %v6919_v21, %v9931_v33 }
 0x912   : > { %6252 = vmatmul.mubr.msk.f32.gmra.mrb[66].mxu1 %vm4751_vm8, %v4919_v0  ;;  %p6937_p9 = pnand %p6936_p7, %p6930_p4 }
 0x913   : > { %v6921_v6 = vpop.eup %6920  ;;  %6254 = vmatprep.mubr.msk.f32.mxu1 %vm4751_vm8, %v4921_v8 }
 0x914   : > { %v6923_v32 = vpop.eup %6922  ;;  %v4923_v1 = vmul.f32 %v6921_v6, %v9937_v20 }
 0x915   : > { %v4925_v12 = vmul.f32 %v6923_v32, %v9939_v60 }
 0x916   : > { %6255 = vmatmul.mubr.msk.f32.gmra.mrb[68].mxu1 %vm4751_vm8, %v4923_v1 }
 0x917   : > { %v6925_v31 = vpop.eup %6924  ;;  %6257 = vmatprep.mubr.msk.f32.mxu1 %vm4751_vm8, %v4925_v12 }
 0x918   : > { %v4927_v57 = vmul.f32 %v6925_v31, %v9945_v5 }
 0x91a   : > { %6258 = vmatmul.mubr.msk.f32.gmra.mrb[70].mxu1 %vm4751_vm8, %v4927_v57  ;;  %vm10467_vm8 = vmmov %vm10465_vm0 }
 0x91b   : > { %6262 = vmatprep.mubr.msk.f32.mxu1 %vm10453_vm10, %v9573_v4 }
 0x91e   : > { %6263 = vmatmul.mubr.msk.f32.vlgmr.msra.gmra.mrb[56].mxu1 %vm10454_vm13, %v9579_v54 }
 0x91f   : > { %6265 = vmatprep.mubr.msk.f32.mxu1 %vm10455_vm9, %v9588_v13 }
 0x922   : > { %6266 = vmatmul.mubr.msk.f32.gmra.mrb[58].mxu1 %vm10456_vm2, %v9586_v2 }
 0x923   : > { %6268 = vmatprep.mubr.msk.f32.mxu1 %vm10457_vm15, %v9600_v14 }
 0x926   : > { %6269 = vmatmul.mubr.msk.f32.gmra.mrb[60].mxu1 %vm10458_vm5, %v9590_v49 }
 0x927   : > { %6271 = vmatprep.mubr.msk.f32.mxu1 %vm10459_vm7, %v9612_v22 }
 0x92a   : > { %6272 = vmatmul.mubr.msk.f32.gmra.mrb[62].mxu1 %vm10460_vm12, %v9602_v25 }
 0x92b   : > { %6274 = vmatprep.mubr.msk.f32.mxu1 %vm10461_vm4, %v9624_v26 }
 0x92e   : > { %6275 = vmatmul.mubr.msk.f32.gmra.mrb[64].mxu1 %vm10462_vm6, %v9614_v3 }
 0x92f   : > { %6277 = vmatprep.mubr.msk.f32.mxu1 %vm10463_vm14, %v9636_v9 }
 0x932   : > { %6278 = vmatmul.mubr.msk.f32.gmra.mrb[66].mxu1 %vm10464_vm1, %v9630_v10 }
 0x933   : > { %6280 = vmatprep.mubr.msk.f32.mxu1 %vm10465_vm0, %v9648_v18 }
 0x936   : > { %6281 = vmatmul.mubr.msk.f32.gmra.mrb[68].mxu1 %vm10466_vm11, %v9646_v17 }
 0x937   : > { %6283 = vmatprep.mubr.msk.f32.mxu1 %vm10467_vm8, %v9658_v63 }
 0x93a   : > { %6284 = vmatmul.mubr.msk.f32.gmra.mrb[70].mxu1 %vm10468_vm3, %v9660_v16 }
 0x93b   : > { %6940 = shalt.err (!%p6937_p9)
}
 0x93c   : > { %s6941_s22 = scalar_lea.hbm %s10039_s28, 32  ;;  %s6945_s12 = scalar_lea.hbm %s10470_s25, 256 }
 0x93d   : > { %p6942_p10 = scmp.ne.s32.totalorder %s10039_s28, %s6941_s22  ;;  %p6946_p13 = scmp.lt.u32.totalorder %s10039_s28, %s10470_s25 }
 0x93e   : > { %p6947_p0 = scmp.lt.u32.totalorder %s6945_s12, %s6941_s22  ;;  %p6949_p2 = scmp.lt.u32.totalorder %s6941_s22, %s10039_s28 }
 0x93f   : > { %p6943_p11 = pnand %p6942_p10, %p7170_p3 }
 0x940   : > { %p6948_p1 = por %p6947_p0, %p6946_p13 }
 0x941   : > { %p6944_p12 = pneg %p6943_p11 }
 0x942   : > { %p6950_p4 = por %p6949_p2, %p6948_p1 }
 0x944   : > { %p6951_p5 = pnand %p6950_p4, %p6944_p12 }
 0x946   : > { %6954 = shalt.err (!%p6951_p5)
}
 0x947   : > { %s7043_s0 = smov 1   ;;  %s10471_s27 = smov 16   ;;  %vm10473_vm10 = vmmov %vm10465_vm0 }
 0x948   : > { %6432 = dma.vmem_to_hbm [thread:$0]  (%p7170_p3), %s10034_s15, 32, %s10039_s28, %s10043_s21, %s10471_s27, %s10471_s27, %s7043_s0   ;;  %vm10474_vm13 = vmmov %vm10465_vm0 }
 0x949   : > { %s10472_s16 = sld [smem:[#allocation71_spill]]  ;;  %vm10475_vm9 = vmmov %vm10465_vm0 }
 0x94a   : > { %vm10476_vm2 = vmmov %vm10465_vm0 }
 0x94b   : > { %vm10477_vm15 = vmmov %vm10465_vm0 }
 0x94c   : > { %vm10478_vm5 = vmmov %vm10465_vm0 }
 0x94d   : > { %vm10479_vm7 = vmmov %vm10465_vm0 }
 0x94e   : > { %vm10480_vm12 = vmmov %vm10465_vm0 }
 0x94f   : > { %v5845_v4 = vld [vmem:[%s10472_s16] ss:$0 sm:$0xff]  ;;  %vm10481_vm4 = vmmov %vm10465_vm0 }
 0x950   : > { %vm10482_vm6 = vmmov %vm10465_vm0 }
 0x951   : > { %vm10483_vm14 = vmmov %vm10465_vm0 }
 0x952   : > { %vm10484_vm1 = vmmov %vm10465_vm0 }
 0x953   : > { %vm10485_vm11 = vmmov %vm10465_vm0 }
 0x954   : > { %vm10486_vm8 = vmmov %vm10465_vm0 }
 0x955   : > { %vm10487_vm3 = vmmov %vm10465_vm0 }
 0x9f1   : > { %v6264_v54 = vpop.f32.mrb[56].mxu1 }
 0x9f2   : > { %v5356_v2 = vadd.f32 %v6264_v54, %v5845_v4  ;;  %v5253_v13 = vpop.f32.mrb[57].mxu1 }
 0x9f3   : > { %v5355_v49 = vadd.f32 %v5845_v4, %v5253_v13 }
 0x9f4   : > { %5372 = vst.msk [vmem:[#allocation3 + $0x8] sm:$0xff] %vm10473_vm10, %v5356_v2  ;;  %vm10488_vm10 = vmmov %vm10465_vm0 }
 0x9f5   : > { %5404 = vst.msk [vmem:[%s7204_s20 + $0x8] sm:$0xff] %vm10474_vm13, %v5356_v2  ;;  %v6267_v14 = vpop.f32.mrb[58].mxu1  ;;  %vm10489_vm13 = vmmov %vm10465_vm0 }
 0x9f6   : > { %5371 = vst.msk [vmem:[#allocation3] sm:$0xff] %vm10475_vm9, %v5355_v49  ;;  %v5358_v25 = vadd.f32 %v6267_v14, %v5845_v4  ;;  %v5263_v22 = vpop.f32.mrb[59].mxu1  ;;  %vm10490_vm9 = vmmov %vm10465_vm0 }
 0x9f7   : > { %5403 = vst.msk [vmem:[%s7204_s20] sm:$0xff] %vm10476_vm2, %v5355_v49  ;;  %v5357_v3 = vadd.f32 %v5845_v4, %v5263_v22  ;;  %vm10491_vm2 = vmmov %vm10465_vm0 }
 0x9f8   : > { %5374 = vst.msk [vmem:[#allocation3 + $0x18] sm:$0xff] %vm10477_vm15, %v5358_v25  ;;  %vm10492_vm15 = vmmov %vm10465_vm0 }
 0x9f9   : > { %5406 = vst.msk [vmem:[%s7204_s20 + $0x18] sm:$0xff] %vm10478_vm5, %v5358_v25  ;;  %v6270_v26 = vpop.f32.mrb[60].mxu1  ;;  %vm10493_vm5 = vmmov %vm10465_vm0 }
 0x9fa   : > { %5373 = vst.msk [vmem:[#allocation3 + $0x10] sm:$0xff] %vm10479_vm7, %v5357_v3  ;;  %v5360_v10 = vadd.f32 %v6270_v26, %v5845_v4  ;;  %v5273_v9 = vpop.f32.mrb[61].mxu1  ;;  %vm10494_vm7 = vmmov %vm10465_vm0 }
 0x9fb   : > { %5405 = vst.msk [vmem:[%s7204_s20 + $0x10] sm:$0xff] %vm10480_vm12, %v5357_v3  ;;  %v5359_v17 = vadd.f32 %v5845_v4, %v5273_v9  ;;  %vm10495_vm12 = vmmov %vm10465_vm0 }
 0x9fc   : > { %5376 = vst.msk [vmem:[#allocation3 + $0x28] sm:$0xff] %vm10481_vm4, %v5360_v10  ;;  %vm10496_vm4 = vmmov %vm10465_vm0 }
 0x9fd   : > { %5408 = vst.msk [vmem:[%s7204_s20 + $0x28] sm:$0xff] %vm10482_vm6, %v5360_v10  ;;  %v6273_v18 = vpop.f32.mrb[62].mxu1  ;;  %vm10497_vm6 = vmmov %vm10465_vm0 }
 0x9fe   : > { %5375 = vst.msk [vmem:[#allocation3 + $0x20] sm:$0xff] %vm10483_vm14, %v5359_v17  ;;  %v5362_v63 = vadd.f32 %v6273_v18, %v5845_v4  ;;  %v5283_v16 = vpop.f32.mrb[63].mxu1  ;;  %vm10498_vm14 = vmmov %vm10465_vm0 }
 0x9ff   : > { %5407 = vst.msk [vmem:[%s7204_s20 + $0x20] sm:$0xff] %vm10484_vm1, %v5359_v17  ;;  %v5361_v39 = vadd.f32 %v5845_v4, %v5283_v16  ;;  %vm10499_vm1 = vmmov %vm10465_vm0 }
 0xa00   : > { %5378 = vst.msk [vmem:[#allocation3 + $0x38] sm:$0xff] %vm10465_vm0, %v5362_v63 }
 0xa01   : > { %5410 = vst.msk [vmem:[%s7204_s20 + $0x38] sm:$0xff] %vm10485_vm11, %v5362_v63  ;;  %v6276_v33 = vpop.f32.mrb[64].mxu1  ;;  %vm10500_vm11 = vmmov %vm10465_vm0 }
 0xa02   : > { %5377 = vst.msk [vmem:[#allocation3 + $0x30] sm:$0xff] %vm10486_vm8, %v5361_v39  ;;  %v5364_v20 = vadd.f32 %v6276_v33, %v5845_v4  ;;  %v5293_v60 = vpop.f32.mrb[65].mxu1  ;;  %vm10501_vm8 = vmmov %vm10465_vm0 }
 0xa03   : > { %5409 = vst.msk [vmem:[%s7204_s20 + $0x30] sm:$0xff] %vm10487_vm3, %v5361_v39  ;;  %v5363_v5 = vadd.f32 %v5845_v4, %v5293_v60  ;;  %vm10502_vm3 = vmmov %vm10465_vm0 }
 0xa04   : > { %5380 = vst.msk [vmem:[#allocation3 + $0x48] sm:$0xff] %vm10488_vm10, %v5364_v20 }
 0xa05   : > { %5412 = vst.msk [vmem:[%s7204_s20 + $0x48] sm:$0xff] %vm10489_vm13, %v5364_v20  ;;  %v6279_v37 = vpop.f32.mrb[66].mxu1 }
 0xa06   : > { %5379 = vst.msk [vmem:[#allocation3 + $0x40] sm:$0xff] %vm10490_vm9, %v5363_v5  ;;  %v5366_v27 = vadd.f32 %v6279_v37, %v5845_v4  ;;  %v5303_v52 = vpop.f32.mrb[67].mxu1 }
 0xa07   : > { %5411 = vst.msk [vmem:[%s7204_s20 + $0x40] sm:$0xff] %vm10491_vm2, %v5363_v5  ;;  %v5365_v34 = vadd.f32 %v5845_v4, %v5303_v52 }
 0xa08   : > { %5382 = vst.msk [vmem:[#allocation3 + $0x58] sm:$0xff] %vm10492_vm15, %v5366_v27 }
 0xa09   : > { %5414 = vst.msk [vmem:[%s7204_s20 + $0x58] sm:$0xff] %vm10493_vm5, %v5366_v27  ;;  %v6282_v38 = vpop.f32.mrb[68].mxu1 }
 0xa0a   : > { %5381 = vst.msk [vmem:[#allocation3 + $0x50] sm:$0xff] %vm10494_vm7, %v5365_v34  ;;  %v5368_v62 = vadd.f32 %v6282_v38, %v5845_v4  ;;  %v5313_v59 = vpop.f32.mrb[69].mxu1 }
 0xa0b   : > { %5413 = vst.msk [vmem:[%s7204_s20 + $0x50] sm:$0xff] %vm10495_vm12, %v5365_v34  ;;  %v5367_v61 = vadd.f32 %v5845_v4, %v5313_v59 }
 0xa0c   : > { %5384 = vst.msk [vmem:[#allocation3 + $0x68] sm:$0xff] %vm10496_vm4, %v5368_v62 }
 0xa0d   : > { %5416 = vst.msk [vmem:[%s7204_s20 + $0x68] sm:$0xff] %vm10497_vm6, %v5368_v62  ;;  %v6285_v46 = vpop.f32.mrb[70].mxu1 }
 0xa0e   : > { %5383 = vst.msk [vmem:[#allocation3 + $0x60] sm:$0xff] %vm10498_vm14, %v5367_v61  ;;  %v5370_v50 = vadd.f32 %v6285_v46, %v5845_v4  ;;  %v5323_v11 = vpop.f32.mrb[71].mxu1 }
 0xa0f   : > { %5415 = vst.msk [vmem:[%s7204_s20 + $0x60] sm:$0xff] %vm10499_vm1, %v5367_v61  ;;  %v5369_v55 = vadd.f32 %v5845_v4, %v5323_v11 }
 0xa10   : > { %5386 = vst.msk [vmem:[#allocation3 + $0x78] sm:$0xff] %vm10465_vm0, %v5370_v50 }
 0xa11   : > { %5418 = vst.msk [vmem:[%s7204_s20 + $0x78] sm:$0xff] %vm10500_vm11, %v5370_v50 }
 0xa12   : > { %5385 = vst.msk [vmem:[#allocation3 + $0x70] sm:$0xff] %vm10501_vm8, %v5369_v55 }
 0xa13   : > { %5417 = vst.msk [vmem:[%s7204_s20 + $0x70] sm:$0xff] %vm10502_vm3, %v5369_v55 }
 0xa14 PF: > { %s10503_s26 = sld [smem:[#allocation12_spill]]  ;;  %s10504_s21 = sld [smem:[#allocation8_spill]] }
 0xa1a   : > { %p6438_p3 = scmp.ge.s32.totalorder %s10503_s26, 2  ;;  %s5478_s28 = sand.u32 1, %s10504_s21  }
 0xa1b   : > { %s5479_s17 = scalar_lea.sflag [#allocation6], %s5478_s28 }
 0xa1c   : > { %p6435_p6 = pnand %p6438_p3, %p7179_p8 }
 0xa1e   : > { %6988 = dma.done.wait (!%p6435_p6), %s5479_s17, 32  }
 0xa1f   : > { %6990 = vsyncadd (!%p6435_p6), %s5479_s17, 4294967264  ;;  %s28_s20 = sadd.s32 1, %s10503_s26   ;;  %s10506_s22 = sld [smem:[#allocation9_spill]] }
 0xa20   : > { %p25_p7 = scmp.ge.s32.totalorder %s28_s20, 10   ;;  %s10507_s15 = sld [smem:[#allocation16_spill]] }
 0xa21   : > { %s10508_s16 = sld [smem:[#allocation10_spill]]  ;;  %s10509_s17 = sld [smem:[#allocation11_spill]] }
 0xa22   : > { %s10510_s18 = sld [smem:[#allocation13_spill]]  ;;  %s10511_s19 = sld [smem:[#allocation14_spill]] }
 0xa23   : > { %s10512_s29 = smov %s6997_s30  ;;  %27 = sbr.rel (!%p25_p7) target bundleno = 9 (0x9), region = 132 }
 0xa25   : > { %s10513_s30 = smov %s10506_s22 }
 0xa2a   :  { %5484 = vsyncpa [#allocation6], 1 }
 0xa2b   :  { %5486 = vsyncpa [#allocation6 + $0x1], 1 }

</bundles_post_ra>
